<compile_context>
chip_gen: v5e
topology: v5e:2x2
jax: 0.10.0
libtpu: 0.0.40
codegen_flags: <defaults>
</compile_context>

<pallas_src>
import jax
import jax.numpy as jnp
from jax import lax
from jax.experimental import pallas as pl
from jax.experimental.pallas import tpu as pltpu


COMPUTE_DTYPE = jnp.float32  # flip to jnp.bfloat16 on v6e/v7x (loosen tolerance)


def _build_fused_encoder_kernel(layer_cfg, compute_dtype):
    """Kernel computing the whole encoder stack for one batch element.
    All shapes / strides are static and closed over."""
    n_layers = len(layer_cfg)

    def kernel(*refs):
        # refs = [xb0, w0, b0, w1, b1, ..., w_{N-1}, b_{N-1}, out]
        xb0_ref = refs[0]
        o_ref = refs[-1]
        w_refs = [refs[1 + 2 * l] for l in range(n_layers)]
        b_refs = [refs[2 + 2 * l] for l in range(n_layers)]

        # ---- layer 0: block im2col -> m contiguous-slice MXU matmuls --------
        c0 = layer_cfg[0]
        L0, s0, m0, cin0 = c0["L_out"], c0["stride"], c0["m"], c0["C_in"]
        sc0 = s0 * cin0
        y = None
        for q in range(m0):  # static unroll over kernel-tap blocks
            a = xb0_ref[0, q:q + L0, :].astype(compute_dtype)            # (L0, sc0)
            wq = w_refs[0][q * sc0:(q + 1) * sc0, :].astype(compute_dtype)
            part = jnp.dot(a, wq, preferred_element_type=jnp.float32)    # MXU
            y = part if y is None else y + part
        y = y + b_refs[0][...]                                           # (1, C) bcast
        if n_layers > 1:
            y = jnp.maximum(y, 0.0)

        # ---- layers 1..N-1: phase-split strided conv, all on the MXU --------
        for l in range(1, n_layers):
            c = layer_cfg[l]
            s, K, m, L_out = c["stride"], c["K"], c["m"], c["L_out"]
            n_b = L_out + m - 1               # phase rows needed
            rows_in = y.shape[0]
            yc = y.astype(compute_dtype)
            # iotas hoisted out of the phase loop
            row = lax.broadcasted_iota(jnp.int32, (n_b, rows_in), 0)
            col = lax.broadcasted_iota(jnp.int32, (n_b, rows_in), 1)
            acc = None
            for j in range(s):                # static unroll over phases
                # 0/1 gather matrix: picks rows {a*s + j} of the previous layer
                sel = jnp.where(col == row * s + j, 1.0, 0.0).astype(compute_dtype)
                z = jnp.dot(sel, yc, preferred_element_type=jnp.float32)   # (n_b, C_in)
                zc = z.astype(compute_dtype)
                for p in range(m):            # static unroll over tap-blocks
                    k = p * s + j
                    if k >= K:
                        continue
                    wk = w_refs[l][k].astype(compute_dtype)                # (C_in, C_out)
                    part = jnp.dot(zc[p:p + L_out, :], wk,
                                   preferred_element_type=jnp.float32)     # MXU
                    acc = part if acc is None else acc + part
            acc = acc + b_refs[l][...]
            if l < n_layers - 1:
                acc = jnp.maximum(acc, 0.0)
            y = acc

        o_ref[0] = y.astype(o_ref.dtype)

    return kernel


def audio_encoder_forward(x_nct, weights, biases, strides):
    """AudioEncoder forward.  x_nct: (B, 1, T) PyTorch NCL layout.
    weights[l]: (C_out, C_in, K) PyTorch layout; biases[l]: (C_out,).
    Returns (B, C_last, T_out) like the PyTorch module."""
    B, cin0, T = x_nct.shape
    assert cin0 == 1, "first Conv1d layer has in_channels=1 in this module"
    n_layers = len(weights)
    kernel_sizes = [int(w.shape[2]) for w in weights]
    channels = [int(w.shape[0]) for w in weights]

    # Static per-layer config.
    layer_cfg = []
    L = T
    for l in range(n_layers):
        K, s = kernel_sizes[l], strides[l]
        cin = 1 if l == 0 else channels[l - 1]
        m = -(-K // s)                        # ceil(K / stride)
        L_out = (L - K) // s + 1
        assert L_out >= 1, "input too short for this conv layer"
        layer_cfg.append(dict(stride=s, K=K, m=m, L_out=L_out,
                              C_in=cin, C_out=channels[l]))
        L = L_out

    # Layer-0 block im2col (free row-major reshape in HBM).
    c0 = layer_cfg[0]
    s0, m0, L0 = c0["stride"], c0["m"], c0["L_out"]
    K0, K0_pad = kernel_sizes[0], c0["m"] * s0
    n_blocks0 = L0 + m0 - 1
    need_rows = n_blocks0 * s0
    x = jnp.transpose(x_nct, (0, 2, 1)).astype(jnp.float32)      # (B, T, 1)
    if need_rows > T:
        x = jnp.pad(x, ((0, 0), (0, need_rows - T), (0, 0)))
    elif need_rows < T:
        x = x[:, :need_rows, :]
    xb0 = x.reshape(B, n_blocks0, s0 * 1)

    # Layer-0 weight: (C_out, 1, K0) -> zero-pad taps -> (K0_pad*1, C_out).
    w0 = jnp.pad(weights[0], ((0, 0), (0, 0), (0, K0_pad - K0)))
    w0r = (jnp.transpose(w0, (2, 1, 0))
           .reshape(K0_pad * 1, channels[0]).astype(jnp.float32))

    args = [xb0, w0r, biases[0].reshape(1, channels[0]).astype(jnp.float32)]
    in_specs = [
        pl.BlockSpec((1, n_blocks0, s0 * 1), lambda b: (b, 0, 0)),
        pl.BlockSpec((K0_pad * 1, channels[0]), lambda b: (0, 0)),
        pl.BlockSpec((1, channels[0]), lambda b: (0, 0)),
    ]
    # Layers 1..N-1: weights reshaped to (K, C_in, C_out), biases to (1, C_out).
    for l in range(1, n_layers):
        K, cin, cout = kernel_sizes[l], layer_cfg[l]["C_in"], layer_cfg[l]["C_out"]
        wl = jnp.transpose(weights[l], (2, 1, 0)).astype(jnp.float32)
        bl = biases[l].reshape(1, cout).astype(jnp.float32)
        args += [wl, bl]
        in_specs += [
            pl.BlockSpec((K, cin, cout), lambda b: (0, 0, 0)),
            pl.BlockSpec((1, cout), lambda b: (0, 0)),
        ]

    L_last, C_last = layer_cfg[-1]["L_out"], channels[-1]
    kernel = _build_fused_encoder_kernel(layer_cfg, COMPUTE_DTYPE)

    out_tlc = pl.pallas_call(
        kernel,
        out_shape=jax.ShapeDtypeStruct((B, L_last, C_last), jnp.float32),
        grid_spec=pltpu.PrefetchScalarGridSpec(
            num_scalar_prefetch=0,
            grid=(B,),
            in_specs=in_specs,
            out_specs=pl.BlockSpec((1, L_last, C_last), lambda b: (b, 0, 0)),
        ),
        compiler_params=pltpu.CompilerParams(
            # batch is embarrassingly parallel (lets v7x split it over 2 TCs)
            dimension_semantics=("parallel",),
        ),
    )(*args)
    return jnp.transpose(out_tlc, (0, 2, 1))                     # back to (B, C, L)


def _encoder_reference(x_nct, weights, biases, strides):
    """Plain-JAX reference matching the PyTorch AudioEncoder forward."""
    x = x_nct.astype(jnp.float32)
    n_layers = len(weights)
    for l in range(n_layers):
        y = lax.conv_general_dilated(
            x, weights[l], window_strides=(strides[l],), padding="VALID",
            dimension_numbers=("NCH", "OIH", "NCH"),
            precision=lax.Precision.HIGHEST)
        y = y + biases[l][None, :, None]
        if l < n_layers - 1:
            y = jax.nn.relu(y)
        x = y
    return x


if __name__ == "__main__":
    # Same strides / kernel sizes as the default AudioEncoder; channel_count
    # shrunk from 512 to 128 (small but 128-lane aligned).  T=960 -> 4 output
    # frames (downsampling factor 160, receptive field 465).
    strides = [5, 4, 2, 2, 2]
    kernel_sizes = [10, 8, 4, 4, 4]
    channels = [128, 128, 128, 128, 128]
    batch, T = 2, 960

    key = jax.random.PRNGKey(0)
    kx, *wkeys = jax.random.split(key, 1 + 2 * len(strides))

    x = jax.random.normal(kx, (batch, 1, T), jnp.float32)

    weights, biases = [], []
    for l in range(len(strides)):
        c_in = 1 if l == 0 else channels[l - 1]
        c_out, k = channels[l], kernel_sizes[l]
        bound = 1.0 / float(jnp.sqrt(jnp.float32(c_in * k)))  # PyTorch Conv1d default init
        weights.append(jax.random.uniform(wkeys[2 * l], (c_out, c_in, k),
                                          jnp.float32, -bound, bound))
        biases.append(jax.random.uniform(wkeys[2 * l + 1], (c_out,),
                                         jnp.float32, -bound, bound))

    y_kernel = jax.block_until_ready(audio_encoder_forward(x, weights, biases, strides))
    y_ref = jax.block_until_ready(_encoder_reference(x, weights, biases, strides))

    assert y_kernel.shape == y_ref.shape == (batch, channels[-1], 4), y_kernel.shape
    max_err = float(jnp.max(jnp.abs(y_kernel - y_ref)))
    assert jnp.allclose(y_kernel, y_ref, atol=3e-3, rtol=3e-3), f"mismatch: max abs err {max_err}"
    print("KERNEL_OK")
</pallas_src>

<mosaic_0001>
module attributes {stable_mosaic.version = 11 : i64} {
  func.func @kernel(%arg0: i32, %arg1: memref<1x192x5xf32, #tpu.memory_space<vmem>>, %arg2: memref<10x128xf32, #tpu.memory_space<vmem>>, %arg3: memref<1x128xf32, #tpu.memory_space<vmem>>, %arg4: memref<8x128x128xf32, #tpu.memory_space<vmem>>, %arg5: memref<1x128xf32, #tpu.memory_space<vmem>>, %arg6: memref<4x128x128xf32, #tpu.memory_space<vmem>>, %arg7: memref<1x128xf32, #tpu.memory_space<vmem>>, %arg8: memref<4x128x128xf32, #tpu.memory_space<vmem>>, %arg9: memref<1x128xf32, #tpu.memory_space<vmem>>, %arg10: memref<4x128x128xf32, #tpu.memory_space<vmem>>, %arg11: memref<1x128xf32, #tpu.memory_space<vmem>>, %arg12: memref<1x4x128xf32, #tpu.memory_space<vmem>>) attributes {dimension_semantics = [#tpu.dimension_semantics<parallel>], iteration_bounds = array<i64: 2>, scalar_prefetch = 0 : i64, scratch_operands = 0 : i64, tpu.core_type = #tpu.core_type<tc>, window_params = [{transform_indices = @transform_0, window_bounds = array<i64: 1, 192, 5>}, {pipeline_mode = #tpu.pipeline_mode<synchronous>, transform_indices = @transform_1, window_bounds = array<i64: 10, 128>}, {pipeline_mode = #tpu.pipeline_mode<synchronous>, transform_indices = @transform_2, window_bounds = array<i64: 1, 128>}, {pipeline_mode = #tpu.pipeline_mode<synchronous>, transform_indices = @transform_3, window_bounds = array<i64: 8, 128, 128>}, {pipeline_mode = #tpu.pipeline_mode<synchronous>, transform_indices = @transform_4, window_bounds = array<i64: 1, 128>}, {pipeline_mode = #tpu.pipeline_mode<synchronous>, transform_indices = @transform_5, window_bounds = array<i64: 4, 128, 128>}, {pipeline_mode = #tpu.pipeline_mode<synchronous>, transform_indices = @transform_6, window_bounds = array<i64: 1, 128>}, {pipeline_mode = #tpu.pipeline_mode<synchronous>, transform_indices = @transform_7, window_bounds = array<i64: 4, 128, 128>}, {pipeline_mode = #tpu.pipeline_mode<synchronous>, transform_indices = @transform_8, window_bounds = array<i64: 1, 128>}, {pipeline_mode = #tpu.pipeline_mode<synchronous>, transform_indices = @transform_9, window_bounds = array<i64: 4, 128, 128>}, {pipeline_mode = #tpu.pipeline_mode<synchronous>, transform_indices = @transform_10, window_bounds = array<i64: 1, 128>}, {transform_indices = @transform_11, window_bounds = array<i64: 1, 4, 128>}]} {
    %c0 = arith.constant 0 : index
    %c0_0 = arith.constant 0 : index
    %c0_1 = arith.constant 0 : index
    %0 = vector.load %arg1[%c0, %c0_0, %c0_1] : memref<1x192x5xf32, #tpu.memory_space<vmem>>, vector<1x191x5xf32>
    %1 = vector.shape_cast %0 : vector<1x191x5xf32> to vector<191x5xf32>
    %c0_2 = arith.constant 0 : index
    %c0_3 = arith.constant 0 : index
    %2 = vector.load %arg2[%c0_2, %c0_3] : memref<10x128xf32, #tpu.memory_space<vmem>>, vector<5x128xf32>
    %cst = arith.constant dense<0.000000e+00> : vector<191x128xf32>
    %3 = tpu.matmul %1, %2, %cst {dimension_numbers = #tpu.dot_dimension_numbers<[1], [0], [0], [1], [0, 0, 1, 1], [], []>} : vector<191x5xf32>, vector<5x128xf32>, vector<191x128xf32> -> vector<191x128xf32>
    %c0_4 = arith.constant 0 : index
    %c1 = arith.constant 1 : index
    %c0_5 = arith.constant 0 : index
    %4 = vector.load %arg1[%c0_4, %c1, %c0_5] : memref<1x192x5xf32, #tpu.memory_space<vmem>>, vector<1x191x5xf32>
    %5 = vector.shape_cast %4 : vector<1x191x5xf32> to vector<191x5xf32>
    %c5 = arith.constant 5 : index
    %c0_6 = arith.constant 0 : index
    %6 = vector.load %arg2[%c5, %c0_6] : memref<10x128xf32, #tpu.memory_space<vmem>>, vector<5x128xf32>
    %cst_7 = arith.constant dense<0.000000e+00> : vector<191x128xf32>
    %7 = tpu.matmul %5, %6, %cst_7 {dimension_numbers = #tpu.dot_dimension_numbers<[1], [0], [0], [1], [0, 0, 1, 1], [], []>} : vector<191x5xf32>, vector<5x128xf32>, vector<191x128xf32> -> vector<191x128xf32>
    %8 = arith.addf %3, %7 : vector<191x128xf32>
    %c0_8 = arith.constant 0 : index
    %c0_9 = arith.constant 0 : index
    %9 = vector.load %arg3[%c0_8, %c0_9] : memref<1x128xf32, #tpu.memory_space<vmem>>, vector<1x128xf32>
    %10 = vector.broadcast %9 : vector<1x128xf32> to vector<191x128xf32>
    %11 = arith.addf %8, %10 : vector<191x128xf32>
    %cst_10 = arith.constant 0.000000e+00 : f32
    %12 = vector.broadcast %cst_10 : f32 to vector<191x128xf32>
    %13 = arith.maximumf %11, %12 : vector<191x128xf32>
    %14 = tpu.iota {dimensions = array<i32: 0>} : vector<47x191xi32>
    %15 = tpu.iota {dimensions = array<i32: 1>} : vector<47x191xi32>
    %c4_i32 = arith.constant 4 : i32
    %16 = vector.broadcast %c4_i32 : i32 to vector<47x191xi32>
    %17 = arith.muli %14, %16 : vector<47x191xi32>
    %c0_i32 = arith.constant 0 : i32
    %18 = vector.broadcast %c0_i32 : i32 to vector<47x191xi32>
    %19 = arith.addi %17, %18 : vector<47x191xi32>
    %20 = arith.cmpi eq, %15, %19 : vector<47x191xi32>
    %cst_11 = arith.constant 1.000000e+00 : f32
    %cst_12 = arith.constant 0.000000e+00 : f32
    %21 = vector.broadcast %cst_11 : f32 to vector<47x191xf32>
    %22 = vector.broadcast %cst_12 : f32 to vector<47x191xf32>
    %23 = arith.select %20, %21, %22 : vector<47x191xi1>, vector<47x191xf32>
    %cst_13 = arith.constant dense<0.000000e+00> : vector<47x128xf32>
    %24 = tpu.matmul %23, %13, %cst_13 {dimension_numbers = #tpu.dot_dimension_numbers<[1], [0], [0], [1], [0, 0, 1, 1], [], []>} : vector<47x191xf32>, vector<191x128xf32>, vector<47x128xf32> -> vector<47x128xf32>
    %c0_14 = arith.constant 0 : index
    %c0_15 = arith.constant 0 : index
    %c0_16 = arith.constant 0 : index
    %25 = vector.load %arg4[%c0_14, %c0_15, %c0_16] : memref<8x128x128xf32, #tpu.memory_space<vmem>>, vector<1x128x128xf32>
    %26 = vector.shape_cast %25 : vector<1x128x128xf32> to vector<128x128xf32>
    %27 = vector.extract_strided_slice %24 {offsets = [0, 0], sizes = [46, 128], strides = [1, 1]} : vector<47x128xf32> to vector<46x128xf32>
    %cst_17 = arith.constant dense<0.000000e+00> : vector<46x128xf32>
    %28 = tpu.matmul %27, %26, %cst_17 {dimension_numbers = #tpu.dot_dimension_numbers<[1], [0], [0], [1], [0, 0, 1, 1], [], []>} : vector<46x128xf32>, vector<128x128xf32>, vector<46x128xf32> -> vector<46x128xf32>
    %c4 = arith.constant 4 : index
    %c0_18 = arith.constant 0 : index
    %c0_19 = arith.constant 0 : index
    %29 = vector.load %arg4[%c4, %c0_18, %c0_19] : memref<8x128x128xf32, #tpu.memory_space<vmem>>, vector<1x128x128xf32>
    %30 = vector.shape_cast %29 : vector<1x128x128xf32> to vector<128x128xf32>
    %31 = vector.extract_strided_slice %24 {offsets = [1, 0], sizes = [46, 128], strides = [1, 1]} : vector<47x128xf32> to vector<46x128xf32>
    %cst_20 = arith.constant dense<0.000000e+00> : vector<46x128xf32>
    %32 = tpu.matmul %31, %30, %cst_20 {dimension_numbers = #tpu.dot_dimension_numbers<[1], [0], [0], [1], [0, 0, 1, 1], [], []>} : vector<46x128xf32>, vector<128x128xf32>, vector<46x128xf32> -> vector<46x128xf32>
    %33 = arith.addf %28, %32 : vector<46x128xf32>
    %c4_i32_21 = arith.constant 4 : i32
    %34 = vector.broadcast %c4_i32_21 : i32 to vector<47x191xi32>
    %35 = arith.muli %14, %34 : vector<47x191xi32>
    %c1_i32 = arith.constant 1 : i32
    %36 = vector.broadcast %c1_i32 : i32 to vector<47x191xi32>
    %37 = arith.addi %35, %36 : vector<47x191xi32>
    %38 = arith.cmpi eq, %15, %37 : vector<47x191xi32>
    %cst_22 = arith.constant 1.000000e+00 : f32
    %cst_23 = arith.constant 0.000000e+00 : f32
    %39 = vector.broadcast %cst_22 : f32 to vector<47x191xf32>
    %40 = vector.broadcast %cst_23 : f32 to vector<47x191xf32>
    %41 = arith.select %38, %39, %40 : vector<47x191xi1>, vector<47x191xf32>
    %cst_24 = arith.constant dense<0.000000e+00> : vector<47x128xf32>
    %42 = tpu.matmul %41, %13, %cst_24 {dimension_numbers = #tpu.dot_dimension_numbers<[1], [0], [0], [1], [0, 0, 1, 1], [], []>} : vector<47x191xf32>, vector<191x128xf32>, vector<47x128xf32> -> vector<47x128xf32>
    %c1_25 = arith.constant 1 : index
    %c0_26 = arith.constant 0 : index
    %c0_27 = arith.constant 0 : index
    %43 = vector.load %arg4[%c1_25, %c0_26, %c0_27] : memref<8x128x128xf32, #tpu.memory_space<vmem>>, vector<1x128x128xf32>
    %44 = vector.shape_cast %43 : vector<1x128x128xf32> to vector<128x128xf32>
    %45 = vector.extract_strided_slice %42 {offsets = [0, 0], sizes = [46, 128], strides = [1, 1]} : vector<47x128xf32> to vector<46x128xf32>
    %cst_28 = arith.constant dense<0.000000e+00> : vector<46x128xf32>
    %46 = tpu.matmul %45, %44, %cst_28 {dimension_numbers = #tpu.dot_dimension_numbers<[1], [0], [0], [1], [0, 0, 1, 1], [], []>} : vector<46x128xf32>, vector<128x128xf32>, vector<46x128xf32> -> vector<46x128xf32>
    %47 = arith.addf %33, %46 : vector<46x128xf32>
    %c5_29 = arith.constant 5 : index
    %c0_30 = arith.constant 0 : index
    %c0_31 = arith.constant 0 : index
    %48 = vector.load %arg4[%c5_29, %c0_30, %c0_31] : memref<8x128x128xf32, #tpu.memory_space<vmem>>, vector<1x128x128xf32>
    %49 = vector.shape_cast %48 : vector<1x128x128xf32> to vector<128x128xf32>
    %50 = vector.extract_strided_slice %42 {offsets = [1, 0], sizes = [46, 128], strides = [1, 1]} : vector<47x128xf32> to vector<46x128xf32>
    %cst_32 = arith.constant dense<0.000000e+00> : vector<46x128xf32>
    %51 = tpu.matmul %50, %49, %cst_32 {dimension_numbers = #tpu.dot_dimension_numbers<[1], [0], [0], [1], [0, 0, 1, 1], [], []>} : vector<46x128xf32>, vector<128x128xf32>, vector<46x128xf32> -> vector<46x128xf32>
    %52 = arith.addf %47, %51 : vector<46x128xf32>
    %c4_i32_33 = arith.constant 4 : i32
    %53 = vector.broadcast %c4_i32_33 : i32 to vector<47x191xi32>
    %54 = arith.muli %14, %53 : vector<47x191xi32>
    %c2_i32 = arith.constant 2 : i32
    %55 = vector.broadcast %c2_i32 : i32 to vector<47x191xi32>
    %56 = arith.addi %54, %55 : vector<47x191xi32>
    %57 = arith.cmpi eq, %15, %56 : vector<47x191xi32>
    %cst_34 = arith.constant 1.000000e+00 : f32
    %cst_35 = arith.constant 0.000000e+00 : f32
    %58 = vector.broadcast %cst_34 : f32 to vector<47x191xf32>
    %59 = vector.broadcast %cst_35 : f32 to vector<47x191xf32>
    %60 = arith.select %57, %58, %59 : vector<47x191xi1>, vector<47x191xf32>
    %cst_36 = arith.constant dense<0.000000e+00> : vector<47x128xf32>
    %61 = tpu.matmul %60, %13, %cst_36 {dimension_numbers = #tpu.dot_dimension_numbers<[1], [0], [0], [1], [0, 0, 1, 1], [], []>} : vector<47x191xf32>, vector<191x128xf32>, vector<47x128xf32> -> vector<47x128xf32>
    %c2 = arith.constant 2 : index
    %c0_37 = arith.constant 0 : index
    %c0_38 = arith.constant 0 : index
    %62 = vector.load %arg4[%c2, %c0_37, %c0_38] : memref<8x128x128xf32, #tpu.memory_space<vmem>>, vector<1x128x128xf32>
    %63 = vector.shape_cast %62 : vector<1x128x128xf32> to vector<128x128xf32>
    %64 = vector.extract_strided_slice %61 {offsets = [0, 0], sizes = [46, 128], strides = [1, 1]} : vector<47x128xf32> to vector<46x128xf32>
    %cst_39 = arith.constant dense<0.000000e+00> : vector<46x128xf32>
    %65 = tpu.matmul %64, %63, %cst_39 {dimension_numbers = #tpu.dot_dimension_numbers<[1], [0], [0], [1], [0, 0, 1, 1], [], []>} : vector<46x128xf32>, vector<128x128xf32>, vector<46x128xf32> -> vector<46x128xf32>
    %66 = arith.addf %52, %65 : vector<46x128xf32>
    %c6 = arith.constant 6 : index
    %c0_40 = arith.constant 0 : index
    %c0_41 = arith.constant 0 : index
    %67 = vector.load %arg4[%c6, %c0_40, %c0_41] : memref<8x128x128xf32, #tpu.memory_space<vmem>>, vector<1x128x128xf32>
    %68 = vector.shape_cast %67 : vector<1x128x128xf32> to vector<128x128xf32>
    %69 = vector.extract_strided_slice %61 {offsets = [1, 0], sizes = [46, 128], strides = [1, 1]} : vector<47x128xf32> to vector<46x128xf32>
    %cst_42 = arith.constant dense<0.000000e+00> : vector<46x128xf32>
    %70 = tpu.matmul %69, %68, %cst_42 {dimension_numbers = #tpu.dot_dimension_numbers<[1], [0], [0], [1], [0, 0, 1, 1], [], []>} : vector<46x128xf32>, vector<128x128xf32>, vector<46x128xf32> -> vector<46x128xf32>
    %71 = arith.addf %66, %70 : vector<46x128xf32>
    %c4_i32_43 = arith.constant 4 : i32
    %72 = vector.broadcast %c4_i32_43 : i32 to vector<47x191xi32>
    %73 = arith.muli %14, %72 : vector<47x191xi32>
    %c3_i32 = arith.constant 3 : i32
    %74 = vector.broadcast %c3_i32 : i32 to vector<47x191xi32>
    %75 = arith.addi %73, %74 : vector<47x191xi32>
    %76 = arith.cmpi eq, %15, %75 : vector<47x191xi32>
    %cst_44 = arith.constant 1.000000e+00 : f32
    %cst_45 = arith.constant 0.000000e+00 : f32
    %77 = vector.broadcast %cst_44 : f32 to vector<47x191xf32>
    %78 = vector.broadcast %cst_45 : f32 to vector<47x191xf32>
    %79 = arith.select %76, %77, %78 : vector<47x191xi1>, vector<47x191xf32>
    %cst_46 = arith.constant dense<0.000000e+00> : vector<47x128xf32>
    %80 = tpu.matmul %79, %13, %cst_46 {dimension_numbers = #tpu.dot_dimension_numbers<[1], [0], [0], [1], [0, 0, 1, 1], [], []>} : vector<47x191xf32>, vector<191x128xf32>, vector<47x128xf32> -> vector<47x128xf32>
    %c3 = arith.constant 3 : index
    %c0_47 = arith.constant 0 : index
    %c0_48 = arith.constant 0 : index
    %81 = vector.load %arg4[%c3, %c0_47, %c0_48] : memref<8x128x128xf32, #tpu.memory_space<vmem>>, vector<1x128x128xf32>
    %82 = vector.shape_cast %81 : vector<1x128x128xf32> to vector<128x128xf32>
    %83 = vector.extract_strided_slice %80 {offsets = [0, 0], sizes = [46, 128], strides = [1, 1]} : vector<47x128xf32> to vector<46x128xf32>
    %cst_49 = arith.constant dense<0.000000e+00> : vector<46x128xf32>
    %84 = tpu.matmul %83, %82, %cst_49 {dimension_numbers = #tpu.dot_dimension_numbers<[1], [0], [0], [1], [0, 0, 1, 1], [], []>} : vector<46x128xf32>, vector<128x128xf32>, vector<46x128xf32> -> vector<46x128xf32>
    %85 = arith.addf %71, %84 : vector<46x128xf32>
    %c7 = arith.constant 7 : index
    %c0_50 = arith.constant 0 : index
    %c0_51 = arith.constant 0 : index
    %86 = vector.load %arg4[%c7, %c0_50, %c0_51] : memref<8x128x128xf32, #tpu.memory_space<vmem>>, vector<1x128x128xf32>
    %87 = vector.shape_cast %86 : vector<1x128x128xf32> to vector<128x128xf32>
    %88 = vector.extract_strided_slice %80 {offsets = [1, 0], sizes = [46, 128], strides = [1, 1]} : vector<47x128xf32> to vector<46x128xf32>
    %cst_52 = arith.constant dense<0.000000e+00> : vector<46x128xf32>
    %89 = tpu.matmul %88, %87, %cst_52 {dimension_numbers = #tpu.dot_dimension_numbers<[1], [0], [0], [1], [0, 0, 1, 1], [], []>} : vector<46x128xf32>, vector<128x128xf32>, vector<46x128xf32> -> vector<46x128xf32>
    %90 = arith.addf %85, %89 : vector<46x128xf32>
    %c0_53 = arith.constant 0 : index
    %c0_54 = arith.constant 0 : index
    %91 = vector.load %arg5[%c0_53, %c0_54] : memref<1x128xf32, #tpu.memory_space<vmem>>, vector<1x128xf32>
    %92 = vector.broadcast %91 : vector<1x128xf32> to vector<46x128xf32>
    %93 = arith.addf %90, %92 : vector<46x128xf32>
    %cst_55 = arith.constant 0.000000e+00 : f32
    %94 = vector.broadcast %cst_55 : f32 to vector<46x128xf32>
    %95 = arith.maximumf %93, %94 : vector<46x128xf32>
    %96 = tpu.iota {dimensions = array<i32: 0>} : vector<23x46xi32>
    %97 = tpu.iota {dimensions = array<i32: 1>} : vector<23x46xi32>
    %c2_i32_56 = arith.constant 2 : i32
    %98 = vector.broadcast %c2_i32_56 : i32 to vector<23x46xi32>
    %99 = arith.muli %96, %98 : vector<23x46xi32>
    %c0_i32_57 = arith.constant 0 : i32
    %100 = vector.broadcast %c0_i32_57 : i32 to vector<23x46xi32>
    %101 = arith.addi %99, %100 : vector<23x46xi32>
    %102 = arith.cmpi eq, %97, %101 : vector<23x46xi32>
    %cst_58 = arith.constant 1.000000e+00 : f32
    %cst_59 = arith.constant 0.000000e+00 : f32
    %103 = vector.broadcast %cst_58 : f32 to vector<23x46xf32>
    %104 = vector.broadcast %cst_59 : f32 to vector<23x46xf32>
    %105 = arith.select %102, %103, %104 : vector<23x46xi1>, vector<23x46xf32>
    %cst_60 = arith.constant dense<0.000000e+00> : vector<23x128xf32>
    %106 = tpu.matmul %105, %95, %cst_60 {dimension_numbers = #tpu.dot_dimension_numbers<[1], [0], [0], [1], [0, 0, 1, 1], [], []>} : vector<23x46xf32>, vector<46x128xf32>, vector<23x128xf32> -> vector<23x128xf32>
    %c0_61 = arith.constant 0 : index
    %c0_62 = arith.constant 0 : index
    %c0_63 = arith.constant 0 : index
    %107 = vector.load %arg6[%c0_61, %c0_62, %c0_63] : memref<4x128x128xf32, #tpu.memory_space<vmem>>, vector<1x128x128xf32>
    %108 = vector.shape_cast %107 : vector<1x128x128xf32> to vector<128x128xf32>
    %109 = vector.extract_strided_slice %106 {offsets = [0, 0], sizes = [22, 128], strides = [1, 1]} : vector<23x128xf32> to vector<22x128xf32>
    %cst_64 = arith.constant dense<0.000000e+00> : vector<22x128xf32>
    %110 = tpu.matmul %109, %108, %cst_64 {dimension_numbers = #tpu.dot_dimension_numbers<[1], [0], [0], [1], [0, 0, 1, 1], [], []>} : vector<22x128xf32>, vector<128x128xf32>, vector<22x128xf32> -> vector<22x128xf32>
    %c2_65 = arith.constant 2 : index
    %c0_66 = arith.constant 0 : index
    %c0_67 = arith.constant 0 : index
    %111 = vector.load %arg6[%c2_65, %c0_66, %c0_67] : memref<4x128x128xf32, #tpu.memory_space<vmem>>, vector<1x128x128xf32>
    %112 = vector.shape_cast %111 : vector<1x128x128xf32> to vector<128x128xf32>
    %113 = vector.extract_strided_slice %106 {offsets = [1, 0], sizes = [22, 128], strides = [1, 1]} : vector<23x128xf32> to vector<22x128xf32>
    %cst_68 = arith.constant dense<0.000000e+00> : vector<22x128xf32>
    %114 = tpu.matmul %113, %112, %cst_68 {dimension_numbers = #tpu.dot_dimension_numbers<[1], [0], [0], [1], [0, 0, 1, 1], [], []>} : vector<22x128xf32>, vector<128x128xf32>, vector<22x128xf32> -> vector<22x128xf32>
    %115 = arith.addf %110, %114 : vector<22x128xf32>
    %c2_i32_69 = arith.constant 2 : i32
    %116 = vector.broadcast %c2_i32_69 : i32 to vector<23x46xi32>
    %117 = arith.muli %96, %116 : vector<23x46xi32>
    %c1_i32_70 = arith.constant 1 : i32
    %118 = vector.broadcast %c1_i32_70 : i32 to vector<23x46xi32>
    %119 = arith.addi %117, %118 : vector<23x46xi32>
    %120 = arith.cmpi eq, %97, %119 : vector<23x46xi32>
    %cst_71 = arith.constant 1.000000e+00 : f32
    %cst_72 = arith.constant 0.000000e+00 : f32
    %121 = vector.broadcast %cst_71 : f32 to vector<23x46xf32>
    %122 = vector.broadcast %cst_72 : f32 to vector<23x46xf32>
    %123 = arith.select %120, %121, %122 : vector<23x46xi1>, vector<23x46xf32>
    %cst_73 = arith.constant dense<0.000000e+00> : vector<23x128xf32>
    %124 = tpu.matmul %123, %95, %cst_73 {dimension_numbers = #tpu.dot_dimension_numbers<[1], [0], [0], [1], [0, 0, 1, 1], [], []>} : vector<23x46xf32>, vector<46x128xf32>, vector<23x128xf32> -> vector<23x128xf32>
    %c1_74 = arith.constant 1 : index
    %c0_75 = arith.constant 0 : index
    %c0_76 = arith.constant 0 : index
    %125 = vector.load %arg6[%c1_74, %c0_75, %c0_76] : memref<4x128x128xf32, #tpu.memory_space<vmem>>, vector<1x128x128xf32>
    %126 = vector.shape_cast %125 : vector<1x128x128xf32> to vector<128x128xf32>
    %127 = vector.extract_strided_slice %124 {offsets = [0, 0], sizes = [22, 128], strides = [1, 1]} : vector<23x128xf32> to vector<22x128xf32>
    %cst_77 = arith.constant dense<0.000000e+00> : vector<22x128xf32>
    %128 = tpu.matmul %127, %126, %cst_77 {dimension_numbers = #tpu.dot_dimension_numbers<[1], [0], [0], [1], [0, 0, 1, 1], [], []>} : vector<22x128xf32>, vector<128x128xf32>, vector<22x128xf32> -> vector<22x128xf32>
    %129 = arith.addf %115, %128 : vector<22x128xf32>
    %c3_78 = arith.constant 3 : index
    %c0_79 = arith.constant 0 : index
    %c0_80 = arith.constant 0 : index
    %130 = vector.load %arg6[%c3_78, %c0_79, %c0_80] : memref<4x128x128xf32, #tpu.memory_space<vmem>>, vector<1x128x128xf32>
    %131 = vector.shape_cast %130 : vector<1x128x128xf32> to vector<128x128xf32>
    %132 = vector.extract_strided_slice %124 {offsets = [1, 0], sizes = [22, 128], strides = [1, 1]} : vector<23x128xf32> to vector<22x128xf32>
    %cst_81 = arith.constant dense<0.000000e+00> : vector<22x128xf32>
    %133 = tpu.matmul %132, %131, %cst_81 {dimension_numbers = #tpu.dot_dimension_numbers<[1], [0], [0], [1], [0, 0, 1, 1], [], []>} : vector<22x128xf32>, vector<128x128xf32>, vector<22x128xf32> -> vector<22x128xf32>
    %134 = arith.addf %129, %133 : vector<22x128xf32>
    %c0_82 = arith.constant 0 : index
    %c0_83 = arith.constant 0 : index
    %135 = vector.load %arg7[%c0_82, %c0_83] : memref<1x128xf32, #tpu.memory_space<vmem>>, vector<1x128xf32>
    %136 = vector.broadcast %135 : vector<1x128xf32> to vector<22x128xf32>
    %137 = arith.addf %134, %136 : vector<22x128xf32>
    %cst_84 = arith.constant 0.000000e+00 : f32
    %138 = vector.broadcast %cst_84 : f32 to vector<22x128xf32>
    %139 = arith.maximumf %137, %138 : vector<22x128xf32>
    %140 = tpu.iota {dimensions = array<i32: 0>} : vector<11x22xi32>
    %141 = tpu.iota {dimensions = array<i32: 1>} : vector<11x22xi32>
    %c2_i32_85 = arith.constant 2 : i32
    %142 = vector.broadcast %c2_i32_85 : i32 to vector<11x22xi32>
    %143 = arith.muli %140, %142 : vector<11x22xi32>
    %c0_i32_86 = arith.constant 0 : i32
    %144 = vector.broadcast %c0_i32_86 : i32 to vector<11x22xi32>
    %145 = arith.addi %143, %144 : vector<11x22xi32>
    %146 = arith.cmpi eq, %141, %145 : vector<11x22xi32>
    %cst_87 = arith.constant 1.000000e+00 : f32
    %cst_88 = arith.constant 0.000000e+00 : f32
    %147 = vector.broadcast %cst_87 : f32 to vector<11x22xf32>
    %148 = vector.broadcast %cst_88 : f32 to vector<11x22xf32>
    %149 = arith.select %146, %147, %148 : vector<11x22xi1>, vector<11x22xf32>
    %cst_89 = arith.constant dense<0.000000e+00> : vector<11x128xf32>
    %150 = tpu.matmul %149, %139, %cst_89 {dimension_numbers = #tpu.dot_dimension_numbers<[1], [0], [0], [1], [0, 0, 1, 1], [], []>} : vector<11x22xf32>, vector<22x128xf32>, vector<11x128xf32> -> vector<11x128xf32>
    %c0_90 = arith.constant 0 : index
    %c0_91 = arith.constant 0 : index
    %c0_92 = arith.constant 0 : index
    %151 = vector.load %arg8[%c0_90, %c0_91, %c0_92] : memref<4x128x128xf32, #tpu.memory_space<vmem>>, vector<1x128x128xf32>
    %152 = vector.shape_cast %151 : vector<1x128x128xf32> to vector<128x128xf32>
    %153 = vector.extract_strided_slice %150 {offsets = [0, 0], sizes = [10, 128], strides = [1, 1]} : vector<11x128xf32> to vector<10x128xf32>
    %cst_93 = arith.constant dense<0.000000e+00> : vector<10x128xf32>
    %154 = tpu.matmul %153, %152, %cst_93 {dimension_numbers = #tpu.dot_dimension_numbers<[1], [0], [0], [1], [0, 0, 1, 1], [], []>} : vector<10x128xf32>, vector<128x128xf32>, vector<10x128xf32> -> vector<10x128xf32>
    %c2_94 = arith.constant 2 : index
    %c0_95 = arith.constant 0 : index
    %c0_96 = arith.constant 0 : index
    %155 = vector.load %arg8[%c2_94, %c0_95, %c0_96] : memref<4x128x128xf32, #tpu.memory_space<vmem>>, vector<1x128x128xf32>
    %156 = vector.shape_cast %155 : vector<1x128x128xf32> to vector<128x128xf32>
    %157 = vector.extract_strided_slice %150 {offsets = [1, 0], sizes = [10, 128], strides = [1, 1]} : vector<11x128xf32> to vector<10x128xf32>
    %cst_97 = arith.constant dense<0.000000e+00> : vector<10x128xf32>
    %158 = tpu.matmul %157, %156, %cst_97 {dimension_numbers = #tpu.dot_dimension_numbers<[1], [0], [0], [1], [0, 0, 1, 1], [], []>} : vector<10x128xf32>, vector<128x128xf32>, vector<10x128xf32> -> vector<10x128xf32>
    %159 = arith.addf %154, %158 : vector<10x128xf32>
    %c2_i32_98 = arith.constant 2 : i32
    %160 = vector.broadcast %c2_i32_98 : i32 to vector<11x22xi32>
    %161 = arith.muli %140, %160 : vector<11x22xi32>
    %c1_i32_99 = arith.constant 1 : i32
    %162 = vector.broadcast %c1_i32_99 : i32 to vector<11x22xi32>
    %163 = arith.addi %161, %162 : vector<11x22xi32>
    %164 = arith.cmpi eq, %141, %163 : vector<11x22xi32>
    %cst_100 = arith.constant 1.000000e+00 : f32
    %cst_101 = arith.constant 0.000000e+00 : f32
    %165 = vector.broadcast %cst_100 : f32 to vector<11x22xf32>
    %166 = vector.broadcast %cst_101 : f32 to vector<11x22xf32>
    %167 = arith.select %164, %165, %166 : vector<11x22xi1>, vector<11x22xf32>
    %cst_102 = arith.constant dense<0.000000e+00> : vector<11x128xf32>
    %168 = tpu.matmul %167, %139, %cst_102 {dimension_numbers = #tpu.dot_dimension_numbers<[1], [0], [0], [1], [0, 0, 1, 1], [], []>} : vector<11x22xf32>, vector<22x128xf32>, vector<11x128xf32> -> vector<11x128xf32>
    %c1_103 = arith.constant 1 : index
    %c0_104 = arith.constant 0 : index
    %c0_105 = arith.constant 0 : index
    %169 = vector.load %arg8[%c1_103, %c0_104, %c0_105] : memref<4x128x128xf32, #tpu.memory_space<vmem>>, vector<1x128x128xf32>
    %170 = vector.shape_cast %169 : vector<1x128x128xf32> to vector<128x128xf32>
    %171 = vector.extract_strided_slice %168 {offsets = [0, 0], sizes = [10, 128], strides = [1, 1]} : vector<11x128xf32> to vector<10x128xf32>
    %cst_106 = arith.constant dense<0.000000e+00> : vector<10x128xf32>
    %172 = tpu.matmul %171, %170, %cst_106 {dimension_numbers = #tpu.dot_dimension_numbers<[1], [0], [0], [1], [0, 0, 1, 1], [], []>} : vector<10x128xf32>, vector<128x128xf32>, vector<10x128xf32> -> vector<10x128xf32>
    %173 = arith.addf %159, %172 : vector<10x128xf32>
    %c3_107 = arith.constant 3 : index
    %c0_108 = arith.constant 0 : index
    %c0_109 = arith.constant 0 : index
    %174 = vector.load %arg8[%c3_107, %c0_108, %c0_109] : memref<4x128x128xf32, #tpu.memory_space<vmem>>, vector<1x128x128xf32>
    %175 = vector.shape_cast %174 : vector<1x128x128xf32> to vector<128x128xf32>
    %176 = vector.extract_strided_slice %168 {offsets = [1, 0], sizes = [10, 128], strides = [1, 1]} : vector<11x128xf32> to vector<10x128xf32>
    %cst_110 = arith.constant dense<0.000000e+00> : vector<10x128xf32>
    %177 = tpu.matmul %176, %175, %cst_110 {dimension_numbers = #tpu.dot_dimension_numbers<[1], [0], [0], [1], [0, 0, 1, 1], [], []>} : vector<10x128xf32>, vector<128x128xf32>, vector<10x128xf32> -> vector<10x128xf32>
    %178 = arith.addf %173, %177 : vector<10x128xf32>
    %c0_111 = arith.constant 0 : index
    %c0_112 = arith.constant 0 : index
    %179 = vector.load %arg9[%c0_111, %c0_112] : memref<1x128xf32, #tpu.memory_space<vmem>>, vector<1x128xf32>
    %180 = vector.broadcast %179 : vector<1x128xf32> to vector<10x128xf32>
    %181 = arith.addf %178, %180 : vector<10x128xf32>
    %cst_113 = arith.constant 0.000000e+00 : f32
    %182 = vector.broadcast %cst_113 : f32 to vector<10x128xf32>
    %183 = arith.maximumf %181, %182 : vector<10x128xf32>
    %184 = tpu.iota {dimensions = array<i32: 0>} : vector<5x10xi32>
    %185 = tpu.iota {dimensions = array<i32: 1>} : vector<5x10xi32>
    %c2_i32_114 = arith.constant 2 : i32
    %186 = vector.broadcast %c2_i32_114 : i32 to vector<5x10xi32>
    %187 = arith.muli %184, %186 : vector<5x10xi32>
    %c0_i32_115 = arith.constant 0 : i32
    %188 = vector.broadcast %c0_i32_115 : i32 to vector<5x10xi32>
    %189 = arith.addi %187, %188 : vector<5x10xi32>
    %190 = arith.cmpi eq, %185, %189 : vector<5x10xi32>
    %cst_116 = arith.constant 1.000000e+00 : f32
    %cst_117 = arith.constant 0.000000e+00 : f32
    %191 = vector.broadcast %cst_116 : f32 to vector<5x10xf32>
    %192 = vector.broadcast %cst_117 : f32 to vector<5x10xf32>
    %193 = arith.select %190, %191, %192 : vector<5x10xi1>, vector<5x10xf32>
    %cst_118 = arith.constant dense<0.000000e+00> : vector<5x128xf32>
    %194 = tpu.matmul %193, %183, %cst_118 {dimension_numbers = #tpu.dot_dimension_numbers<[1], [0], [0], [1], [0, 0, 1, 1], [], []>} : vector<5x10xf32>, vector<10x128xf32>, vector<5x128xf32> -> vector<5x128xf32>
    %c0_119 = arith.constant 0 : index
    %c0_120 = arith.constant 0 : index
    %c0_121 = arith.constant 0 : index
    %195 = vector.load %arg10[%c0_119, %c0_120, %c0_121] : memref<4x128x128xf32, #tpu.memory_space<vmem>>, vector<1x128x128xf32>
    %196 = vector.shape_cast %195 : vector<1x128x128xf32> to vector<128x128xf32>
    %197 = vector.extract_strided_slice %194 {offsets = [0, 0], sizes = [4, 128], strides = [1, 1]} : vector<5x128xf32> to vector<4x128xf32>
    %cst_122 = arith.constant dense<0.000000e+00> : vector<4x128xf32>
    %198 = tpu.matmul %197, %196, %cst_122 {dimension_numbers = #tpu.dot_dimension_numbers<[1], [0], [0], [1], [0, 0, 1, 1], [], []>} : vector<4x128xf32>, vector<128x128xf32>, vector<4x128xf32> -> vector<4x128xf32>
    %c2_123 = arith.constant 2 : index
    %c0_124 = arith.constant 0 : index
    %c0_125 = arith.constant 0 : index
    %199 = vector.load %arg10[%c2_123, %c0_124, %c0_125] : memref<4x128x128xf32, #tpu.memory_space<vmem>>, vector<1x128x128xf32>
    %200 = vector.shape_cast %199 : vector<1x128x128xf32> to vector<128x128xf32>
    %201 = vector.extract_strided_slice %194 {offsets = [1, 0], sizes = [4, 128], strides = [1, 1]} : vector<5x128xf32> to vector<4x128xf32>
    %cst_126 = arith.constant dense<0.000000e+00> : vector<4x128xf32>
    %202 = tpu.matmul %201, %200, %cst_126 {dimension_numbers = #tpu.dot_dimension_numbers<[1], [0], [0], [1], [0, 0, 1, 1], [], []>} : vector<4x128xf32>, vector<128x128xf32>, vector<4x128xf32> -> vector<4x128xf32>
    %203 = arith.addf %198, %202 : vector<4x128xf32>
    %c2_i32_127 = arith.constant 2 : i32
    %204 = vector.broadcast %c2_i32_127 : i32 to vector<5x10xi32>
    %205 = arith.muli %184, %204 : vector<5x10xi32>
    %c1_i32_128 = arith.constant 1 : i32
    %206 = vector.broadcast %c1_i32_128 : i32 to vector<5x10xi32>
    %207 = arith.addi %205, %206 : vector<5x10xi32>
    %208 = arith.cmpi eq, %185, %207 : vector<5x10xi32>
    %cst_129 = arith.constant 1.000000e+00 : f32
    %cst_130 = arith.constant 0.000000e+00 : f32
    %209 = vector.broadcast %cst_129 : f32 to vector<5x10xf32>
    %210 = vector.broadcast %cst_130 : f32 to vector<5x10xf32>
    %211 = arith.select %208, %209, %210 : vector<5x10xi1>, vector<5x10xf32>
    %cst_131 = arith.constant dense<0.000000e+00> : vector<5x128xf32>
    %212 = tpu.matmul %211, %183, %cst_131 {dimension_numbers = #tpu.dot_dimension_numbers<[1], [0], [0], [1], [0, 0, 1, 1], [], []>} : vector<5x10xf32>, vector<10x128xf32>, vector<5x128xf32> -> vector<5x128xf32>
    %c1_132 = arith.constant 1 : index
    %c0_133 = arith.constant 0 : index
    %c0_134 = arith.constant 0 : index
    %213 = vector.load %arg10[%c1_132, %c0_133, %c0_134] : memref<4x128x128xf32, #tpu.memory_space<vmem>>, vector<1x128x128xf32>
    %214 = vector.shape_cast %213 : vector<1x128x128xf32> to vector<128x128xf32>
    %215 = vector.extract_strided_slice %212 {offsets = [0, 0], sizes = [4, 128], strides = [1, 1]} : vector<5x128xf32> to vector<4x128xf32>
    %cst_135 = arith.constant dense<0.000000e+00> : vector<4x128xf32>
    %216 = tpu.matmul %215, %214, %cst_135 {dimension_numbers = #tpu.dot_dimension_numbers<[1], [0], [0], [1], [0, 0, 1, 1], [], []>} : vector<4x128xf32>, vector<128x128xf32>, vector<4x128xf32> -> vector<4x128xf32>
    %217 = arith.addf %203, %216 : vector<4x128xf32>
    %c3_136 = arith.constant 3 : index
    %c0_137 = arith.constant 0 : index
    %c0_138 = arith.constant 0 : index
    %218 = vector.load %arg10[%c3_136, %c0_137, %c0_138] : memref<4x128x128xf32, #tpu.memory_space<vmem>>, vector<1x128x128xf32>
    %219 = vector.shape_cast %218 : vector<1x128x128xf32> to vector<128x128xf32>
    %220 = vector.extract_strided_slice %212 {offsets = [1, 0], sizes = [4, 128], strides = [1, 1]} : vector<5x128xf32> to vector<4x128xf32>
    %cst_139 = arith.constant dense<0.000000e+00> : vector<4x128xf32>
    %221 = tpu.matmul %220, %219, %cst_139 {dimension_numbers = #tpu.dot_dimension_numbers<[1], [0], [0], [1], [0, 0, 1, 1], [], []>} : vector<4x128xf32>, vector<128x128xf32>, vector<4x128xf32> -> vector<4x128xf32>
    %222 = arith.addf %217, %221 : vector<4x128xf32>
    %c0_140 = arith.constant 0 : index
    %c0_141 = arith.constant 0 : index
    %223 = vector.load %arg11[%c0_140, %c0_141] : memref<1x128xf32, #tpu.memory_space<vmem>>, vector<1x128xf32>
    %224 = vector.broadcast %223 : vector<1x128xf32> to vector<4x128xf32>
    %225 = arith.addf %222, %224 : vector<4x128xf32>
    %c0_142 = arith.constant 0 : index
    %c0_143 = arith.constant 0 : index
    %c0_144 = arith.constant 0 : index
    %226 = vector.load %arg12[%c0_142, %c0_143, %c0_144] : memref<1x4x128xf32, #tpu.memory_space<vmem>>, vector<1x4x128xf32>
    %227 = vector.shape_cast %226 : vector<1x4x128xf32> to vector<4x128xf32>
    %228 = vector.shape_cast %225 : vector<4x128xf32> to vector<1x4x128xf32>
    tpu.vector_store %arg12[%c0_142, %c0_143, %c0_144], %228 {strides = array<i32>} : memref<1x4x128xf32, #tpu.memory_space<vmem>>, vector<1x4x128xf32>,
    return
  }
  func.func @transform_0(%arg0: i32) -> (i32, i32, i32) {
    %c0_i32 = arith.constant 0 : i32
    %c0_i32_0 = arith.constant 0 : i32
    %c0_i32_1 = arith.constant 0 : i32
    return %arg0, %c0_i32, %c0_i32_0 : i32, i32, i32
  }
  func.func @transform_1(%arg0: i32) -> (i32, i32) {
    %c0_i32 = arith.constant 0 : i32
    %c0_i32_0 = arith.constant 0 : i32
    %c0_i32_1 = arith.constant 0 : i32
    return %c0_i32, %c0_i32_0 : i32, i32
  }
  func.func @transform_2(%arg0: i32) -> (i32, i32) {
    %c0_i32 = arith.constant 0 : i32
    %c0_i32_0 = arith.constant 0 : i32
    %c0_i32_1 = arith.constant 0 : i32
    return %c0_i32, %c0_i32_0 : i32, i32
  }
  func.func @transform_3(%arg0: i32) -> (i32, i32, i32) {
    %c0_i32 = arith.constant 0 : i32
    %c0_i32_0 = arith.constant 0 : i32
    %c0_i32_1 = arith.constant 0 : i32
    %c0_i32_2 = arith.constant 0 : i32
    return %c0_i32, %c0_i32_0, %c0_i32_1 : i32, i32, i32
  }
  func.func @transform_4(%arg0: i32) -> (i32, i32) {
    %c0_i32 = arith.constant 0 : i32
    %c0_i32_0 = arith.constant 0 : i32
    %c0_i32_1 = arith.constant 0 : i32
    return %c0_i32, %c0_i32_0 : i32, i32
  }
  func.func @transform_5(%arg0: i32) -> (i32, i32, i32) {
    %c0_i32 = arith.constant 0 : i32
    %c0_i32_0 = arith.constant 0 : i32
    %c0_i32_1 = arith.constant 0 : i32
    %c0_i32_2 = arith.constant 0 : i32
    return %c0_i32, %c0_i32_0, %c0_i32_1 : i32, i32, i32
  }
  func.func @transform_6(%arg0: i32) -> (i32, i32) {
    %c0_i32 = arith.constant 0 : i32
    %c0_i32_0 = arith.constant 0 : i32
    %c0_i32_1 = arith.constant 0 : i32
    return %c0_i32, %c0_i32_0 : i32, i32
  }
  func.func @transform_7(%arg0: i32) -> (i32, i32, i32) {
    %c0_i32 = arith.constant 0 : i32
    %c0_i32_0 = arith.constant 0 : i32
    %c0_i32_1 = arith.constant 0 : i32
    %c0_i32_2 = arith.constant 0 : i32
    return %c0_i32, %c0_i32_0, %c0_i32_1 : i32, i32, i32
  }
  func.func @transform_8(%arg0: i32) -> (i32, i32) {
    %c0_i32 = arith.constant 0 : i32
    %c0_i32_0 = arith.constant 0 : i32
    %c0_i32_1 = arith.constant 0 : i32
    return %c0_i32, %c0_i32_0 : i32, i32
  }
  func.func @transform_9(%arg0: i32) -> (i32, i32, i32) {
    %c0_i32 = arith.constant 0 : i32
    %c0_i32_0 = arith.constant 0 : i32
    %c0_i32_1 = arith.constant 0 : i32
    %c0_i32_2 = arith.constant 0 : i32
    return %c0_i32, %c0_i32_0, %c0_i32_1 : i32, i32, i32
  }
  func.func @transform_10(%arg0: i32) -> (i32, i32) {
    %c0_i32 = arith.constant 0 : i32
    %c0_i32_0 = arith.constant 0 : i32
    %c0_i32_1 = arith.constant 0 : i32
    return %c0_i32, %c0_i32_0 : i32, i32
  }
  func.func @transform_11(%arg0: i32) -> (i32, i32, i32) {
    %c0_i32 = arith.constant 0 : i32
    %c0_i32_0 = arith.constant 0 : i32
    %c0_i32_1 = arith.constant 0 : i32
    return %arg0, %c0_i32, %c0_i32_0 : i32, i32, i32
  }
}

</mosaic_0001>

<bundles_post_ra>
// kernel: tpu_custom_call.1
= control target key start
LH: loop header
LB: loop body
LE: loop exit
PB: predicated region body
PF: predicated region fallthrough
CT: control target
= control target key end

     0   :  { %s4102_s0 = inlined_call_operand.vmem [shape: f32[2,192,5], index: 0, kind: input, shape index: {}]   ;;  %s4103_s1 = inlined_call_operand.vmem [shape: f32[10,128], index: 1, kind: input, shape index: {}]   ;;  %s4104_s2 = inlined_call_operand.vmem [shape: f32[1,128], index: 2, kind: input, shape index: {}]   ;;  %s4105_s3 = inlined_call_operand.hbm [shape: f32[8,128,128], index: 3, kind: input, shape index: {}]   ;;  %s4106_s4 = inlined_call_operand.vmem [shape: f32[1,128], index: 4, kind: input, shape index: {}]   ;;  %s4107_s5 = inlined_call_operand.hbm [shape: f32[4,128,128], index: 5, kind: input, shape index: {}]   ;;  %s4108_s6 = inlined_call_operand.vmem [shape: f32[1,128], index: 6, kind: input, shape index: {}]   ;;  %s4109_s7 = inlined_call_operand.hbm [shape: f32[4,128,128], index: 7, kind: input, shape index: {}]   ;;  %s4110_s8 = inlined_call_operand.vmem [shape: f32[1,128], index: 8, kind: input, shape index: {}]   ;;  %s4111_s9 = inlined_call_operand.hbm [shape: f32[4,128,128], index: 9, kind: input, shape index: {}]   ;;  %s4112_s10 = inlined_call_operand.vmem [shape: f32[1,128], index: 10, kind: input, shape index: {}]   ;;  %s4113_s11 = inlined_call_operand.hbm [shape: f32[2,4,128], index: 11, kind: output, shape index: {}]  }
   0x1   :  { %4119 = sst [smem:[#allocation20_spill]] %s4105_s3 }
   0x2   :  { %4120 = sst [smem:[#allocation21_spill]] %s4107_s5 }
   0x3   :  { %16 = vsyncpa [#allocation3], 0 }
   0x4   :  { %17 = vsyncpa [#allocation6], 0 }
   0x5   :  { %18 = vsyncpa [#allocation9], 0 }
   0x6   :  { %19 = vsyncpa [#allocation4], 0 }
   0x7   :  { %21 = vsyncpa [#allocation4 + $0x1], 0  ;;  %s3309_s17 = smov 0   ;;  %s3311_s18 = smov 0  }
   0x8   :  { %s3313_s19 = smov 0   ;;  %s3315_s20 = smov 0  }
   0x9 LB: > { %4121 = sst [smem:[#allocation15_spill]] %s3227_s17  ;;  %s3330_s21 = sadd.s32 4294967295, %s3239_s20   ;;  %s3239_s20 = sphi %s3315_s20, %s4134_s20   ;;  %s3235_s19 = sphi %s3313_s19, %s4136_s19   ;;  %s3231_s18 = sphi %s3311_s18, %s4138_s18   ;;  %s3227_s17 = sphi %s3309_s17, %s4137_s17  }
   0xa   : > { %4122 = sst [smem:[#allocation16_spill]] %s3235_s19  ;;  %s2801_s22 = sadd.s32 4294967294, %s3239_s20  }
   0xb   : > { %s3334_s23 = sadd.s32 1, %s3239_s20   ;;  %s270_s24 = sadd.s32 1, %s3235_s19 }
   0xc   : > { %4123 = sst [smem:[#allocation17_spill]] %s3334_s23  ;;  %s267_s25 = ssub.s32 %s3239_s20, %s3334_s23 }
   0xd   : > { %p280_p0 = scmp.ne.s32.totalorder %s3235_s19, %s3231_s18  ;;  %p268_p1 = scmp.eq.s32.totalorder %s267_s25, 0 }
   0xe   : > { %p281_p2 = scmp.eq.s32.totalorder %s3330_s21, 1  ;;  %p286_p3 = scmp.ne.s32.totalorder %s3231_s18, %s3227_s17 }
   0xf   : > { %p287_p4 = scmp.eq.s32.totalorder %s2801_s22, 1  ;;  %p2802_p7 = scmp.ge.s32.totalorder %s3239_s20, 1 }
  0x10   : > { %s3345_s26 = scalar_select %p268_p1, %s3235_s19, %s270_s24  }
  0x11   : > { %p3347_p5 = por %p281_p2, %p280_p0  ;;  %p3351_p6 = por %p287_p4, %p286_p3 }
  0x12   : > { %4124 = sst [smem:[#allocation18_spill]] %s3345_s26  ;;  %p294_p8 = scmp.lt.s32.totalorder %s3239_s20, 3 }
  0x13   : > { %s4126_s28 = scalar_select %p3351_p6, 1, 0 }
  0x14   : > { %p2991_p9 = scmp.eq.s32.totalorder %s3330_s21, 0  ;;  %p3358_p10 = pnand %p2802_p7, %p294_p8 }
  0x15   : > { %4127 = sst [smem:[#allocation19_spill]] %s4126_s28  ;;  %s3241_s24 = smov [#allocation5]  }
  0x16   : > { %s4129_s5 = sld [smem:[#allocation21_spill]]  ;;  %p2974_p11 = pneg %p3358_p10 }
  0x17   : > { %s4130_s3 = sld [smem:[#allocation20_spill]]  ;;  %s330_s25 = sshll.u32 %s3241_s24, 4  ;;  %s331_s25 = int_to_ptr.vmem [resolvable:$true] %s330_s25 }
  0x18   : > { %p3372_p12 = pnand %p2991_p9, %p2974_p11  ;;  %s3242_s30 = smov 128  }
  0x19   : > { %s3243_s12 = smov 8   ;;  %s345_s26 = sshll.u32 %s4109_s7, 4  ;;  %s346_s26 = int_to_ptr.hbm [resolvable:$true] %s345_s26 }
  0x1a   : > { %s362_s23 = sshll.u32 %s4111_s9, 4  ;;  %s3245_s28 = smov [#allocation7]   ;;  %s363_s23 = int_to_ptr.hbm [resolvable:$true] %s362_s23 }
  0x1b   : > { %s347_s17 = sshll.u32 %s3245_s28, 4  ;;  %s348_s17 = int_to_ptr.vmem [resolvable:$true] %s347_s17 }
  0x1c   : > { %s328_s13 = sshll.u32 %s4129_s5, 4  ;;  %s3244_s5 = smov [#allocation2]   ;;  %s329_s13 = int_to_ptr.hbm [resolvable:$true] %s328_s13 }
  0x1d   : > { %s311_s16 = sshll.u32 %s4130_s3, 4  ;;  %s313_s14 = sshll.u32 %s3244_s5, 4  ;;  %s312_s16 = int_to_ptr.hbm [resolvable:$true] %s311_s16  ;;  %s314_s14 = int_to_ptr.vmem [resolvable:$true] %s313_s14 }
  0x1e   : > { %2980 = dma.hbm_to_vmem [thread:$0]  (!%p3372_p12), %s329_s13, 8192, %s331_s25, [#allocation6], %s3242_s30, %s3242_s30, %s3243_s12  }
  0x1f   : > { %2977 = dma.hbm_to_vmem [thread:$0]  (!%p3372_p12), %s312_s16, 16384, %s314_s14, [#allocation3], %s3242_s30, %s3242_s30, %s3243_s12  }
  0x20   : > { %2983 = dma.hbm_to_vmem [thread:$0]  (!%p3372_p12), %s346_s26, 8192, %s348_s17, [#allocation6], %s3242_s30, %s3242_s30, %s3243_s12  }
  0x21   : > { %s3246_s13 = smov [#allocation8]   ;;  %391 = sbr.rel (%p3358_p10) target bundleno = 2034 (0x7f2), region = 64 }
  0x22   : > { %s364_s5 = sshll.u32 %s3246_s13, 4  ;;  %s365_s5 = int_to_ptr.vmem [resolvable:$true] %s364_s5 }
  0x23   : > { %2986 = dma.hbm_to_vmem [thread:$0]  (!%p3372_p12), %s363_s23, 8192, %s365_s5, [#allocation9], %s3242_s30, %s3242_s30, %s3243_s12  }
  0x26   : > { %3210 = dma.done.wait (%p2991_p9), [#allocation3], 16384  }
  0x27   : > { %3212 = vsyncadd (%p2991_p9), [#allocation3], 4294950912 }
  0x28   : > { %3214 = dma.done.wait (%p2991_p9), [#allocation6], 16384  }
  0x29   : > { %3216 = vsyncadd (%p2991_p9), [#allocation6], 4294950912 }
  0x2a   : > { %3218 = dma.done.wait (%p2991_p9), [#allocation9], 8192  }
  0x2b   : > { %3220 = vsyncadd (%p2991_p9), [#allocation9], 4294959104  ;;  %p447_p13 = scmp.lt.s32.totalorder %s3330_s21, 1  ;;  %vm575_vm0 = vcmask 1044480   ;;  %vm502_vm1 = vcmask 39936   ;;  %vm943_vm4 = vcmask 1046528  }
  0x2c   : > { %v501_v0 = vld [vmem:[%s4103_s1 + $0x5] sm:$0x1f]  ;;  %v476_v1 = vld [vmem:[%s4103_s1] sm:$0x1f]  ;;  %vm924_vm8 = vcmask 515072   ;;  %s2936_s19 = sshll.u32 %s3330_s21, 2 }
  0x2d   : > { %s448_s3 = scalar_select %p447_p13, %s3330_s21, 1  ;;  %2815 = vmatpush.msk.msra.mxu0 %vm575_vm0, %v501_v0  ;;  %2840 = vmatpush.msk.msra.mxu1 %vm575_vm0, %v476_v1 }
  0x2e   : > { %s2696_s28 = scalar_lea.hbm %s4113_s11, %s2936_s19  ;;  %s3185_s13 = scalar_lea.hbm %s4113_s11, 8 }
  0x2f   : > { %s2955_s17 = smul.u32 192, %s448_s3  ;;  %s444_s3 = sand.u32 1, %s3231_s18  }
  0x30   : > { %s2700_s30 = sshll.u32 %s2696_s28, 4  ;;  %s2686_s21 = scalar_lea.sflag [#allocation4], %s444_s3  ;;  %s2701_s30 = int_to_ptr.hbm [resolvable:$true] %s2700_s30 }
  0x31   : > { %s3409_s26 = scalar_lea.vmem %s4102_s0, %s2955_s17  ;;  %s2813_s17 = sshll.u32 %s444_s3, 2 }
  0x32   : > { %v477_v2 = vld [vmem:[%s3409_s26 + $0x1] sm:$0xff]  ;;  %v478_v4 = vld [vmem:[%s3409_s26 + $0x9] sm:$0xff]  ;;  %v479_v6 = vld [vmem:[%s3409_s26 + $0x11] sm:$0xff]  ;;  %s446_s22 = scalar_lea.vmem [#allocation10], %s2813_s17  ;;  %s3179_s12 = sshra.s32 %s2701_s30, 4  ;;  %s3180_s12 = int_to_ptr.hbm [resolvable:$true] %s3179_s12 }
  0x33   : > { %v452_v3 = vld [vmem:[%s3409_s26] sm:$0xff]  ;;  %2816 = vmatmul.msk.f32.vlgmr.msra.gmra.mxu0 %vm502_vm1, %v477_v2  ;;  %v453_v5 = vld [vmem:[%s3409_s26 + $0x8] sm:$0xff]  ;;  %v454_v7 = vld [vmem:[%s3409_s26 + $0x10] sm:$0xff]  ;;  %s2698_s25 = sshll.u32 %s446_s22, 4  ;;  %s3181_s14 = scalar_lea.hbm %s3180_s12, 4  ;;  %s2699_s25 = int_to_ptr.vmem [resolvable:$true] %s2698_s25 }
  0x34   : > { %2841 = vmatmul.msk.f32.vlgmr.msra.gmra.mxu1 %vm502_vm1, %v452_v3  ;;  %v480_v8 = vld [vmem:[%s3409_s26 + $0x19] sm:$0xff]  ;;  %v481_v10 = vld [vmem:[%s3409_s26 + $0x21] sm:$0xff]  ;;  %v482_v12 = vld [vmem:[%s3409_s26 + $0x29] sm:$0xff]  ;;  %p3182_p0 = scmp.ne.s32.totalorder %s3180_s12, %s3181_s14  ;;  %p3186_p3 = scmp.lt.s32.totalorder %s3180_s12, %s4113_s11 }
  0x35   : > { %v455_v9 = vld [vmem:[%s3409_s26 + $0x18] sm:$0xff]  ;;  %v456_v11 = vld [vmem:[%s3409_s26 + $0x20] sm:$0xff]  ;;  %v457_v13 = vld [vmem:[%s3409_s26 + $0x28] sm:$0xff]  ;;  %p3187_p4 = scmp.lt.s32.totalorder %s3185_s13, %s3181_s14 }
  0x36   : > { %v483_v14 = vld [vmem:[%s3409_s26 + $0x31] sm:$0xff]  ;;  %v484_v16 = vld [vmem:[%s3409_s26 + $0x39] sm:$0xff]  ;;  %v485_v18 = vld [vmem:[%s3409_s26 + $0x41] sm:$0xff]  ;;  %p3183_p1 = pnand %p3182_p0, %p3347_p5 }
  0x37   : > { %v458_v15 = vld [vmem:[%s3409_s26 + $0x30] sm:$0xff]  ;;  %v459_v17 = vld [vmem:[%s3409_s26 + $0x38] sm:$0xff]  ;;  %v460_v19 = vld [vmem:[%s3409_s26 + $0x40] sm:$0xff]  ;;  %p3188_p7 = por %p3187_p4, %p3186_p3 }
  0x38   : > { %v486_v20 = vld [vmem:[%s3409_s26 + $0x49] sm:$0xff]  ;;  %v487_v22 = vld [vmem:[%s3409_s26 + $0x51] sm:$0xff]  ;;  %v488_v24 = vld [vmem:[%s3409_s26 + $0x59] sm:$0xff]  ;;  %p3184_p2 = pneg %p3183_p1 }
  0x39   : > { %v461_v21 = vld [vmem:[%s3409_s26 + $0x48] sm:$0xff]  ;;  %v462_v23 = vld [vmem:[%s3409_s26 + $0x50] sm:$0xff]  ;;  %v463_v25 = vld [vmem:[%s3409_s26 + $0x58] sm:$0xff] }
  0x3a   : > { %v489_v26 = vld [vmem:[%s3409_s26 + $0x61] sm:$0xff]  ;;  %v490_v28 = vld [vmem:[%s3409_s26 + $0x69] sm:$0xff]  ;;  %v491_v30 = vld [vmem:[%s3409_s26 + $0x71] sm:$0xff]  ;;  %p3189_p8 = pnand %p3188_p7, %p3184_p2 }
  0x3b   : > { %2817 = vmatmul.msk.f32.gmra.mxu0 %vm502_vm1, %v478_v4  ;;  %v464_v27 = vld [vmem:[%s3409_s26 + $0x60] sm:$0xff]  ;;  %v465_v29 = vld [vmem:[%s3409_s26 + $0x68] sm:$0xff]  ;;  %v466_v31 = vld [vmem:[%s3409_s26 + $0x70] sm:$0xff] }
  0x3c   : > { %2842 = vmatmul.msk.f32.gmra.mxu1 %vm502_vm1, %v453_v5  ;;  %v492_v32 = vld [vmem:[%s3409_s26 + $0x79] sm:$0xff]  ;;  %v493_v36 = vld [vmem:[%s3409_s26 + $0x81] sm:$0xff]  ;;  %v494_v40 = vld [vmem:[%s3409_s26 + $0x89] sm:$0xff] }
  0x3d   : > { %v467_v33 = vld [vmem:[%s3409_s26 + $0x78] sm:$0xff]  ;;  %v468_v37 = vld [vmem:[%s3409_s26 + $0x80] sm:$0xff]  ;;  %v469_v41 = vld [vmem:[%s3409_s26 + $0x88] sm:$0xff] }
  0x3e   : > { %v495_v44 = vld [vmem:[%s3409_s26 + $0x91] sm:$0xff]  ;;  %v496_v48 = vld [vmem:[%s3409_s26 + $0x99] sm:$0xff]  ;;  %v497_v52 = vld [vmem:[%s3409_s26 + $0xa1] sm:$0xff] }
  0x3f   : > { %v470_v45 = vld [vmem:[%s3409_s26 + $0x90] sm:$0xff]  ;;  %v471_v49 = vld [vmem:[%s3409_s26 + $0x98] sm:$0xff]  ;;  %v472_v53 = vld [vmem:[%s3409_s26 + $0xa0] sm:$0xff] }
  0x40   : > { %v498_v56 = vld [vmem:[%s3409_s26 + $0xa9] sm:$0xff]  ;;  %v499_v60 = vld [vmem:[%s3409_s26 + $0xb1] sm:$0xff]  ;;  %v500_v0 = vld [vmem:[%s3409_s26 + $0xb9] sm:$0x7f] }
  0x41   : > { %v473_v57 = vld [vmem:[%s3409_s26 + $0xa8] sm:$0xff]  ;;  %v474_v61 = vld [vmem:[%s3409_s26 + $0xb0] sm:$0xff]  ;;  %v475_v1 = vld [vmem:[%s3409_s26 + $0xb8] sm:$0x7f] }
  0x43   : > { %2818 = vmatmul.msk.f32.gmra.mxu0 %vm502_vm1, %v479_v6 }
  0x44   : > { %2843 = vmatmul.msk.f32.gmra.mxu1 %vm502_vm1, %v454_v7 }
  0x4b   : > { %2819 = vmatmul.msk.f32.gmra.mxu0 %vm502_vm1, %v480_v8 }
  0x4c   : > { %2844 = vmatmul.msk.f32.gmra.mxu1 %vm502_vm1, %v455_v9 }
  0x53   : > { %2820 = vmatmul.msk.f32.gmra.mxu0 %vm502_vm1, %v481_v10 }
  0x54   : > { %2845 = vmatmul.msk.f32.gmra.mxu1 %vm502_vm1, %v456_v11 }
  0x5b   : > { %2821 = vmatmul.msk.f32.gmra.mxu0 %vm502_vm1, %v482_v12 }
  0x5c   : > { %2846 = vmatmul.msk.f32.gmra.mxu1 %vm502_vm1, %v457_v13 }
  0x63   : > { %2822 = vmatmul.msk.f32.gmra.mxu0 %vm502_vm1, %v483_v14 }
  0x64   : > { %2847 = vmatmul.msk.f32.gmra.mxu1 %vm502_vm1, %v458_v15 }
  0x6b   : > { %2823 = vmatmul.msk.f32.gmra.mxu0 %vm502_vm1, %v484_v16 }
  0x6c   : > { %2848 = vmatmul.msk.f32.gmra.mxu1 %vm502_vm1, %v459_v17 }
  0x73   : > { %2824 = vmatmul.msk.f32.gmra.mxu0 %vm502_vm1, %v485_v18 }
  0x74   : > { %2849 = vmatmul.msk.f32.gmra.mxu1 %vm502_vm1, %v460_v19  ;;  %v3540_v19 = vld [vmem:[%s4104_s2] ss:$0 sm:$0xff] }
  0x7b   : > { %2825 = vmatmul.msk.f32.gmra.mxu0 %vm502_vm1, %v486_v20 }
  0x7c   : > { %2850 = vmatmul.msk.f32.gmra.mxu1 %vm502_vm1, %v461_v21 }
  0x83   : > { %2826 = vmatmul.msk.f32.gmra.mxu0 %vm502_vm1, %v487_v22 }
  0x84   : > { %2851 = vmatmul.msk.f32.gmra.mxu1 %vm502_vm1, %v462_v23 }
  0x8b   : > { %2827 = vmatmul.msk.f32.gmra.mxu0 %vm502_vm1, %v488_v24 }
  0x8c   : > { %2852 = vmatmul.msk.f32.gmra.mxu1 %vm502_vm1, %v463_v25 }
  0x93   : > { %2828 = vmatmul.msk.f32.gmra.mxu0 %vm502_vm1, %v489_v26 }
  0x94   : > { %2853 = vmatmul.msk.f32.gmra.mxu1 %vm502_vm1, %v464_v27 }
  0x9b   : > { %2829 = vmatmul.msk.f32.gmra.mxu0 %vm502_vm1, %v490_v28 }
  0x9c   : > { %2854 = vmatmul.msk.f32.gmra.mxu1 %vm502_vm1, %v465_v29 }
  0xa3   : > { %2830 = vmatmul.msk.f32.gmra.mxu0 %vm502_vm1, %v491_v30 }
  0xa4   : > { %2855 = vmatmul.msk.f32.gmra.mxu1 %vm502_vm1, %v466_v31 }
  0xab   : > { %2831 = vmatmul.msk.f32.gmra.mxu0 %vm502_vm1, %v492_v32 }
  0xac   : > { %2856 = vmatmul.msk.f32.gmra.mxu1 %vm502_vm1, %v467_v33 }
  0xb0   : > { %v3481_v34 = vpop.f32.mrf.mxu0 }
  0xb1   : > { %v3483_v35 = vpop.f32.mrf.mxu1 }
  0xb3   : > { %2832 = vmatmul.msk.f32.gmra.mxu0 %vm502_vm1, %v493_v36 }
  0xb4   : > { %2857 = vmatmul.msk.f32.gmra.mxu1 %vm502_vm1, %v468_v37 }
  0xb8   : > { %v3489_v38 = vpop.f32.mrf.mxu0 }
  0xb9   : > { %v3491_v39 = vpop.f32.mrf.mxu1 }
  0xbb   : > { %2833 = vmatmul.msk.f32.gmra.mxu0 %vm502_vm1, %v494_v40 }
  0xbc   : > { %2858 = vmatmul.msk.f32.gmra.mxu1 %vm502_vm1, %v469_v41 }
  0xc0   : > { %v3497_v42 = vpop.f32.mrf.mxu0 }
  0xc1   : > { %v3499_v43 = vpop.f32.mrf.mxu1 }
  0xc3   : > { %2834 = vmatmul.msk.f32.gmra.mxu0 %vm502_vm1, %v495_v44 }
  0xc4   : > { %2859 = vmatmul.msk.f32.gmra.mxu1 %vm502_vm1, %v470_v45 }
  0xc8   : > { %v3505_v46 = vpop.f32.mrf.mxu0 }
  0xc9   : > { %v3507_v47 = vpop.f32.mrf.mxu1 }
  0xcb   : > { %2835 = vmatmul.msk.f32.gmra.mxu0 %vm502_vm1, %v496_v48 }
  0xcc   : > { %2860 = vmatmul.msk.f32.gmra.mxu1 %vm502_vm1, %v471_v49 }
  0xd0   : > { %v3513_v50 = vpop.f32.mrf.mxu0 }
  0xd1   : > { %v3515_v51 = vpop.f32.mrf.mxu1 }
  0xd3   : > { %2836 = vmatmul.msk.f32.gmra.mxu0 %vm502_vm1, %v497_v52 }
  0xd4   : > { %2861 = vmatmul.msk.f32.gmra.mxu1 %vm502_vm1, %v472_v53 }
  0xd8   : > { %v3521_v54 = vpop.f32.mrf.mxu0 }
  0xd9   : > { %v3523_v55 = vpop.f32.mrf.mxu1 }
  0xdb   : > { %2837 = vmatmul.msk.f32.gmra.mxu0 %vm502_vm1, %v498_v56 }
  0xdc   : > { %2862 = vmatmul.msk.f32.gmra.mxu1 %vm502_vm1, %v473_v57 }
  0xe0   : > { %v614_v58 = vpop.f32.mrf.mxu0 }
  0xe1   : > { %v778_v59 = vpop.f32.mrf.mxu1 }
  0xe2   : > { %v779_v52 = vadd.f32 %v778_v59, %v614_v58  ;;  %v773_v58 = vadd.f32 %v3515_v51, %v3513_v50  ;;  %v767_v50 = vadd.f32 %v3499_v43, %v3497_v42  ;;  %v761_v42 = vadd.f32 %v3483_v35, %v3481_v34 }
  0xe3   : > { %2838 = vmatmul.msk.f32.gmra.mxu0 %vm502_vm1, %v499_v60 }
  0xe4   : > { %2863 = vmatmul.msk.f32.gmra.mxu1 %vm502_vm1, %v474_v61  ;;  %v776_v61 = vadd.f32 %v3523_v55, %v3521_v54  ;;  %v842_v59 = vadd.f32 %v3540_v19, %v779_v52  ;;  %v770_v54 = vadd.f32 %v3507_v47, %v3505_v46  ;;  %v840_v51 = vadd.f32 %v3540_v19, %v773_v58 }
  0xe5   : > { %v838_v43 = vadd.f32 %v3540_v19, %v767_v50 }
  0xe6   : > { %v841_v55 = vadd.f32 %v3540_v19, %v776_v61 }
  0xe7   : > { %v3632_v34 = vmax.f32 %v838_v43, 0.0 }
  0xe8   : > { %v617_v62 = vpop.f32.mrf.mxu0 }
  0xe9   : > { %v781_v63 = vpop.f32.mrf.mxu1 }
  0xea   : > { %v782_v45 = vadd.f32 %v781_v63, %v617_v62 }
  0xeb   : > { %2839 = vmatmul.msk.f32.gmra.mxu0 %vm502_vm1, %v500_v0 }
  0xec   : > { %2864 = vmatmul.msk.f32.gmra.mxu1 %vm502_vm1, %v475_v1  ;;  %v843_v62 = vadd.f32 %v3540_v19, %v782_v45 }
  0xee   : > { %v3597_v1 = vmax.f32 %v843_v62, 0.0  ;;  %v1019_v62 = vld [vmem:[#allocation2 + $0x10] sm:$0xff] }
  0xf0   : > { %v620_v2 = vpop.f32.mrf.mxu0 }
  0xf1   : > { %v784_v3 = vpop.f32.mrf.mxu1 }
  0xf2   : > { %v785_v40 = vadd.f32 %v784_v3, %v620_v2  ;;  %v3604_v2 = vmax.f32 %v842_v59, 0.0  ;;  %v764_v3 = vadd.f32 %v3491_v39, %v3489_v38  ;;  %v1018_v59 = vld [vmem:[#allocation2 + $0x8] sm:$0xff] }
  0xf4   : > { %v844_v53 = vadd.f32 %v3540_v19, %v785_v40  ;;  %v837_v38 = vadd.f32 %v3540_v19, %v764_v3  ;;  %v1022_v40 = vld [vmem:[#allocation2 + $0x28] sm:$0xff]  ;;  %v1017_v3 = vld [vmem:[#allocation2] sm:$0xff] }
  0xf6   : > { %v3590_v0 = vmax.f32 %v844_v53, 0.0  ;;  %v1020_v53 = vld [vmem:[#allocation2 + $0x18] sm:$0xff] }
  0xf8   : > { %v623_v4 = vpop.f32.mrf.mxu0 }
  0xf9   : > { %v787_v5 = vpop.f32.mrf.mxu1 }
  0xfa   : > { %v788_v33 = vadd.f32 %v787_v5, %v623_v4  ;;  %v839_v4 = vadd.f32 %v3540_v19, %v770_v54  ;;  %v3615_v5 = vmax.f32 %v841_v55, 0.0 }
  0xfc   : > { %v845_v48 = vadd.f32 %v3540_v19, %v788_v33  ;;  %v3627_v39 = vmax.f32 %v839_v4, 0.0  ;;  %v1024_v33 = vld [vmem:[#allocation2 + $0x38] sm:$0xff] }
  0xfe   : > { %v3583_v63 = vmax.f32 %v845_v48, 0.0  ;;  %v1021_v48 = vld [vmem:[#allocation2 + $0x20] sm:$0xff] }
 0x100   : > { %v626_v6 = vpop.f32.mrf.mxu0 }
 0x101   : > { %v790_v7 = vpop.f32.mrf.mxu1 }
 0x102   : > { %v791_v28 = vadd.f32 %v790_v7, %v626_v6  ;;  %v3622_v6 = vmax.f32 %v840_v51, 0.0  ;;  %v884_v7 = vlaneseq }
 0x104   : > { %v846_v41 = vadd.f32 %v3540_v19, %v791_v28 }
 0x106   : > { %v3572_v56 = vmax.f32 %v846_v41, 0.0 }
 0x108   : > { %v629_v8 = vpop.f32.mrf.mxu0 }
 0x109   : > { %v793_v9 = vpop.f32.mrf.mxu1 }
 0x10a   : > { %v794_v25 = vadd.f32 %v793_v9, %v629_v8  ;;  %v836_v8 = vadd.f32 %v3540_v19, %v761_v42 }
 0x10c   : > { %v847_v36 = vadd.f32 %v3540_v19, %v794_v25  ;;  %v1026_v25 = vld [vmem:[#allocation2 + $0x48] sm:$0xff] }
 0x10e   : > { %v3567_v49 = vmax.f32 %v847_v36, 0.0  ;;  %v1023_v36 = vld [vmem:[#allocation2 + $0x30] sm:$0xff] }
 0x110   : > { %v632_v10 = vpop.f32.mrf.mxu0 }
 0x111   : > { %v796_v11 = vpop.f32.mrf.mxu1 }
 0x112   : > { %v797_v22 = vadd.f32 %v796_v11, %v632_v10  ;;  %v3640_v10 = vshrl.u32 %v884_v7, 7  ;;  %v3642_v11 = vmax.f32 %v837_v38, 0.0 }
 0x114   : > { %v848_v29 = vadd.f32 %v3540_v19, %v797_v22  ;;  %v1029_v22 = vld [vmem:[#allocation2 + $0x60] sm:$0xff]  ;;  %v3671_v52 = vadd.s32 8, %v3640_v10  ;;  %v3684_v4 = vadd.s32 16, %v3640_v10 }
 0x116   : > { %v3562_v44 = vmax.f32 %v848_v29, 0.0  ;;  %v1025_v29 = vld [vmem:[#allocation2 + $0x40] sm:$0xff]  ;;  %v3675_v61 = vmul.u32 4, %v3671_v52 }
 0x118   : > { %v635_v12 = vpop.f32.mrf.mxu0 }
 0x119   : > { %v799_v13 = vpop.f32.mrf.mxu1 }
 0x11a   : > { %v800_v20 = vadd.f32 %v799_v13, %v635_v12  ;;  %v3646_v12 = vand.u32 127, %v884_v7  ;;  %v3649_v13 = vmul.u32 4, %v3640_v10  ;;  %v3690_v7 = vmul.u32 4, %v3684_v4 }
 0x11c   : > { %v849_v26 = vadd.f32 %v3540_v19, %v800_v20  ;;  %vm900_vm2 = vcmp.eq.s32.totalorder %v3646_v12, %v3649_v13  ;;  %vm902_vm3 = vcmp.eq.s32.totalorder %v3646_v12, %v3675_v61  ;;  %vm904_vm5 = vcmp.eq.s32.totalorder %v3646_v12, %v3690_v7 }
 0x11e   : > { %v3557_v37 = vmax.f32 %v849_v26, 0.0 }
 0x120   : > { %v638_v14 = vpop.f32.mrf.mxu0 }
 0x121   : > { %v802_v15 = vpop.f32.mrf.mxu1 }
 0x122   : > { %v803_v16 = vadd.f32 %v802_v15, %v638_v14  ;;  %v3651_v14 = vmax.f32 %v836_v8, 0.0  ;;  %v1032_v15 = vld [vmem:[#allocation2 + $0x78] sm:$0xff] }
 0x124   : > { %v850_v23 = vadd.f32 %v3540_v19, %v803_v16  ;;  %v1031_v16 = vld [vmem:[#allocation2 + $0x70] sm:$0xff] }
 0x126   : > { %v3548_v30 = vmax.f32 %v850_v23, 0.0  ;;  %v1028_v23 = vld [vmem:[#allocation2 + $0x58] sm:$0xff] }
 0x128   : > { %v641_v17 = vpop.f32.mrf.mxu0 }
 0x129   : > { %v805_v18 = vpop.f32.mrf.mxu1 }
 0x12a   : > { %v806_v21 = vadd.f32 %v805_v18, %v641_v17  ;;  %v1030_v17 = vld [vmem:[#allocation2 + $0x68] sm:$0xff]  ;;  %v3247_v18 = vmov 1.0  }
 0x12c   : > { %v851_v24 = vadd.f32 %v3540_v19, %v806_v21 }
 0x12e   : > { %v3545_v27 = vmax.f32 %v851_v24, 0.0  ;;  %v1027_v24 = vld [vmem:[#allocation2 + $0x50] sm:$0xff] }
 0x130   : > { %947 = vmatpush.msra.mxu2 %v3545_v27  ;;  %1448 = vmatpush.msrb.mxu0 %v3545_v27  ;;  %v3552_v31 = vpop.f32.mrf.mxu0 }
 0x131   : > { %v3554_v32 = vpop.f32.mrf.mxu1 }
 0x132   : > { %948 = vmatpush.msra.mxu2 %v3548_v30  ;;  %1449 = vmatpush.msrb.mxu0 %v3548_v30 }
 0x134   : > { %949 = vmatpush.msra.mxu2 %v3557_v37  ;;  %1450 = vmatpush.msrb.mxu0 %v3557_v37 }
 0x136   : > { %950 = vmatpush.msra.mxu2 %v3562_v44  ;;  %1451 = vmatpush.msrb.mxu0 %v3562_v44 }
 0x138   : > { %951 = vmatpush.msra.mxu2 %v3567_v49  ;;  %1452 = vmatpush.msrb.mxu0 %v3567_v49  ;;  %v3576_v57 = vpop.f32.mrf.mxu0 }
 0x139   : > { %v3578_v60 = vpop.f32.mrf.mxu1 }
 0x13a   : > { %952 = vmatpush.msra.mxu2 %v3572_v56  ;;  %1453 = vmatpush.msrb.mxu0 %v3572_v56 }
 0x13c   : > { %953 = vmatpush.msra.mxu2 %v3583_v63  ;;  %1454 = vmatpush.msrb.mxu0 %v3583_v63 }
 0x13e   : > { %954 = vmatpush.msra.mxu2 %v3590_v0  ;;  %1455 = vmatpush.msrb.mxu0 %v3590_v0 }
 0x140   : > { %955 = vmatpush.msra.mxu2 %v3597_v1  ;;  %1456 = vmatpush.msrb.mxu0 %v3597_v1  ;;  %v3608_v46 = vpop.f32.mrf.mxu0 }
 0x141   : > { %v3610_v47 = vpop.f32.mrf.mxu1 }
 0x142   : > { %956 = vmatpush.msra.mxu2 %v3604_v2  ;;  %1457 = vmatpush.msrb.mxu0 %v3604_v2 }
 0x144   : > { %957 = vmatpush.msra.mxu2 %v3615_v5  ;;  %1458 = vmatpush.msrb.mxu0 %v3615_v5 }
 0x146   : > { %958 = vmatpush.msra.mxu2 %v3622_v6  ;;  %1459 = vmatpush.msrb.mxu0 %v3622_v6 }
 0x148   : > { %959 = vmatpush.msra.mxu2 %v3627_v39  ;;  %1460 = vmatpush.msrb.mxu0 %v3627_v39  ;;  %v3636_v35 = vpop.f32.mrf.mxu0 }
 0x149   : > { %v3638_v9 = vpop.f32.mrf.mxu1 }
 0x14a   : > { %960 = vmatpush.msra.mxu2 %v3632_v34  ;;  %1461 = vmatpush.msrb.mxu0 %v3632_v34  ;;  %v818_v8 = vadd.f32 %v3638_v9, %v3636_v35  ;;  %v812_v35 = vadd.f32 %v3578_v60, %v3576_v57  ;;  %v3732_v60 = vadd.s32 128, %v3646_v12 }
 0x14c   : > { %961 = vmatpush.msra.mxu2 %v3642_v11  ;;  %1462 = vmatpush.msrb.mxu0 %v3642_v11  ;;  %v855_v9 = vadd.f32 %v3540_v19, %v818_v8  ;;  %vm901_vm7 = vcmp.eq.s32.totalorder %v3732_v60, %v3649_v13  ;;  %vm903_vm9 = vcmp.eq.s32.totalorder %v3732_v60, %v3675_v61  ;;  %v1038_v8 = vld [vmem:[#allocation2 + $0x220] sm:$0xff] }
 0x14d   : > { %vm905_vm10 = vcmp.eq.s32.totalorder %v3732_v60, %v3690_v7 }
 0x14e   : > { %962 = vmatpush.msra.mxu2 %v3651_v14  ;;  %1463 = vmatpush.msrb.mxu0 %v3651_v14 }
 0x14f   : > { %2865 = vmatmul.msk.f32.vlgmr.msra.gmra.mxu2 %vm900_vm2, %v3247_v18 }
 0x150   : > { %1108 = vmatpush.msrb.mxu2 %v1032_v15  ;;  %1705 = vmatpush.msra.mxu0 %v3545_v27  ;;  %v656_v20 = vpop.f32.mrf.mxu0 }
 0x151   : > { %v820_v21 = vpop.f32.mrf.mxu1 }
 0x152   : > { %1109 = vmatpush.msrb.mxu2 %v1031_v16  ;;  %1706 = vmatpush.msra.mxu0 %v3548_v30  ;;  %v821_v42 = vadd.f32 %v820_v21, %v656_v20 }
 0x154   : > { %1110 = vmatpush.msrb.mxu2 %v1030_v17  ;;  %1707 = vmatpush.msra.mxu0 %v3557_v37  ;;  %v815_v17 = vadd.f32 %v3610_v47, %v3608_v46  ;;  %v856_v20 = vadd.f32 %v3540_v19, %v821_v42  ;;  %v888_v47 = vadd.s32 24, %v3640_v10  ;;  %v1040_v42 = vld [vmem:[#allocation2 + $0x230] sm:$0xff] }
 0x156   : > { %1111 = vmatpush.msrb.mxu2 %v1029_v22  ;;  %1708 = vmatpush.msra.mxu0 %v3562_v44  ;;  %v809_v22 = vadd.f32 %v3554_v32, %v3552_v31  ;;  %v3728_v57 = vmul.u32 4, %v888_v47 }
 0x157   : > { %2866 = vmatmul.msk.f32.gmra.mxu2 %vm902_vm3, %v3247_v18 }
 0x158   : > { %1112 = vmatpush.msrb.mxu2 %v1028_v23  ;;  %1709 = vmatpush.msra.mxu0 %v3567_v49  ;;  %v659_v26 = vpop.f32.mrf.mxu0  ;;  %v854_v23 = vadd.f32 %v3540_v19, %v815_v17  ;;  %vm906_vm6 = vcmp.eq.s32.totalorder %v3646_v12, %v3728_v57  ;;  %v852_v31 = vadd.f32 %v3540_v19, %v809_v22  ;;  %v1037_v17 = vld [vmem:[#allocation2 + $0x218] sm:$0xff] }
 0x159   : > { %v823_v28 = vpop.f32.mrf.mxu1  ;;  %vm907_vm12 = vcmp.eq.s32.totalorder %v3732_v60, %v3728_v57 }
 0x15a   : > { %1113 = vmatpush.msrb.mxu2 %v1027_v24  ;;  %1710 = vmatpush.msra.mxu0 %v3572_v56  ;;  %v824_v50 = vadd.f32 %v823_v28, %v659_v26  ;;  %v3724_v24 = vmax.f32 %v856_v20, 0.0  ;;  %v3735_v26 = vmax.f32 %v855_v9, 0.0  ;;  %v3743_v32 = vmax.f32 %v854_v23, 0.0  ;;  %v1036_v20 = vld [vmem:[#allocation2 + $0x210] sm:$0xff]  ;;  %v1034_v9 = vld [vmem:[#allocation2 + $0x200] sm:$0xff] }
 0x15c   : > { %1114 = vmatpush.msrb.mxu2 %v1026_v25  ;;  %1711 = vmatpush.msra.mxu0 %v3583_v63  ;;  %v857_v15 = vadd.f32 %v3540_v19, %v824_v50  ;;  %v853_v25 = vadd.f32 %v3540_v19, %v812_v35  ;;  %v1035_v35 = vld [vmem:[#allocation2 + $0x208] sm:$0xff] }
 0x15e   : > { %1115 = vmatpush.msrb.mxu2 %v1025_v29  ;;  %1712 = vmatpush.msra.mxu0 %v3590_v0  ;;  %v3715_v46 = vmax.f32 %v857_v15, 0.0  ;;  %v3751_v28 = vmax.f32 %v853_v25, 0.0  ;;  %v3248_v29 = vmov 0.0  }
 0x15f   : > { %2867 = vmatmul.msk.f32.gmra.mxu2 %vm904_vm5, %v3247_v18  ;;  %v917_v50 = vsel %vm905_vm10, 1.0, %v3248_v29  ;;  %v919_v15 = vsel %vm907_vm12, 1.0, %v3248_v29 }
 0x160   : > { %1116 = vmatpush.msrb.mxu2 %v1024_v33  ;;  %1713 = vmatpush.msra.mxu0 %v3597_v1  ;;  %v662_v41 = vpop.f32.mrf.mxu0  ;;  %v913_v33 = vsel %vm901_vm7, 1.0, %v3248_v29 }
 0x161   : > { %v826_v45 = vpop.f32.mrf.mxu1 }
 0x162   : > { %1117 = vmatpush.msrb.mxu2 %v1023_v36  ;;  %1714 = vmatpush.msra.mxu0 %v3604_v2  ;;  %v827_v58 = vadd.f32 %v826_v45, %v662_v41  ;;  %v1049_v36 = vld [vmem:[#allocation2 + $0x278] sm:$0xff]  ;;  %v1047_v41 = vld [vmem:[#allocation2 + $0x268] sm:$0xff]  ;;  %v1046_v45 = vld [vmem:[#allocation2 + $0x260] sm:$0xff] }
 0x164   : > { %1118 = vmatpush.msrb.mxu2 %v1022_v40  ;;  %1715 = vmatpush.msra.mxu0 %v3615_v5  ;;  %v858_v43 = vadd.f32 %v3540_v19, %v827_v58  ;;  %v1048_v40 = vld [vmem:[#allocation2 + $0x270] sm:$0xff] }
 0x165   : > { %v1044_v58 = vld [vmem:[#allocation2 + $0x250] sm:$0xff] }
 0x166   : > { %1119 = vmatpush.msrb.mxu2 %v1021_v48  ;;  %1716 = vmatpush.msra.mxu0 %v3622_v6  ;;  %v3704_v21 = vmax.f32 %v858_v43, 0.0  ;;  %v915_v48 = vsel %vm903_vm9, 1.0, %v3248_v29 }
 0x167   : > { %2868 = vmatmul.msk.f32.gmra.mxu2 %vm906_vm6, %v3247_v18 }
 0x168   : > { %1120 = vmatpush.msrb.mxu2 %v1020_v53  ;;  %1717 = vmatpush.msra.mxu0 %v3627_v39  ;;  %v665_v54 = vpop.f32.mrf.mxu0  ;;  %v889_v53 = vadd.s32 32, %v3640_v10 }
 0x169   : > { %v829_v55 = vpop.f32.mrf.mxu1 }
 0x16a   : > { %1121 = vmatpush.msrb.mxu2 %v1019_v62  ;;  %1718 = vmatpush.msra.mxu0 %v3632_v34  ;;  %v830_v51 = vadd.f32 %v829_v55, %v665_v54  ;;  %v1045_v62 = vld [vmem:[#allocation2 + $0x258] sm:$0xff]  ;;  %v1043_v54 = vld [vmem:[#allocation2 + $0x248] sm:$0xff]  ;;  %v1042_v55 = vld [vmem:[#allocation2 + $0x240] sm:$0xff] }
 0x16c   : > { %1122 = vmatpush.msrb.mxu2 %v1018_v59  ;;  %1719 = vmatpush.msra.mxu0 %v3642_v11  ;;  %v859_v38 = vadd.f32 %v3540_v19, %v830_v51  ;;  %v3756_v19 = vmax.f32 %v852_v31, 0.0  ;;  %v3781_v59 = vmul.u32 4, %v889_v53  ;;  %v890_v51 = vadd.s32 40, %v3640_v10 }
 0x16e   : > { %1123 = vmatpush.msrb.mxu2 %v1017_v3  ;;  %1720 = vmatpush.msra.mxu0 %v3651_v14  ;;  %v3696_v16 = vmax.f32 %v859_v38, 0.0  ;;  %vm908_vm11 = vcmp.eq.s32.totalorder %v3646_v12, %v3781_v59  ;;  %v1041_v3 = vld [vmem:[#allocation2 + $0x238] sm:$0xff]  ;;  %v3797_v43 = vmul.u32 4, %v890_v51  ;;  %v1039_v38 = vld [vmem:[#allocation2 + $0x228] sm:$0xff]  ;;  %vm909_vm14 = vcmp.eq.s32.totalorder %v3732_v60, %v3781_v59 }
 0x16f   : > { %2869 = vmatmul.msk.f32.gmra.mxu2 %vm908_vm11, %v3247_v18  ;;  %v921_v47 = vsel %vm909_vm14, 1.0, %v3248_v29 }
 0x170   : > { %1191 = vmatpush.msra.mxu2 %v3545_v27  ;;  %2871 = vmatpush.msk.msra.mxu3 %vm943_vm4, %v3696_v16  ;;  %vm910_vm13 = vcmp.eq.s32.totalorder %v3646_v12, %v3797_v43  ;;  %vm911_vm15 = vcmp.eq.s32.totalorder %v3732_v60, %v3797_v43  ;;  %v1148_v51 = vadd.s32 1, %v3797_v43 }
 0x171   : > { %2897 = vmatpush.msk.msrb.mxu1 %vm943_vm4, %v3696_v16  ;;  %v923_v22 = vsel %vm911_vm15, 1.0, %v3248_v29 }
 0x172   : > { %1192 = vmatpush.msra.mxu2 %v3548_v30  ;;  %991 = vmatpush.msra.mxu3 %v3704_v21 }
 0x173   : > { %1492 = vmatpush.msrb.mxu1 %v3704_v21 }
 0x174   : > { %1193 = vmatpush.msra.mxu2 %v3557_v37  ;;  %992 = vmatpush.msra.mxu3 %v3715_v46 }
 0x175   : > { %1493 = vmatpush.msrb.mxu1 %v3715_v46 }
 0x176   : > { %1194 = vmatpush.msra.mxu2 %v3562_v44  ;;  %993 = vmatpush.msra.mxu3 %v3724_v24 }
 0x177   : > { %1494 = vmatpush.msrb.mxu1 %v3724_v24  ;;  %2870 = vmatmul.msk.f32.gmra.mxu2 %vm910_vm13, %v3247_v18  ;;  %vm1159_vm13 = vcmp.eq.s32.totalorder %v3646_v12, %v1148_v51 }
 0x178   : > { %1195 = vmatpush.msra.mxu2 %v3567_v49  ;;  %994 = vmatpush.msra.mxu3 %v3735_v26 }
 0x179   : > { %1495 = vmatpush.msrb.mxu1 %v3735_v26 }
 0x17a   : > { %1196 = vmatpush.msra.mxu2 %v3572_v56  ;;  %995 = vmatpush.msra.mxu3 %v3743_v32 }
 0x17b   : > { %1496 = vmatpush.msrb.mxu1 %v3743_v32 }
 0x17c   : > { %1197 = vmatpush.msra.mxu2 %v3583_v63  ;;  %996 = vmatpush.msra.mxu3 %v3751_v28 }
 0x17d   : > { %1497 = vmatpush.msrb.mxu1 %v3751_v28 }
 0x17e   : > { %1198 = vmatpush.msra.mxu2 %v3590_v0  ;;  %997 = vmatpush.msra.mxu3 %v3756_v19 }
 0x17f   : > { %1498 = vmatpush.msrb.mxu1 %v3756_v19  ;;  %2872 = vmatmul.msk.f32.vlgmr.msra.gmra.mxu3 %vm924_vm8, %v913_v33 }
 0x180   : > { %1199 = vmatpush.msra.mxu2 %v3597_v1  ;;  %1073 = vmatpush.msrb.mxu3 %v1049_v36  ;;  %v1143_v36 = vadd.s32 1, %v3649_v13 }
 0x181   : > { %2910 = vmatpush.msk.msra.mxu1 %vm943_vm4, %v3696_v16 }
 0x182   : > { %1200 = vmatpush.msra.mxu2 %v3604_v2  ;;  %1074 = vmatpush.msrb.mxu3 %v1048_v40  ;;  %vm1149_vm0 = vcmp.eq.s32.totalorder %v3646_v12, %v1143_v36  ;;  %vm1150_vm3 = vcmp.eq.s32.totalorder %v3732_v60, %v1143_v36 }
 0x183   : > { %1749 = vmatpush.msra.mxu1 %v3704_v21  ;;  %v1162_v53 = vsel %vm1150_vm3, 1.0, %v3248_v29  ;;  %vm1160_vm3 = vcmp.eq.s32.totalorder %v3732_v60, %v1148_v51  ;;  %v1326_v51 = vld [vmem:[#allocation2 + $0x2b0] sm:$0xff] }
 0x184   : > { %1201 = vmatpush.msra.mxu2 %v3615_v5  ;;  %1075 = vmatpush.msrb.mxu3 %v1047_v41  ;;  %v1144_v41 = vadd.s32 1, %v3675_v61 }
 0x185   : > { %1750 = vmatpush.msra.mxu1 %v3715_v46 }
 0x186   : > { %1202 = vmatpush.msra.mxu2 %v3622_v6  ;;  %1076 = vmatpush.msrb.mxu3 %v1046_v45  ;;  %v1145_v45 = vadd.s32 1, %v3690_v7  ;;  %vm1151_vm1 = vcmp.eq.s32.totalorder %v3646_v12, %v1144_v41  ;;  %vm1152_vm6 = vcmp.eq.s32.totalorder %v3732_v60, %v1144_v41  ;;  %v1266_v41 = vld [vmem:[#allocation2 + $0xa0] sm:$0xff] }
 0x187   : > { %1751 = vmatpush.msra.mxu1 %v3724_v24  ;;  %2873 = vmatmul.msk.f32.gmra.mxu3 %vm924_vm8, %v915_v48  ;;  %v1146_v48 = vadd.s32 1, %v3728_v57 }
 0x188   : > { %1203 = vmatpush.msra.mxu2 %v3627_v39  ;;  %1077 = vmatpush.msrb.mxu3 %v1045_v62  ;;  %vm1153_vm2 = vcmp.eq.s32.totalorder %v3646_v12, %v1145_v45  ;;  %v1147_v62 = vadd.s32 1, %v3781_v59  ;;  %vm1154_vm9 = vcmp.eq.s32.totalorder %v3732_v60, %v1145_v45  ;;  %v1329_v45 = vld [vmem:[#allocation2 + $0x2c8] sm:$0xff] }
 0x189   : > { %1752 = vmatpush.msra.mxu1 %v3735_v26  ;;  %vm1155_vm5 = vcmp.eq.s32.totalorder %v3646_v12, %v1146_v48  ;;  %vm1156_vm15 = vcmp.eq.s32.totalorder %v3732_v60, %v1146_v48  ;;  %v1265_v48 = vld [vmem:[#allocation2 + $0x98] sm:$0xff] }
 0x18a   : > { %1204 = vmatpush.msra.mxu2 %v3632_v34  ;;  %1078 = vmatpush.msrb.mxu3 %v1044_v58  ;;  %v1164_v58 = vsel %vm1152_vm6, 1.0, %v3248_v29  ;;  %vm1157_vm7 = vcmp.eq.s32.totalorder %v3646_v12, %v1147_v62 }
 0x18b   : > { %1753 = vmatpush.msra.mxu1 %v3743_v32 }
 0x18c   : > { %1205 = vmatpush.msra.mxu2 %v3642_v11  ;;  %1079 = vmatpush.msrb.mxu3 %v1043_v54  ;;  %v1400_v54 = vadd.s32 2, %v3649_v13 }
 0x18d   : > { %1754 = vmatpush.msra.mxu1 %v3751_v28 }
 0x18e   : > { %1206 = vmatpush.msra.mxu2 %v3651_v14  ;;  %1080 = vmatpush.msrb.mxu3 %v1042_v55  ;;  %vm1406_vm10 = vcmp.eq.s32.totalorder %v3646_v12, %v1400_v54  ;;  %vm1407_vm11 = vcmp.eq.s32.totalorder %v3732_v60, %v1400_v54  ;;  %v1401_v55 = vadd.s32 2, %v3675_v61  ;;  %v1263_v54 = vld [vmem:[#allocation2 + $0x88] sm:$0xff] }
 0x18f   : > { %1755 = vmatpush.msra.mxu1 %v3756_v19  ;;  %2874 = vmatmul.msk.f32.gmra.mxu3 %vm924_vm8, %v917_v50  ;;  %v1419_v50 = vsel %vm1407_vm11, 1.0, %v3248_v29 }
 0x190   : > { %1081 = vmatpush.msrb.mxu3 %v1041_v3  ;;  %2891 = vmatmul.msk.f32.vlgmr.msrb.gmra.mxu0 %vm1406_vm10, %v3247_v18  ;;  %v1166_v3 = vsel %vm1154_vm9, 1.0, %v3248_v29  ;;  %vm1409_vm12 = vcmp.eq.s32.totalorder %v3732_v60, %v1401_v55  ;;  %vm1408_vm14 = vcmp.eq.s32.totalorder %v3646_v12, %v1401_v55  ;;  %v1662_v55 = vadd.s32 3, %v3797_v43 }
 0x191   : > { %2898 = vmatmul.msk.f32.vlgmr.msrb.gmra.mxu1 %vm924_vm8, %v1419_v50 }
 0x192   : > { %1082 = vmatpush.msrb.mxu3 %v1040_v42  ;;  %v1421_v42 = vsel %vm1409_vm12, 1.0, %v3248_v29 }
 0x194   : > { %1083 = vmatpush.msrb.mxu3 %v1039_v38  ;;  %v1402_v38 = vadd.s32 2, %v3690_v7 }
 0x196   : > { %1084 = vmatpush.msrb.mxu3 %v1038_v8  ;;  %v1168_v8 = vsel %vm1156_vm15, 1.0, %v3248_v29 }
 0x197   : > { %2875 = vmatmul.msk.f32.gmra.mxu3 %vm924_vm8, %v919_v15 }
 0x198   : > { %1085 = vmatpush.msrb.mxu3 %v1037_v17  ;;  %2892 = vmatmul.msk.f32.gmra.mxu0 %vm1408_vm14, %v3247_v18 }
 0x199   : > { %2899 = vmatmul.msk.f32.gmra.mxu1 %vm924_vm8, %v1421_v42 }
 0x19a   : > { %1086 = vmatpush.msrb.mxu3 %v1036_v20  ;;  %v1403_v20 = vadd.s32 2, %v3728_v57 }
 0x19c   : > { %1087 = vmatpush.msrb.mxu3 %v1035_v35  ;;  %vm1413_vm6 = vcmp.eq.s32.totalorder %v3732_v60, %v1403_v20  ;;  %v1172_v35 = vsel %vm1160_vm3, 1.0, %v3248_v29 }
 0x19e   : > { %1088 = vmatpush.msrb.mxu3 %v1034_v9  ;;  %v1425_v9 = vsel %vm1413_vm6, 1.0, %v3248_v29 }
 0x19f   : > { %2876 = vmatmul.msk.f32.gmra.mxu3 %vm924_vm8, %v921_v47  ;;  %v1404_v47 = vadd.s32 2, %v3781_v59 }
 0x1a0   : > { %2939 = vmatpush.msra.mxu3 %v3545_v27 }
 0x1a1   : > { %vm1414_vm9 = vcmp.eq.s32.totalorder %v3646_v12, %v1404_v47 }
 0x1a2   : > { %2940 = vmatpush.msra.mxu3 %v3548_v30 }
 0x1a4   : > { %2941 = vmatpush.msra.mxu3 %v3557_v37 }
 0x1a6   : > { %2942 = vmatpush.msra.mxu3 %v3562_v44 }
 0x1a7   : > { %2877 = vmatmul.msk.f32.gmra.mxu3 %vm924_vm8, %v923_v22 }
 0x1a8   : > { %2943 = vmatpush.msra.mxu3 %v3567_v49 }
 0x1aa   : > { %2944 = vmatpush.msra.mxu3 %v3572_v56 }
 0x1ac   : > { %2945 = vmatpush.msra.mxu3 %v3583_v63 }
 0x1ae   : > { %2946 = vmatpush.msra.mxu3 %v3590_v0 }
 0x1b0   : > { %2947 = vmatpush.msra.mxu3 %v3597_v1 }
 0x1b2   : > { %2948 = vmatpush.msra.mxu3 %v3604_v2 }
 0x1b4   : > { %2949 = vmatpush.msra.mxu3 %v3615_v5 }
 0x1b6   : > { %2950 = vmatpush.msra.mxu3 %v3622_v6 }
 0x1b8   : > { %2951 = vmatpush.msra.mxu3 %v3627_v39 }
 0x1ba   : > { %2952 = vmatpush.msra.mxu3 %v3632_v34 }
 0x1bc   : > { %2953 = vmatpush.msra.mxu3 %v3642_v11 }
 0x1be   : > { %2954 = vmatpush.msra.mxu3 %v3651_v14 }
 0x1d2   : > { %v964_v27 = vpop.f32.mrf.mxu2 }
 0x1da   : > { %v967_v30 = vpop.f32.mrf.mxu2 }
 0x1e2   : > { %v970_v63 = vpop.f32.mrf.mxu2 }
 0x1ea   : > { %v973_v34 = vpop.f32.mrf.mxu2 }
 0x1f2   : > { %v976_v23 = vpop.f32.mrf.mxu2 }
 0x202   : > { %v999_v37 = vpop.f32.mrf.mxu3 }
 0x203   : > { %v1000_v44 = vadd.f32 %v999_v37, %v964_v27  ;;  %v1405_v27 = vadd.s32 2, %v3797_v43  ;;  %v1657_v37 = vadd.s32 3, %v3649_v13  ;;  %v1324_v43 = vld [vmem:[#allocation2 + $0x2a0] sm:$0xff] }
 0x205   : > { %1124 = vmatmul.f32.vlgmr.msrb.gmra.mxu2 %v1000_v44  ;;  %v1056_v0 = vrot.slane %v1000_v44, 1  ;;  %vm1417_vm10 = vcmp.eq.s32.totalorder %v3732_v60, %v1405_v27  ;;  %vm1416_vm11 = vcmp.eq.s32.totalorder %v3646_v12, %v1405_v27  ;;  %vm1664_vm12 = vcmp.eq.s32.totalorder %v3732_v60, %v1657_v37 }
 0x206   : > { %2884 = vmatpush.msk.msrb.mxu2 %vm943_vm4, %v3696_v16  ;;  %v1676_v44 = vsel %vm1664_vm12, 1.0, %v3248_v29 }
 0x208   : > { %1235 = vmatpush.msrb.mxu2 %v3704_v21 }
 0x20a   : > { %1236 = vmatpush.msrb.mxu2 %v3715_v46  ;;  %v1002_v49 = vpop.f32.mrf.mxu3 }
 0x20b   : > { %v1003_v56 = vadd.f32 %v1002_v49, %v967_v30  ;;  %v1429_v30 = vsel %vm1417_vm10, 1.0, %v3248_v29 }
 0x20c   : > { %1237 = vmatpush.msrb.mxu2 %v3724_v24 }
 0x20d   : > { %v1057_v1 = vrot.slane %v1003_v56, 1  ;;  %1127 = vmatmul.f32.gmra.mxu2 %v1003_v56  ;;  %v1658_v56 = vadd.s32 3, %v3675_v61  ;;  %v1274_v61 = vld [vmem:[#allocation2 + $0xe0] sm:$0xff] }
 0x20e   : > { %1238 = vmatpush.msrb.mxu2 %v3735_v26 }
 0x20f   : > { %v1058_v2 = vsel %vm943_vm4, %v1056_v0, %v1057_v1  ;;  %vm1666_vm14 = vcmp.eq.s32.totalorder %v3732_v60, %v1658_v56  ;;  %vm1665_vm15 = vcmp.eq.s32.totalorder %v3646_v12, %v1658_v56  ;;  %v1276_v0 = vld [vmem:[#allocation2 + $0xf0] sm:$0xff]  ;;  %v1530_v56 = vld [vmem:[#allocation2 + $0x158] sm:$0xff] }
 0x210   : > { %1239 = vmatpush.msrb.mxu2 %v3743_v32  ;;  %1089 = vmatmul.f32.vlgmr.msrb.gmra.mxu3 %v1058_v2  ;;  %v979_v32 = vpop.f32.mrf.mxu2  ;;  %v1678_v13 = vsel %vm1666_vm14, 1.0, %v3248_v29  ;;  %v1275_v2 = vld [vmem:[#allocation2 + $0xe8] sm:$0xff] }
 0x212   : > { %1240 = vmatpush.msrb.mxu2 %v3751_v28  ;;  %v1005_v5 = vpop.f32.mrf.mxu3 }
 0x213   : > { %v1006_v6 = vadd.f32 %v1005_v5, %v970_v63  ;;  %v1277_v63 = vld [vmem:[#allocation2 + $0xf8] sm:$0xff]  ;;  %v1659_v5 = vadd.s32 3, %v3690_v7 }
 0x214   : > { %1241 = vmatpush.msrb.mxu2 %v3756_v19  ;;  %1278 = vmatpush.msrb.mxu3 %v1277_v63  ;;  %v1592_v63 = vld [vmem:[#allocation2 + $0x378] sm:$0xff] }
 0x215   : > { %v1059_v39 = vrot.slane %v1006_v6, 1  ;;  %1130 = vmatmul.f32.gmra.mxu2 %v1006_v6 }
 0x216   : > { %1279 = vmatpush.msrb.mxu3 %v1276_v0  ;;  %v1528_v0 = vld [vmem:[#allocation2 + $0x148] sm:$0xff] }
 0x217   : > { %v1060_v11 = vsel %vm943_vm4, %v1057_v1, %v1059_v39 }
 0x218   : > { %1092 = vmatmul.f32.gmra.mxu3 %v1060_v11  ;;  %v1335_v11 = vld [vmem:[#allocation2 + $0x2f8] sm:$0xff] }
 0x219   : > { %1280 = vmatpush.msrb.mxu3 %v1275_v2 }
 0x21a   : > { %v1008_v14 = vpop.f32.mrf.mxu3 }
 0x21b   : > { %v1009_v16 = vadd.f32 %v1008_v14, %v973_v34  ;;  %1281 = vmatpush.msrb.mxu3 %v1274_v61  ;;  %v1272_v34 = vld [vmem:[#allocation2 + $0xd0] sm:$0xff] }
 0x21c   : > { %v1591_v61 = vld [vmem:[#allocation2 + $0x370] sm:$0xff] }
 0x21d   : > { %v1061_v21 = vrot.slane %v1009_v16, 1  ;;  %1133 = vmatmul.f32.gmra.mxu2 %v1009_v16  ;;  %v1271_v16 = vld [vmem:[#allocation2 + $0xc8] sm:$0xff] }
 0x21f   : > { %v1062_v46 = vsel %vm943_vm4, %v1059_v39, %v1061_v21  ;;  %v1273_v39 = vld [vmem:[#allocation2 + $0xd8] sm:$0xff] }
 0x220   : > { %1095 = vmatmul.f32.gmra.mxu3 %v1062_v46  ;;  %v1334_v46 = vld [vmem:[#allocation2 + $0x2f0] sm:$0xff] }
 0x221   : > { %1282 = vmatpush.msrb.mxu3 %v1273_v39 }
 0x222   : > { %v1011_v24 = vpop.f32.mrf.mxu3 }
 0x223   : > { %v1012_v25 = vadd.f32 %v1011_v24, %v976_v23  ;;  %1283 = vmatpush.msrb.mxu3 %v1272_v34  ;;  %v1270_v23 = vld [vmem:[#allocation2 + $0xc0] sm:$0xff]  ;;  %v1333_v24 = vld [vmem:[#allocation2 + $0x2e8] sm:$0xff] }
 0x224   : > { %v1590_v34 = vld [vmem:[#allocation2 + $0x368] sm:$0xff] }
 0x225   : > { %v1063_v26 = vrot.slane %v1012_v25, 1  ;;  %1136 = vmatmul.f32.gmra.mxu2 %v1012_v25  ;;  %1284 = vmatpush.msrb.mxu3 %v1271_v16  ;;  %v1589_v16 = vld [vmem:[#allocation2 + $0x360] sm:$0xff] }
 0x227   : > { %v1064_v31 = vsel %vm943_vm4, %v1061_v21, %v1063_v26  ;;  %v1660_v21 = vadd.s32 3, %v3728_v57  ;;  %1285 = vmatpush.msrb.mxu3 %v1270_v23  ;;  %v1332_v57 = vld [vmem:[#allocation2 + $0x2e0] sm:$0xff]  ;;  %v1524_v23 = vld [vmem:[#allocation2 + $0x128] sm:$0xff] }
 0x228   : > { %1098 = vmatmul.f32.gmra.mxu3 %v1064_v31  ;;  %v1268_v31 = vld [vmem:[#allocation2 + $0xb0] sm:$0xff] }
 0x229   : > { %vm1669_vm3 = vcmp.eq.s32.totalorder %v3646_v12, %v1660_v21 }
 0x22a   : > { %v1014_v28 = vpop.f32.mrf.mxu3 }
 0x22b   : > { %v1015_v19 = vadd.f32 %v1014_v28, %v979_v32  ;;  %v1331_v32 = vld [vmem:[#allocation2 + $0x2d8] sm:$0xff] }
 0x22d   : > { %v1065_v33 = vrot.slane %v1015_v19, 1  ;;  %1139 = vmatmul.f32.gmra.mxu2 %v1015_v19  ;;  %v1267_v19 = vld [vmem:[#allocation2 + $0xa8] sm:$0xff] }
 0x22f   : > { %v1066_v40 = vsel %vm943_vm4, %v1063_v26, %v1065_v33  ;;  %v1269_v26 = vld [vmem:[#allocation2 + $0xb8] sm:$0xff] }
 0x230   : > { %1101 = vmatmul.f32.gmra.mxu3 %v1066_v40  ;;  %v1330_v40 = vld [vmem:[#allocation2 + $0x2d0] sm:$0xff] }
 0x231   : > { %1286 = vmatpush.msrb.mxu3 %v1269_v26  ;;  %v1587_v26 = vld [vmem:[#allocation2 + $0x350] sm:$0xff] }
 0x233   : > { %1287 = vmatpush.msrb.mxu3 %v1268_v31 }
 0x235   : > { %2878 = vmatmul.msk.f32.vlgmr.msra.gmra.mxu2 %vm1149_vm0, %v3247_v18  ;;  %vm1411_vm0 = vcmp.eq.s32.totalorder %v3732_v60, %v1402_v38  ;;  %1288 = vmatpush.msrb.mxu3 %v1267_v19 }
 0x236   : > { %v1423_v15 = vsel %vm1411_vm0, 1.0, %v3248_v29  ;;  %vm1668_vm0 = vcmp.eq.s32.totalorder %v3732_v60, %v1659_v5  ;;  %1359 = vmatpush.msra.mxu2 %v1335_v11  ;;  %v1526_v11 = vld [vmem:[#allocation2 + $0x138] sm:$0xff] }
 0x237   : > { %2900 = vmatmul.msk.f32.gmra.mxu1 %vm924_vm8, %v1423_v15  ;;  %v1680_v6 = vsel %vm1668_vm0, 1.0, %v3248_v29  ;;  %1289 = vmatpush.msrb.mxu3 %v1266_v41  ;;  %v1323_v15 = vld [vmem:[#allocation2 + $0x298] sm:$0xff]  ;;  %v1585_v41 = vld [vmem:[#allocation2 + $0x340] sm:$0xff] }
 0x238   : > { %1104 = vmatmul.f32.gmra.mxu3 %v1065_v33  ;;  %1360 = vmatpush.msra.mxu2 %v1334_v46  ;;  %v1661_v33 = vadd.s32 3, %v3781_v59  ;;  %v1264_v59 = vld [vmem:[#allocation2 + $0x90] sm:$0xff]  ;;  %v1588_v46 = vld [vmem:[#allocation2 + $0x358] sm:$0xff] }
 0x239   : > { %1290 = vmatpush.msrb.mxu3 %v1265_v48  ;;  %v1521_v48 = vld [vmem:[#allocation2 + $0x110] sm:$0xff] }
 0x23a   : > { %1361 = vmatpush.msra.mxu2 %v1333_v24  ;;  %vm1672_vm6 = vcmp.eq.s32.totalorder %v3732_v60, %v1661_v33 }
 0x23b   : > { %1291 = vmatpush.msrb.mxu3 %v1264_v59  ;;  %v1583_v59 = vld [vmem:[#allocation2 + $0x330] sm:$0xff] }
 0x23c   : > { %1362 = vmatpush.msra.mxu2 %v1332_v57  ;;  %v1523_v57 = vld [vmem:[#allocation2 + $0x120] sm:$0xff] }
 0x23d   : > { %2879 = vmatmul.msk.f32.gmra.mxu2 %vm1151_vm1, %v3247_v18  ;;  %vm1410_vm1 = vcmp.eq.s32.totalorder %v3646_v12, %v1402_v38  ;;  %1292 = vmatpush.msrb.mxu3 %v1263_v54  ;;  %v1325_v38 = vld [vmem:[#allocation2 + $0x2a8] sm:$0xff] }
 0x23e   : > { %2893 = vmatmul.msk.f32.gmra.mxu0 %vm1410_vm1, %v3247_v18  ;;  %vm1667_vm1 = vcmp.eq.s32.totalorder %v3646_v12, %v1659_v5  ;;  %1363 = vmatpush.msra.mxu2 %v1331_v32  ;;  %v1586_v32 = vld [vmem:[#allocation2 + $0x348] sm:$0xff] }
 0x23f   : > { %2901 = vmatmul.msk.f32.gmra.mxu1 %vm924_vm8, %v1425_v9 }
 0x240   : > { %2880 = vmatmul.msk.f32.vlgmr.msra.gmra.mxu3 %vm1153_vm2, %v3247_v18  ;;  %vm1158_vm2 = vcmp.eq.s32.totalorder %v3732_v60, %v1147_v62  ;;  %1364 = vmatpush.msra.mxu2 %v1330_v40  ;;  %v1328_v62 = vld [vmem:[#allocation2 + $0x2c0] sm:$0xff]  ;;  %v1522_v40 = vld [vmem:[#allocation2 + $0x118] sm:$0xff] }
 0x241   : > { %v1170_v17 = vsel %vm1158_vm2, 1.0, %v3248_v29  ;;  %vm1670_vm2 = vcmp.eq.s32.totalorder %v3732_v60, %v1660_v21  ;;  %v1525_v21 = vld [vmem:[#allocation2 + $0x130] sm:$0xff] }
 0x242   : > { %v1682_v25 = vsel %vm1670_vm2, 1.0, %v3248_v29  ;;  %1365 = vmatpush.msra.mxu2 %v1329_v45  ;;  %vm2475_vm2 = vcmask 80896  }
 0x244   : > { %1366 = vmatpush.msra.mxu2 %v1328_v62  ;;  %v1520_v62 = vld [vmem:[#allocation2 + $0x108] sm:$0xff] }
 0x245   : > { %2885 = vmatmul.msk.f32.vlgmr.msrb.gmra.mxu2 %vm924_vm8, %v1162_v53  ;;  %v1684_v53 = vsel %vm1672_vm6, 1.0, %v3248_v29 }
 0x248   : > { %2881 = vmatmul.msk.f32.gmra.mxu3 %vm1155_vm5, %v3247_v18  ;;  %vm1412_vm5 = vcmp.eq.s32.totalorder %v3646_v12, %v1403_v20  ;;  %v1321_v20 = vld [vmem:[#allocation2 + $0x288] sm:$0xff] }
 0x249   : > { %2894 = vmatmul.msk.f32.gmra.mxu0 %vm1412_vm5, %v3247_v18  ;;  %vm1671_vm5 = vcmp.eq.s32.totalorder %v3646_v12, %v1661_v33 }
 0x24d   : > { %2886 = vmatmul.msk.f32.gmra.mxu2 %vm924_vm8, %v1164_v58  ;;  %v1327_v58 = vld [vmem:[#allocation2 + $0x2b8] sm:$0xff] }
 0x24e   : > { %1367 = vmatpush.msra.mxu2 %v1327_v58  ;;  %v1519_v58 = vld [vmem:[#allocation2 + $0x100] sm:$0xff] }
 0x250   : > { %2882 = vmatmul.msk.f32.gmra.mxu3 %vm1157_vm7, %v3247_v18  ;;  %vm1415_vm7 = vcmp.eq.s32.totalorder %v3732_v60, %v1404_v47  ;;  %1368 = vmatpush.msra.mxu2 %v1326_v51 }
 0x251   : > { %v1427_v22 = vsel %vm1415_vm7, 1.0, %v3248_v29  ;;  %2895 = vmatmul.msk.f32.gmra.mxu0 %vm1414_vm9, %v3247_v18  ;;  %vm1674_vm7 = vcmp.eq.s32.totalorder %v3732_v60, %v1662_v55  ;;  %vm1673_vm9 = vcmp.eq.s32.totalorder %v3646_v12, %v1662_v55  ;;  %v1322_v60 = vld [vmem:[#allocation2 + $0x290] sm:$0xff] }
 0x252   : > { %2902 = vmatmul.msk.f32.gmra.mxu1 %vm924_vm8, %v1427_v22  ;;  %1369 = vmatpush.msra.mxu2 %v1325_v38  ;;  %v1534_v22 = vld [vmem:[#allocation2 + $0x178] sm:$0xff] }
 0x254   : > { %1370 = vmatpush.msra.mxu2 %v1324_v43  ;;  %v1581_v43 = vld [vmem:[#allocation2 + $0x320] sm:$0xff] }
 0x255   : > { %2887 = vmatmul.msk.f32.gmra.mxu2 %vm924_vm8, %v1166_v3  ;;  %v1262_v3 = vld [vmem:[#allocation2 + $0x80] sm:$0xff] }
 0x256   : > { %1293 = vmatpush.msrb.mxu3 %v1262_v3  ;;  %1371 = vmatpush.msra.mxu2 %v1323_v15  ;;  %v1582_v3 = vld [vmem:[#allocation2 + $0x328] sm:$0xff]  ;;  %v1500_v15 = vpop.f32.mrf.mxu1 }
 0x258   : > { %2883 = vmatmul.msk.f32.gmra.mxu3 %vm1159_vm13, %v3247_v18  ;;  %vm1663_vm13 = vcmp.eq.s32.totalorder %v3646_v12, %v1657_v37  ;;  %1372 = vmatpush.msra.mxu2 %v1322_v60 }
 0x259   : > { %2896 = vmatmul.msk.f32.gmra.mxu0 %vm1416_vm11, %v3247_v18  ;;  %1535 = vmatpush.msra.mxu3 %v1534_v22  ;;  %vm1939_vm11 = vcmask 375808  }
 0x25a   : > { %2903 = vmatmul.msk.f32.gmra.mxu1 %vm924_vm8, %v1429_v30  ;;  %1373 = vmatpush.msra.mxu2 %v1321_v20  ;;  %v1532_v30 = vld [vmem:[#allocation2 + $0x168] sm:$0xff]  ;;  %v1580_v20 = vld [vmem:[#allocation2 + $0x318] sm:$0xff] }
 0x25d   : > { %2888 = vmatmul.msk.f32.gmra.mxu2 %vm924_vm8, %v1168_v8  ;;  %v1686_v8 = vsel %vm1674_vm7, 1.0, %v3248_v29 }
 0x261   : > { %2904 = vmatmul.msk.f32.vlgmr.msra.gmra.mxu0 %vm1663_vm13, %v3247_v18 }
 0x262   : > { %2911 = vmatmul.msk.f32.vlgmr.msra.gmra.mxu1 %vm924_vm8, %v1676_v44  ;;  %v1531_v44 = vld [vmem:[#allocation2 + $0x160] sm:$0xff] }
 0x265   : > { %2889 = vmatmul.msk.f32.gmra.mxu2 %vm924_vm8, %v1170_v17 }
 0x269   : > { %2905 = vmatmul.msk.f32.gmra.mxu0 %vm1665_vm15, %v3247_v18 }
 0x26a   : > { %2912 = vmatmul.msk.f32.gmra.mxu1 %vm924_vm8, %v1678_v13  ;;  %v1529_v13 = vld [vmem:[#allocation2 + $0x150] sm:$0xff] }
 0x26d   : > { %2890 = vmatmul.msk.f32.gmra.mxu2 %vm924_vm8, %v1172_v35  ;;  %v1320_v35 = vld [vmem:[#allocation2 + $0x280] sm:$0xff] }
 0x26e   : > { %1374 = vmatpush.msra.mxu2 %v1320_v35  ;;  %v1579_v35 = vld [vmem:[#allocation2 + $0x310] sm:$0xff] }
 0x270   : > { %1616 = vmatpush.msrb.mxu2 %v1592_v63  ;;  %v1503_v63 = vpop.f32.mrf.mxu1 }
 0x271   : > { %2906 = vmatmul.msk.f32.gmra.mxu0 %vm1667_vm1, %v3247_v18  ;;  %vm2232_vm1 = vcmask 179200  }
 0x272   : > { %2913 = vmatmul.msk.f32.gmra.mxu1 %vm924_vm8, %v1680_v6  ;;  %v1527_v6 = vld [vmem:[#allocation2 + $0x140] sm:$0xff]  ;;  %1617 = vmatpush.msrb.mxu2 %v1591_v61 }
 0x274   : > { %1618 = vmatpush.msrb.mxu2 %v1590_v34  ;;  %v1790_v34 = vld [vmem:[#allocation2 + $0x1f0] sm:$0xff] }
 0x276   : > { %1619 = vmatpush.msrb.mxu2 %v1589_v16  ;;  %v1789_v16 = vld [vmem:[#allocation2 + $0x1e8] sm:$0xff] }
 0x278   : > { %1620 = vmatpush.msrb.mxu2 %v1588_v46  ;;  %v1788_v46 = vld [vmem:[#allocation2 + $0x1e0] sm:$0xff] }
 0x279   : > { %2907 = vmatmul.msk.f32.gmra.mxu0 %vm1669_vm3, %v3247_v18 }
 0x27a   : > { %2914 = vmatmul.msk.f32.gmra.mxu1 %vm924_vm8, %v1682_v25  ;;  %1621 = vmatpush.msrb.mxu2 %v1587_v26 }
 0x27c   : > { %1622 = vmatpush.msrb.mxu2 %v1586_v32  ;;  %v1786_v32 = vld [vmem:[#allocation2 + $0x1d0] sm:$0xff] }
 0x27e   : > { %1623 = vmatpush.msrb.mxu2 %v1585_v41 }
 0x281   : > { %2908 = vmatmul.msk.f32.gmra.mxu0 %vm1671_vm5, %v3247_v18 }
 0x282   : > { %2915 = vmatmul.msk.f32.gmra.mxu1 %vm924_vm8, %v1684_v53  ;;  %v1584_v53 = vld [vmem:[#allocation2 + $0x338] sm:$0xff] }
 0x283   : > { %1624 = vmatpush.msrb.mxu2 %v1584_v53 }
 0x285   : > { %1625 = vmatpush.msrb.mxu2 %v1583_v59  ;;  %v1783_v59 = vld [vmem:[#allocation2 + $0x1b8] sm:$0xff] }
 0x287   : > { %1626 = vmatpush.msrb.mxu2 %v1582_v3  ;;  %v1781_v3 = vld [vmem:[#allocation2 + $0x1a8] sm:$0xff] }
 0x288   : > { %v3922_v49 = vpop.f32.mrf.mxu2 }
 0x289   : > { %2909 = vmatmul.msk.f32.gmra.mxu0 %vm1673_vm9, %v3247_v18  ;;  %v1533_v18 = vld [vmem:[#allocation2 + $0x170] sm:$0xff]  ;;  %1627 = vmatpush.msrb.mxu2 %v1581_v43 }
 0x28a   : > { %2916 = vmatmul.msk.f32.gmra.mxu1 %vm924_vm8, %v1686_v8  ;;  %1536 = vmatpush.msra.mxu3 %v1533_v18  ;;  %v1465_v8 = vpop.f32.mrf.mxu0  ;;  %v1578_v18 = vld [vmem:[#allocation2 + $0x308] sm:$0xff]  ;;  %vm1949_vm8 = vcmask 1045504  }
 0x28b   : > { %1628 = vmatpush.msrb.mxu2 %v1580_v20  ;;  %v1501_v41 = vadd.f32 %v1500_v15, %v1465_v8  ;;  %v1780_v8 = vld [vmem:[#allocation2 + $0x1a0] sm:$0xff]  ;;  %v1779_v20 = vld [vmem:[#allocation2 + $0x198] sm:$0xff] }
 0x28c   : > { %1537 = vmatpush.msra.mxu3 %v1532_v30 }
 0x28d   : > { %1629 = vmatpush.msrb.mxu2 %v1579_v35  ;;  %v1599_v43 = vrot.slane %v1501_v41, 1  ;;  %v1842_v35 = vld [vmem:[#allocation2 + $0x3c0] sm:$0xff] }
 0x28e   : > { %1538 = vmatpush.msra.mxu3 %v1531_v44 }
 0x28f   : > { %1630 = vmatpush.msrb.mxu2 %v1578_v18 }
 0x290   : > { %v3930_v1 = vpop.f32.mrf.mxu2  ;;  %1539 = vmatpush.msra.mxu3 %v1530_v56 }
 0x292   : > { %1540 = vmatpush.msra.mxu3 %v1529_v13  ;;  %v1468_v13 = vpop.f32.mrf.mxu0 }
 0x293   : > { %v3938_v14 = vpop.f32.mrf.mxu3 }
 0x294   : > { %1541 = vmatpush.msra.mxu3 %v1528_v0 }
 0x296   : > { %1542 = vmatpush.msra.mxu3 %v1527_v6  ;;  %v1791_v6 = vld [vmem:[#allocation2 + $0x1f8] sm:$0xff] }
 0x298   : > { %v3940_v7 = vpop.f32.mrf.mxu2  ;;  %1543 = vmatpush.msra.mxu3 %v1526_v11 }
 0x29a   : > { %1544 = vmatpush.msra.mxu3 %v1525_v21 }
 0x29b   : > { %v3951_v36 = vpop.f32.mrf.mxu3 }
 0x29c   : > { %1545 = vmatpush.msra.mxu3 %v1524_v23 }
 0x29e   : > { %1546 = vmatpush.msra.mxu3 %v1523_v57  ;;  %v1787_v57 = vld [vmem:[#allocation2 + $0x1d8] sm:$0xff] }
 0x2a0   : > { %v3948_v28 = vpop.f32.mrf.mxu2  ;;  %1547 = vmatpush.msra.mxu3 %v1522_v40  ;;  %v1848_v40 = vld [vmem:[#allocation2 + $0x3f0] sm:$0xff] }
 0x2a2   : > { %1548 = vmatpush.msra.mxu3 %v1521_v48 }
 0x2a3   : > { %v3962_v42 = vpop.f32.mrf.mxu3 }
 0x2a4   : > { %1549 = vmatpush.msra.mxu3 %v1520_v62  ;;  %v1847_v62 = vld [vmem:[#allocation2 + $0x3e8] sm:$0xff] }
 0x2a6   : > { %1550 = vmatpush.msra.mxu3 %v1519_v58  ;;  %v1846_v58 = vld [vmem:[#allocation2 + $0x3e0] sm:$0xff] }
 0x2a8   : > { %v3959_v50 = vpop.f32.mrf.mxu2 }
 0x2ab   : > { %v3970_v9 = vpop.f32.mrf.mxu3 }
 0x2b0   : > { %v3968_v17 = vpop.f32.mrf.mxu2 }
 0x2b3   : > { %v3972_v27 = vpop.f32.mrf.mxu3 }
 0x2b8   : > { %v1208_v47 = vpop.f32.mrf.mxu2 }
 0x2bb   : > { %v3974_v2 = vpop.f32.mrf.mxu3  ;;  %v1471_v21 = vpop.f32.mrf.mxu0 }
 0x2c0   : > { %v1211_v37 = vpop.f32.mrf.mxu2 }
 0x2c3   : > { %v1214_v25 = vpop.f32.mrf.mxu3 }
 0x2c6   : > { %v1474_v48 = vpop.f32.mrf.mxu0 }
 0x2c8   : > { %v1243_v5 = vpop.f32.mrf.mxu2 }
 0x2c9   : > { %v1244_v39 = vadd.f32 %v1243_v5, %v1208_v47 }
 0x2cb   : > { %1294 = vmatmul.f32.vlgmr.msrb.gmra.mxu3 %v1244_v39  ;;  %v1342_v19 = vrot.slane %v1244_v39, 1  ;;  %v1217_v51 = vpop.f32.mrf.mxu3 }
 0x2cc   : > { %1792 = vmatpush.msrb.mxu3 %v1791_v6 }
 0x2ce   : > { %1793 = vmatpush.msrb.mxu3 %v1790_v34 }
 0x2d0   : > { %v1246_v24 = vpop.f32.mrf.mxu2  ;;  %1794 = vmatpush.msrb.mxu3 %v1789_v16  ;;  %v1837_v16 = vld [vmem:[#allocation2 + $0x398] sm:$0xff] }
 0x2d1   : > { %v1247_v31 = vadd.f32 %v1246_v24, %v1211_v37  ;;  %v1577_v37 = vld [vmem:[#allocation2 + $0x300] sm:$0xff]  ;;  %v1506_v24 = vpop.f32.mrf.mxu1 }
 0x2d2   : > { %1631 = vmatpush.msrb.mxu2 %v1577_v37  ;;  %1795 = vmatpush.msrb.mxu3 %v1788_v46  ;;  %v1507_v18 = vadd.f32 %v1506_v24, %v1471_v21  ;;  %v1778_v37 = vld [vmem:[#allocation2 + $0x190] sm:$0xff]  ;;  %v1834_v24 = vld [vmem:[#allocation2 + $0x380] sm:$0xff] }
 0x2d3   : > { %1297 = vmatmul.f32.gmra.mxu3 %v1247_v31  ;;  %v1343_v33 = vrot.slane %v1247_v31, 1  ;;  %v1220_v44 = vpop.f32.mrf.mxu3  ;;  %v1836_v21 = vld [vmem:[#allocation2 + $0x390] sm:$0xff] }
 0x2d4   : > { %1796 = vmatpush.msrb.mxu3 %v1787_v57 }
 0x2d5   : > { %v1344_v45 = vsel %vm943_vm4, %v1342_v19, %v1343_v33  ;;  %v1849_v19 = vld [vmem:[#allocation2 + $0x3f8] sm:$0xff] }
 0x2d6   : > { %1375 = vmatmul.f32.vlgmr.msra.gmra.mxu2 %v1344_v45  ;;  %1797 = vmatpush.msrb.mxu3 %v1786_v32  ;;  %v1784_v45 = vld [vmem:[#allocation2 + $0x1c0] sm:$0xff] }
 0x2d7   : > { %1873 = vmatpush.msra.mxu2 %v1849_v19 }
 0x2d8   : > { %v1249_v54 = vpop.f32.mrf.mxu2 }
 0x2d9   : > { %v1250_v55 = vadd.f32 %v1249_v54, %v1214_v25  ;;  %1874 = vmatpush.msra.mxu2 %v1848_v40  ;;  %v1509_v53 = vpop.f32.mrf.mxu1  ;;  %v1504_v54 = vadd.f32 %v1503_v63, %v1468_v13  ;;  %v1840_v13 = vld [vmem:[#allocation2 + $0x3b0] sm:$0xff]  ;;  %v1776_v63 = vld [vmem:[#allocation2 + $0x180] sm:$0xff] }
 0x2da   : > { %v1510_v6 = vadd.f32 %v1509_v53, %v1474_v48 }
 0x2db   : > { %1300 = vmatmul.f32.gmra.mxu3 %v1250_v55  ;;  %v1345_v38 = vrot.slane %v1250_v55, 1  ;;  %v1223_v11 = vpop.f32.mrf.mxu3  ;;  %1875 = vmatpush.msra.mxu2 %v1847_v62  ;;  %v1782_v55 = vld [vmem:[#allocation2 + $0x1b0] sm:$0xff]  ;;  %v1600_v15 = vrot.slane %v1504_v54, 1 }
 0x2dc   : > { %v1604_v46 = vrot.slane %v1510_v6, 1 }
 0x2dd   : > { %v1346_v60 = vsel %vm943_vm4, %v1343_v33, %v1345_v38  ;;  %v1785_v33 = vld [vmem:[#allocation2 + $0x1c8] sm:$0xff]  ;;  %1876 = vmatpush.msra.mxu2 %v1846_v58 }
 0x2de   : > { %1378 = vmatmul.f32.gmra.mxu2 %v1346_v60  ;;  %1798 = vmatpush.msrb.mxu3 %v1785_v33  ;;  %v1843_v60 = vld [vmem:[#allocation2 + $0x3c8] sm:$0xff] }
 0x2e0   : > { %v1252_v47 = vpop.f32.mrf.mxu2  ;;  %1799 = vmatpush.msrb.mxu3 %v1784_v45 }
 0x2e1   : > { %v1253_v22 = vadd.f32 %v1252_v47, %v1217_v51  ;;  %v1845_v51 = vld [vmem:[#allocation2 + $0x3d8] sm:$0xff]  ;;  %v1477_v47 = vpop.f32.mrf.mxu0 }
 0x2e2   : > { %1800 = vmatpush.msrb.mxu3 %v1783_v59  ;;  %1877 = vmatpush.msra.mxu2 %v1845_v51 }
 0x2e3   : > { %1303 = vmatmul.f32.gmra.mxu3 %v1253_v22  ;;  %v1347_v30 = vrot.slane %v1253_v22, 1  ;;  %v1512_v22 = vpop.f32.mrf.mxu1 }
 0x2e4   : > { %1801 = vmatpush.msrb.mxu3 %v1782_v55 }
 0x2e5   : > { %v1348_v56 = vsel %vm943_vm4, %v1345_v38, %v1347_v30  ;;  %v1844_v38 = vld [vmem:[#allocation2 + $0x3d0] sm:$0xff] }
 0x2e6   : > { %1381 = vmatmul.f32.gmra.mxu2 %v1348_v56  ;;  %1802 = vmatpush.msrb.mxu3 %v1781_v3  ;;  %v1777_v56 = vld [vmem:[#allocation2 + $0x188] sm:$0xff] }
 0x2e7   : > { %1878 = vmatpush.msra.mxu2 %v1844_v38 }
 0x2e8   : > { %v1255_v0 = vpop.f32.mrf.mxu2  ;;  %1803 = vmatpush.msrb.mxu3 %v1780_v8 }
 0x2e9   : > { %v1256_v5 = vadd.f32 %v1255_v0, %v1220_v44  ;;  %1879 = vmatpush.msra.mxu2 %v1843_v60  ;;  %v1841_v44 = vld [vmem:[#allocation2 + $0x3b8] sm:$0xff]  ;;  %v1602_v0 = vrot.slane %v1507_v18, 1  ;;  %v1480_v34 = vpop.f32.mrf.mxu0 }
 0x2ea   : > { %1804 = vmatpush.msrb.mxu3 %v1779_v20 }
 0x2eb   : > { %1306 = vmatmul.f32.gmra.mxu3 %v1256_v5  ;;  %v1349_v61 = vrot.slane %v1256_v5, 1  ;;  %1880 = vmatpush.msra.mxu2 %v1842_v35  ;;  %v1839_v5 = vld [vmem:[#allocation2 + $0x3a8] sm:$0xff] }
 0x2ec   : > { %1805 = vmatpush.msrb.mxu3 %v1778_v37 }
 0x2ed   : > { %v1350_v39 = vsel %vm943_vm4, %v1347_v30, %v1349_v61  ;;  %v1601_v30 = vsel %vm943_vm4, %v1599_v43, %v1600_v15  ;;  %1881 = vmatpush.msra.mxu2 %v1841_v44 }
 0x2ee   : > { %1384 = vmatmul.f32.gmra.mxu2 %v1350_v39  ;;  %1806 = vmatpush.msrb.mxu3 %v1777_v56  ;;  %v1603_v39 = vsel %vm943_vm4, %v1600_v15, %v1602_v0 }
 0x2ef   : > { %1882 = vmatpush.msra.mxu2 %v1840_v13 }
 0x2f0   : > { %v1258_v23 = vpop.f32.mrf.mxu2  ;;  %1807 = vmatpush.msrb.mxu3 %v1776_v63 }
 0x2f1   : > { %v1259_v25 = vadd.f32 %v1258_v23, %v1223_v11  ;;  %1883 = vmatpush.msra.mxu2 %v1839_v5  ;;  %v1515_v11 = vpop.f32.mrf.mxu1  ;;  %v1835_v23 = vld [vmem:[#allocation2 + $0x388] sm:$0xff]  ;;  %v1722_v57 = vpop.f32.mrf.mxu0 }
 0x2f2   : > { %v1516_v19 = vadd.f32 %v1515_v11, %v1480_v34 }
 0x2f3   : > { %1309 = vmatmul.f32.gmra.mxu3 %v1259_v25  ;;  %v1351_v26 = vrot.slane %v1259_v25, 1  ;;  %v1513_v25 = vadd.f32 %v1512_v22, %v1477_v47 }
 0x2f4   : > { %v1608_v40 = vrot.slane %v1516_v19, 1 }
 0x2f5   : > { %v1352_v31 = vsel %vm943_vm4, %v1349_v61, %v1351_v26  ;;  %v1838_v61 = vld [vmem:[#allocation2 + $0x3a0] sm:$0xff]  ;;  %v1606_v32 = vrot.slane %v1513_v25, 1 }
 0x2f6   : > { %1387 = vmatmul.f32.gmra.mxu2 %v1352_v31 }
 0x2f7   : > { %1884 = vmatpush.msra.mxu2 %v1838_v61  ;;  %v1607_v33 = vsel %vm943_vm4, %v1604_v46, %v1606_v32  ;;  %v1609_v48 = vsel %vm943_vm4, %v1606_v32, %v1608_v40 }
 0x2f9   : > { %1885 = vmatpush.msra.mxu2 %v1837_v16  ;;  %v1757_v31 = vpop.f32.mrf.mxu1 }
 0x2fa   : > { %v1758_v53 = vadd.f32 %v1757_v31, %v1722_v57 }
 0x2fb   : > { %1551 = vmatmul.f32.vlgmr.msra.gmra.mxu3 %v1501_v41  ;;  %1886 = vmatpush.msra.mxu2 %v1836_v21  ;;  %v1725_v41 = vpop.f32.mrf.mxu0 }
 0x2fd   : > { %1887 = vmatpush.msra.mxu2 %v1835_v23  ;;  %v1138_v23 = vadd.f32 %v3959_v50, %v3972_v27 }
 0x2fe   : > { %1390 = vmatmul.f32.gmra.mxu2 %v1351_v26  ;;  %v1605_v26 = vsel %vm943_vm4, %v1602_v0, %v1604_v46 }
 0x2ff   : > { %1888 = vmatpush.msra.mxu2 %v1834_v24 }
 0x301   : > { %v1760_v45 = vpop.f32.mrf.mxu1 }
 0x302   : > { %v1761_v58 = vadd.f32 %v1760_v45, %v1725_v41 }
 0x303   : > { %1554 = vmatmul.f32.gmra.mxu3 %v1504_v54  ;;  %v1728_v62 = vpop.f32.mrf.mxu0  ;;  %v1856_v54 = vrot.slane %v1758_v53, 1 }
 0x304   : > { %v1857_v55 = vrot.slane %v1761_v58, 1 }
 0x306   : > { %1632 = vmatmul.f32.vlgmr.msrb.gmra.mxu2 %v1601_v30  ;;  %v1858_v3 = vsel %vm943_vm4, %v1856_v54, %v1857_v55 }
 0x309   : > { %v1763_v59 = vpop.f32.mrf.mxu1 }
 0x30a   : > { %v1764_v51 = vadd.f32 %v1763_v59, %v1728_v62 }
 0x30b   : > { %1557 = vmatmul.f32.gmra.mxu3 %v1507_v18  ;;  %v1731_v38 = vpop.f32.mrf.mxu0 }
 0x30c   : > { %v1859_v43 = vrot.slane %v1764_v51, 1 }
 0x30e   : > { %1635 = vmatmul.f32.gmra.mxu2 %v1603_v39  ;;  %v1860_v60 = vsel %vm943_vm4, %v1857_v55, %v1859_v43 }
 0x311   : > { %v1766_v8 = vpop.f32.mrf.mxu1 }
 0x312   : > { %v1767_v15 = vadd.f32 %v1766_v8, %v1731_v38 }
 0x313   : > { %1560 = vmatmul.f32.gmra.mxu3 %v1510_v6  ;;  %v1734_v20 = vpop.f32.mrf.mxu0 }
 0x314   : > { %v1861_v47 = vrot.slane %v1767_v15, 1 }
 0x316   : > { %1638 = vmatmul.f32.gmra.mxu2 %v1605_v26  ;;  %v1862_v18 = vsel %vm943_vm4, %v1859_v43, %v1861_v47  ;;  %v1126_v26 = vadd.f32 %v3922_v49, %v3938_v14  ;;  %v1132_v49 = vadd.f32 %v3940_v7, %v3962_v42 }
 0x319   : > { %v1769_v35 = vpop.f32.mrf.mxu1 }
 0x31a   : > { %v1770_v22 = vadd.f32 %v1769_v35, %v1734_v20 }
 0x31b   : > { %1563 = vmatmul.f32.gmra.mxu3 %v1513_v25  ;;  %v1737_v37 = vpop.f32.mrf.mxu0 }
 0x31c   : > { %v1863_v30 = vrot.slane %v1770_v22, 1 }
 0x31e   : > { %1641 = vmatmul.f32.gmra.mxu2 %v1607_v33  ;;  %v1864_v13 = vsel %vm943_vm4, %v1861_v47, %v1863_v30  ;;  %v1141_v33 = vadd.f32 %v3968_v17, %v3974_v2 }
 0x321   : > { %v1772_v44 = vpop.f32.mrf.mxu1 }
 0x322   : > { %v1773_v56 = vadd.f32 %v1772_v44, %v1737_v37 }
 0x323   : > { %1566 = vmatmul.f32.gmra.mxu3 %v1516_v19 }
 0x324   : > { %v1865_v0 = vrot.slane %v1773_v56, 1 }
 0x326   : > { %1644 = vmatmul.f32.gmra.mxu2 %v1609_v48  ;;  %v1866_v5 = vsel %vm943_vm4, %v1863_v30, %v1865_v0  ;;  %v1129_v48 = vadd.f32 %v3930_v1, %v3951_v36 }
 0x32b   : > { %1808 = vmatmul.f32.vlgmr.msrb.gmra.mxu3 %v1758_v53 }
 0x32e   : > { %1647 = vmatmul.f32.gmra.mxu2 %v1608_v40 }
 0x333   : > { %1811 = vmatmul.f32.gmra.mxu3 %v1761_v58 }
 0x336   : > { %1889 = vmatmul.f32.vlgmr.msra.gmra.mxu2 %v1858_v3  ;;  %v1135_v3 = vadd.f32 %v3948_v28, %v3970_v9 }
 0x33b   : > { %1814 = vmatmul.f32.gmra.mxu3 %v1764_v51 }
 0x33e   : > { %1892 = vmatmul.f32.gmra.mxu2 %v1860_v60 }
 0x343   : > { %1817 = vmatmul.f32.gmra.mxu3 %v1767_v15 }
 0x346   : > { %1895 = vmatmul.f32.gmra.mxu2 %v1862_v18 }
 0x34b   : > { %1820 = vmatmul.f32.gmra.mxu3 %v1770_v22 }
 0x34e   : > { %v1295_v63 = vpop.f32.mrf.mxu3  ;;  %1898 = vmatmul.f32.gmra.mxu2 %v1864_v13 }
 0x34f   : > { %v1313_v32 = vadd.f32 %v1295_v63, %v1126_v26 }
 0x353   : > { %1823 = vmatmul.f32.gmra.mxu3 %v1773_v56 }
 0x356   : > { %v1298_v61 = vpop.f32.mrf.mxu3  ;;  %1901 = vmatmul.f32.gmra.mxu2 %v1866_v5 }
 0x357   : > { %v1314_v27 = vadd.f32 %v1298_v61, %v1129_v48 }
 0x359   : > { %v1376_v6 = vpop.f32.mrf.mxu2 }
 0x35a   : > { %v1394_v19 = vadd.f32 %v1376_v6, %v1313_v32 }
 0x35e   : > { %v1301_v39 = vpop.f32.mrf.mxu3  ;;  %1904 = vmatmul.f32.gmra.mxu2 %v1865_v0 }
 0x35f   : > { %v1315_v55 = vadd.f32 %v1301_v39, %v1132_v49 }
 0x361   : > { %v1379_v34 = vpop.f32.mrf.mxu2 }
 0x362   : > { %v1395_v62 = vadd.f32 %v1379_v34, %v1314_v27 }
 0x366   : > { %v1304_v11 = vpop.f32.mrf.mxu3 }
 0x367   : > { %v1316_v36 = vadd.f32 %v1304_v11, %v1135_v3  ;;  %v1932_v3 = vmul.u32 2, %v3684_v4  ;;  %v1992_v4 = vld [vmem:[#allocation5 + $0x68] sm:$0xff] }
 0x369   : > { %v1382_v16 = vpop.f32.mrf.mxu2  ;;  %vm1935_vm13 = vcmp.eq.s32.totalorder %v3646_v12, %v1932_v3 }
 0x36a   : > { %v1396_v51 = vadd.f32 %v1382_v16, %v1315_v55 }
 0x36e   : > { %v1307_v21 = vpop.f32.mrf.mxu3 }
 0x36f   : > { %v1317_v25 = vadd.f32 %v1307_v21, %v1138_v23 }
 0x371   : > { %v1385_v46 = vpop.f32.mrf.mxu2 }
 0x372   : > { %v1397_v8 = vadd.f32 %v1385_v46, %v1316_v36  ;;  %v1994_v36 = vld [vmem:[#allocation5 + $0x78] sm:$0xff] }
 0x373   : > { %2049 = vmatpush.msra.mxu3 %v1994_v36  ;;  %v2171_v36 = vld [vmem:[#allocation5 + $0x1a8] sm:$0xff] }
 0x376   : > { %v1310_v24 = vpop.f32.mrf.mxu3 }
 0x377   : > { %v1318_v45 = vadd.f32 %v1310_v24, %v1141_v33 }
 0x379   : > { %v1388_v57 = vpop.f32.mrf.mxu2 }
 0x37a   : > { %v1398_v31 = vadd.f32 %v1388_v57, %v1317_v25  ;;  %v3041_v25 = vld [vmem:[%s4106_s4] ss:$0 sm:$0xff] }
 0x37e   : > { %v1552_v40 = vpop.f32.mrf.mxu3 }
 0x37f   : > { %v1570_v41 = vadd.f32 %v1552_v40, %v1394_v19 }
 0x381   : > { %v1391_v53 = vpop.f32.mrf.mxu2 }
 0x382   : > { %v1399_v50 = vadd.f32 %v1391_v53, %v1318_v45 }
 0x386   : > { %v1555_v59 = vpop.f32.mrf.mxu3 }
 0x387   : > { %v1571_v58 = vadd.f32 %v1555_v59, %v1395_v62  ;;  %v1930_v59 = vmul.u32 2, %v3640_v10 }
 0x389   : > { %v1633_v14 = vpop.f32.mrf.mxu2  ;;  %vm1933_vm10 = vcmp.eq.s32.totalorder %v3646_v12, %v1930_v59 }
 0x38a   : > { %v1651_v54 = vadd.f32 %v1633_v14, %v1570_v41 }
 0x38e   : > { %v1558_v17 = vpop.f32.mrf.mxu3 }
 0x38f   : > { %v1572_v2 = vadd.f32 %v1558_v17, %v1396_v51  ;;  %v4010_v17 = vsel %vm1933_vm10, 1.0, %v3248_v29 }
 0x391   : > { %v1636_v38 = vpop.f32.mrf.mxu2 }
 0x392   : > { %v1652_v1 = vadd.f32 %v1636_v38, %v1571_v58  ;;  %v2010_v38 = vld [vmem:[#allocation5 + $0x170] sm:$0xff] }
 0x396   : > { %v1561_v43 = vpop.f32.mrf.mxu3 }
 0x397   : > { %v1573_v15 = vadd.f32 %v1561_v43, %v1397_v8  ;;  %v1993_v8 = vld [vmem:[#allocation5 + $0x70] sm:$0xff]  ;;  %v2008_v43 = vld [vmem:[#allocation5 + $0x160] sm:$0xff] }
 0x398   : > { %2050 = vmatpush.msra.mxu3 %v1993_v8  ;;  %v2170_v8 = vld [vmem:[#allocation5 + $0x1a0] sm:$0xff] }
 0x399   : > { %v1639_v60 = vpop.f32.mrf.mxu2 }
 0x39a   : > { %v1653_v20 = vadd.f32 %v1639_v60, %v1572_v2  ;;  %v1931_v2 = vmul.u32 2, %v3671_v52  ;;  %v2011_v52 = vld [vmem:[#allocation5 + $0x178] sm:$0xff]  ;;  %2051 = vmatpush.msra.mxu3 %v1992_v4 }
 0x39b   : > { %2023 = vmatpush.msrb.mxu1 %v2011_v52  ;;  %v2135_v60 = vld [vmem:[#allocation5 + $0xf8] sm:$0xff]  ;;  %v2121_v52 = vld [vmem:[#allocation5 + $0x88] sm:$0xff] }
 0x39c   : > { %vm1934_vm12 = vcmp.eq.s32.totalorder %v3646_v12, %v1931_v2  ;;  %2136 = vmatpush.msrb.mxu2 %v2135_v60  ;;  %v2167_v60 = vld [vmem:[#allocation5 + $0x188] sm:$0xff] }
 0x39d   : > { %v4018_v10 = vsel %vm1934_vm12, 1.0, %v3248_v29  ;;  %2024 = vmatpush.msrb.mxu1 %v2010_v38  ;;  %v2172_v38 = vld [vmem:[#allocation5 + $0x1b0] sm:$0xff] }
 0x39e   : > { %v1564_v35 = vpop.f32.mrf.mxu3 }
 0x39f   : > { %v1574_v61 = vadd.f32 %v1564_v35, %v1398_v31  ;;  %v2007_v35 = vld [vmem:[#allocation5 + $0x158] sm:$0xff] }
 0x3a1   : > { %v1642_v47 = vpop.f32.mrf.mxu2 }
 0x3a2   : > { %v1654_v7 = vadd.f32 %v1642_v47, %v1573_v15  ;;  %v1938_v15 = vsel %vm1935_vm13, 1.0, %v3248_v29  ;;  %v2134_v47 = vld [vmem:[#allocation5 + $0xf0] sm:$0xff] }
 0x3a3   : > { %2137 = vmatpush.msrb.mxu2 %v2134_v47 }
 0x3a6   : > { %v1567_v42 = vpop.f32.mrf.mxu3 }
 0x3a7   : > { %v1575_v6 = vadd.f32 %v1567_v42, %v1399_v50  ;;  %v2006_v42 = vld [vmem:[#allocation5 + $0x150] sm:$0xff] }
 0x3a9   : > { %v1645_v22 = vpop.f32.mrf.mxu2 }
 0x3aa   : > { %v1655_v39 = vadd.f32 %v1645_v22, %v1574_v61  ;;  %v2133_v22 = vld [vmem:[#allocation5 + $0xe8] sm:$0xff]  ;;  %v2000_v61 = vld [vmem:[#allocation5 + $0x120] sm:$0xff] }
 0x3ab   : > { %2138 = vmatpush.msrb.mxu2 %v2133_v22 }
 0x3ae   : > { %v1809_v18 = vpop.f32.mrf.mxu3 }
 0x3af   : > { %v1827_v41 = vadd.f32 %v1809_v18, %v1651_v54  ;;  %v1990_v18 = vld [vmem:[#allocation5 + $0x58] sm:$0xff] }
 0x3b1   : > { %v1648_v30 = vpop.f32.mrf.mxu2 }
 0x3b2   : > { %v1656_v11 = vadd.f32 %v1648_v30, %v1575_v6  ;;  %v2005_v30 = vld [vmem:[#allocation5 + $0x148] sm:$0xff] }
 0x3b6   : > { %v1812_v37 = vpop.f32.mrf.mxu3 }
 0x3b7   : > { %v1828_v19 = vadd.f32 %v1812_v37, %v1652_v1  ;;  %v2009_v1 = vld [vmem:[#allocation5 + $0x168] sm:$0xff]  ;;  %v1989_v37 = vld [vmem:[#allocation5 + $0x50] sm:$0xff] }
 0x3b8   : > { %2025 = vmatpush.msrb.mxu1 %v2009_v1  ;;  %v2120_v1 = vld [vmem:[#allocation5 + $0x80] sm:$0xff] }
 0x3b9   : > { %v1890_v44 = vpop.f32.mrf.mxu2 }
 0x3ba   : > { %v1908_v50 = vadd.f32 %v1890_v44, %v1827_v41  ;;  %2026 = vmatpush.msrb.mxu1 %v2008_v43  ;;  %v2004_v44 = vld [vmem:[#allocation5 + $0x140] sm:$0xff]  ;;  %v2129_v41 = vld [vmem:[#allocation5 + $0xc8] sm:$0xff]  ;;  %v2169_v43 = vld [vmem:[#allocation5 + $0x198] sm:$0xff] }
 0x3bc   : > { %v1918_v14 = vadd.f32 %v3041_v25, %v1908_v50  ;;  %2027 = vmatpush.msrb.mxu1 %v2007_v35  ;;  %v2127_v50 = vld [vmem:[#allocation5 + $0xb8] sm:$0xff] }
 0x3be   : > { %v1815_v56 = vpop.f32.mrf.mxu3  ;;  %v1924_v54 = vmax.f32 %v1918_v14, 0.0  ;;  %2028 = vmatpush.msrb.mxu1 %v2006_v42  ;;  %v2124_v14 = vld [vmem:[#allocation5 + $0xa0] sm:$0xff] }
 0x3bf   : > { %v1829_v26 = vadd.f32 %v1815_v56, %v1653_v20  ;;  %v2075_v20 = vadd.s32 1, %v1930_v59  ;;  %v2177_v59 = vld [vmem:[#allocation5 + $0x1d8] sm:$0xff] }
 0x3c0   : > { %2029 = vmatpush.msrb.mxu1 %v2005_v30 }
 0x3c1   : > { %v1893_v13 = vpop.f32.mrf.mxu2  ;;  %vm2078_vm14 = vcmp.eq.s32.totalorder %v3646_v12, %v2075_v20  ;;  %v2166_v20 = vld [vmem:[#allocation5 + $0x180] sm:$0xff] }
 0x3c2   : > { %v1909_v45 = vadd.f32 %v1893_v13, %v1828_v19  ;;  %v4028_v56 = vsel %vm2078_vm14, 1.0, %v3248_v29  ;;  %v1988_v13 = vld [vmem:[#allocation5 + $0x48] sm:$0xff]  ;;  %2030 = vmatpush.msrb.mxu1 %v2004_v44  ;;  %v2131_v19 = vld [vmem:[#allocation5 + $0xd8] sm:$0xff] }
 0x3c4   : > { %v1919_v58 = vadd.f32 %v3041_v25, %v1909_v45  ;;  %v2180_v45 = vld [vmem:[#allocation5 + $0x1f0] sm:$0xff] }
 0x3c6   : > { %v1818_v28 = vpop.f32.mrf.mxu3  ;;  %v1925_v51 = vmax.f32 %v1919_v58, 0.0  ;;  %v2125_v58 = vld [vmem:[#allocation5 + $0xa8] sm:$0xff] }
 0x3c7   : > { %v1830_v21 = vadd.f32 %v1818_v28, %v1654_v7  ;;  %v1991_v7 = vld [vmem:[#allocation5 + $0x60] sm:$0xff]  ;;  %v2076_v28 = vadd.s32 1, %v1931_v2  ;;  %v2122_v2 = vld [vmem:[#allocation5 + $0x90] sm:$0xff] }
 0x3c8   : > { %2052 = vmatpush.msra.mxu3 %v1991_v7 }
 0x3c9   : > { %v1896_v9 = vpop.f32.mrf.mxu2  ;;  %vm2079_vm15 = vcmp.eq.s32.totalorder %v3646_v12, %v2076_v28 }
 0x3ca   : > { %v1910_v33 = vadd.f32 %v1896_v9, %v1829_v26  ;;  %2053 = vmatpush.msra.mxu3 %v1990_v18  ;;  %v2003_v9 = vld [vmem:[#allocation5 + $0x138] sm:$0xff]  ;;  %v4034_v6 = vsel %vm2079_vm15, 1.0, %v3248_v29  ;;  %v1980_v26 = vld [vmem:[#allocation5 + $0x8] sm:$0xff] }
 0x3cb   : > { %2031 = vmatpush.msrb.mxu1 %v2003_v9 }
 0x3cc   : > { %v1920_v27 = vadd.f32 %v3041_v25, %v1910_v33  ;;  %2054 = vmatpush.msra.mxu3 %v1989_v37  ;;  %v1996_v33 = vld [vmem:[#allocation5 + $0x100] sm:$0xff] }
 0x3ce   : > { %v1821_v0 = vpop.f32.mrf.mxu3  ;;  %v1926_v55 = vmax.f32 %v1920_v27, 0.0  ;;  %2055 = vmatpush.msra.mxu3 %v1988_v13  ;;  %v2178_v27 = vld [vmem:[#allocation5 + $0x1e0] sm:$0xff] }
 0x3cf   : > { %v1831_v16 = vadd.f32 %v1821_v0, %v1655_v39  ;;  %v2002_v0 = vld [vmem:[#allocation5 + $0x130] sm:$0xff]  ;;  %v2077_v39 = vadd.s32 1, %v1932_v3  ;;  %v2173_v3 = vld [vmem:[#allocation5 + $0x1b8] sm:$0xff] }
 0x3d0   : > { %2032 = vmatpush.msrb.mxu1 %v2002_v0 }
 0x3d1   : > { %v1899_v63 = vpop.f32.mrf.mxu2  ;;  %vm2080_vm0 = vcmp.eq.s32.totalorder %v3646_v12, %v2077_v39  ;;  %v2132_v12 = vld [vmem:[#allocation5 + $0xe0] sm:$0xff] }
 0x3d2   : > { %v1911_v57 = vadd.f32 %v1899_v63, %v1830_v21  ;;  %v1987_v63 = vld [vmem:[#allocation5 + $0x40] sm:$0xff]  ;;  %v1985_v21 = vld [vmem:[#allocation5 + $0x30] sm:$0xff]  ;;  %2139 = vmatpush.msrb.mxu2 %v2132_v12 }
 0x3d3   : > { %2056 = vmatpush.msra.mxu3 %v1987_v63 }
 0x3d4   : > { %v1921_v48 = vadd.f32 %v3041_v25, %v1911_v57  ;;  %v1998_v57 = vld [vmem:[#allocation5 + $0x110] sm:$0xff]  ;;  %2140 = vmatpush.msrb.mxu2 %v2131_v19 }
 0x3d6   : > { %v1824_v34 = vpop.f32.mrf.mxu3  ;;  %v1927_v49 = vmax.f32 %v1921_v48, 0.0  ;;  %v2128_v48 = vld [vmem:[#allocation5 + $0xc0] sm:$0xff] }
 0x3d7   : > { %v1832_v46 = vadd.f32 %v1824_v34, %v1656_v11  ;;  %v1999_v34 = vld [vmem:[#allocation5 + $0x118] sm:$0xff]  ;;  %v2083_v11 = vsel %vm2080_vm0, 1.0, %v3248_v29  ;;  %v1997_v29 = vld [vmem:[#allocation5 + $0x108] sm:$0xff] }
 0x3d9   : > { %v1902_v5 = vpop.f32.mrf.mxu2 }
 0x3da   : > { %v1912_v23 = vadd.f32 %v1902_v5, %v1831_v16  ;;  %v2001_v5 = vld [vmem:[#allocation5 + $0x128] sm:$0xff]  ;;  %v1986_v16 = vld [vmem:[#allocation5 + $0x38] sm:$0xff] }
 0x3db   : > { %2033 = vmatpush.msrb.mxu1 %v2001_v5  ;;  %2057 = vmatpush.msra.mxu3 %v1986_v16 }
 0x3dc   : > { %v1922_v40 = vadd.f32 %v3041_v25, %v1912_v23  ;;  %v1983_v23 = vld [vmem:[#allocation5 + $0x20] sm:$0xff] }
 0x3dd   : > { %2034 = vmatpush.msrb.mxu1 %v2000_v61  ;;  %2058 = vmatpush.msra.mxu3 %v1985_v21 }
 0x3de   : > { %v1928_v62 = vmax.f32 %v1922_v40, 0.0  ;;  %v2130_v40 = vld [vmem:[#allocation5 + $0xd0] sm:$0xff] }
 0x3df   : > { %2035 = vmatpush.msrb.mxu1 %v1999_v34  ;;  %2141 = vmatpush.msrb.mxu2 %v2130_v40 }
 0x3e1   : > { %v1905_v24 = vpop.f32.mrf.mxu2  ;;  %2036 = vmatpush.msrb.mxu1 %v1998_v57  ;;  %2142 = vmatpush.msrb.mxu2 %v2129_v41 }
 0x3e2   : > { %v1913_v32 = vadd.f32 %v1905_v24, %v1832_v46  ;;  %v1984_v46 = vld [vmem:[#allocation5 + $0x28] sm:$0xff]  ;;  %v1982_v24 = vld [vmem:[#allocation5 + $0x18] sm:$0xff] }
 0x3e3   : > { %2059 = vmatpush.msra.mxu3 %v1984_v46  ;;  %2037 = vmatpush.msrb.mxu1 %v1997_v29 }
 0x3e4   : > { %v1923_v31 = vadd.f32 %v3041_v25, %v1913_v32  ;;  %v1981_v25 = vld [vmem:[#allocation5 + $0x10] sm:$0xff]  ;;  %v1979_v32 = vld [vmem:[#allocation5] sm:$0xff]  ;;  %2143 = vmatpush.msrb.mxu2 %v2128_v48 }
 0x3e5   : > { %2060 = vmatpush.msra.mxu3 %v1983_v23  ;;  %2038 = vmatpush.msrb.mxu1 %v1996_v33 }
 0x3e6   : > { %v1929_v53 = vmax.f32 %v1923_v31, 0.0  ;;  %v2181_v31 = vld [vmem:[#allocation5 + $0x1f8] sm:$0xff]  ;;  %2144 = vmatpush.msrb.mxu2 %v2127_v50 }
 0x3e7   : > { %2061 = vmatpush.msra.mxu3 %v1982_v24  ;;  %2193 = vmatpush.msra.mxu1 %v2181_v31 }
 0x3e8   : > { %2917 = vmatpush.msk.msrb.mxu0 %vm1949_vm8, %v1929_v53 }
 0x3e9   : > { %2062 = vmatpush.msra.mxu3 %v1981_v25  ;;  %2194 = vmatpush.msra.mxu1 %v2180_v45  ;;  %v3042_v45 = vld [vmem:[%s4108_s6] ss:$0 sm:$0xff] }
 0x3ea   : > { %1964 = vmatpush.msrb.mxu0 %v1928_v62 }
 0x3eb   : > { %2063 = vmatpush.msra.mxu3 %v1980_v26 }
 0x3ec   : > { %1965 = vmatpush.msrb.mxu0 %v1927_v49 }
 0x3ed   : > { %2064 = vmatpush.msra.mxu3 %v1979_v32 }
 0x3ee   : > { %1966 = vmatpush.msrb.mxu0 %v1926_v55 }
 0x3f0   : > { %1967 = vmatpush.msrb.mxu0 %v1925_v51 }
 0x3f2   : > { %1968 = vmatpush.msrb.mxu0 %v1924_v54 }
 0x3f3   : > { %2918 = vmatmul.msk.f32.vlgmr.msrb.gmra.mxu0 %vm1939_vm11, %v4010_v17 }
 0x3f4   : > { %2921 = vmatpush.msk.msra.mxu0 %vm1949_vm8, %v1929_v53  ;;  %v2179_v53 = vld [vmem:[#allocation5 + $0x1e8] sm:$0xff] }
 0x3f5   : > { %2195 = vmatpush.msra.mxu1 %v2179_v53 }
 0x3f6   : > { %2104 = vmatpush.msra.mxu0 %v1928_v62  ;;  %v2126_v62 = vld [vmem:[#allocation5 + $0xb0] sm:$0xff] }
 0x3f7   : > { %2196 = vmatpush.msra.mxu1 %v2178_v27  ;;  %2145 = vmatpush.msrb.mxu2 %v2126_v62  ;;  %v2278_v27 = vld [vmem:[#allocation7 + $0x78] sm:$0xff]  ;;  %v2277_v62 = vld [vmem:[#allocation7 + $0x70] sm:$0xff] }
 0x3f8   : > { %2105 = vmatpush.msra.mxu0 %v1927_v49  ;;  %v2176_v49 = vld [vmem:[#allocation5 + $0x1d0] sm:$0xff] }
 0x3f9   : > { %2197 = vmatpush.msra.mxu1 %v2177_v59  ;;  %2146 = vmatpush.msrb.mxu2 %v2125_v58 }
 0x3fa   : > { %2106 = vmatpush.msra.mxu0 %v1926_v55  ;;  %v2175_v55 = vld [vmem:[#allocation5 + $0x1c8] sm:$0xff] }
 0x3fb   : > { %2919 = vmatmul.msk.f32.gmra.mxu0 %vm1939_vm11, %v4018_v10  ;;  %2198 = vmatpush.msra.mxu1 %v2176_v49  ;;  %v2295_v49 = vld [vmem:[#allocation7 + $0x178] sm:$0xff] }
 0x3fc   : > { %2107 = vmatpush.msra.mxu0 %v1925_v51  ;;  %2147 = vmatpush.msrb.mxu2 %v2124_v14  ;;  %v2123_v51 = vld [vmem:[#allocation5 + $0x98] sm:$0xff]  ;;  %v2276_v14 = vld [vmem:[#allocation7 + $0x68] sm:$0xff] }
 0x3fd   : > { %2199 = vmatpush.msra.mxu1 %v2175_v55  ;;  %v2294_v55 = vld [vmem:[#allocation7 + $0x170] sm:$0xff] }
 0x3fe   : > { %2108 = vmatpush.msra.mxu0 %v1924_v54  ;;  %v2174_v54 = vld [vmem:[#allocation5 + $0x1c0] sm:$0xff]  ;;  %2148 = vmatpush.msrb.mxu2 %v2123_v51  ;;  %v2392_v51 = vld [vmem:[#allocation7 + $0xf8] sm:$0xff] }
 0x3ff   : > { %2200 = vmatpush.msra.mxu1 %v2174_v54 }
 0x400   : > { %2149 = vmatpush.msrb.mxu2 %v2122_v2  ;;  %2303 = vmatpush.msrb.mxu0 %v2295_v49  ;;  %v2275_v2 = vld [vmem:[#allocation7 + $0x60] sm:$0xff]  ;;  %v2420_v49 = vld [vmem:[#allocation7 + $0x188] sm:$0xff] }
 0x401   : > { %2201 = vmatpush.msra.mxu1 %v2173_v3 }
 0x402   : > { %2150 = vmatpush.msrb.mxu2 %v2121_v52  ;;  %2304 = vmatpush.msrb.mxu0 %v2294_v55  ;;  %v2274_v52 = vld [vmem:[#allocation7 + $0x58] sm:$0xff] }
 0x403   : > { %2920 = vmatmul.msk.f32.gmra.mxu0 %vm1939_vm11, %v1938_v15  ;;  %2202 = vmatpush.msra.mxu1 %v2172_v38  ;;  %v2168_v15 = vld [vmem:[#allocation5 + $0x190] sm:$0xff]  ;;  %v2434_v38 = vld [vmem:[#allocation7 + $0x1f8] sm:$0xff] }
 0x404   : > { %2151 = vmatpush.msrb.mxu2 %v2120_v1  ;;  %v2433_v1 = vld [vmem:[#allocation7 + $0x1f0] sm:$0xff] }
 0x405   : > { %2203 = vmatpush.msra.mxu1 %v2171_v36  ;;  %v2273_v36 = vld [vmem:[#allocation7 + $0x50] sm:$0xff] }
 0x406   : > { %2326 = vmatpush.msra.mxu2 %v2278_v27  ;;  %v2424_v27 = vld [vmem:[#allocation7 + $0x1a8] sm:$0xff] }
 0x407   : > { %2204 = vmatpush.msra.mxu1 %v2170_v8  ;;  %v2272_v8 = vld [vmem:[#allocation7 + $0x48] sm:$0xff] }
 0x408   : > { %2327 = vmatpush.msra.mxu2 %v2277_v62  ;;  %v2423_v62 = vld [vmem:[#allocation7 + $0x1a0] sm:$0xff] }
 0x409   : > { %2205 = vmatpush.msra.mxu1 %v2169_v43  ;;  %v2271_v43 = vld [vmem:[#allocation7 + $0x40] sm:$0xff] }
 0x40a   : > { %2328 = vmatpush.msra.mxu2 %v2276_v14  ;;  %v2419_v14 = vld [vmem:[#allocation7 + $0x180] sm:$0xff] }
 0x40b   : > { %2922 = vmatmul.msk.f32.vlgmr.msra.gmra.mxu0 %vm1939_vm11, %v4028_v56  ;;  %2206 = vmatpush.msra.mxu1 %v2168_v15  ;;  %v2293_v15 = vld [vmem:[#allocation7 + $0x168] sm:$0xff] }
 0x40c   : > { %2329 = vmatpush.msra.mxu2 %v2275_v2  ;;  %2305 = vmatpush.msrb.mxu0 %v2293_v15  ;;  %v2515_v2 = vld [vmem:[#allocation8 + $0x68] sm:$0xff] }
 0x40d   : > { %2207 = vmatpush.msra.mxu1 %v2167_v60  ;;  %v2292_v60 = vld [vmem:[#allocation7 + $0x160] sm:$0xff] }
 0x40e   : > { %2330 = vmatpush.msra.mxu2 %v2274_v52  ;;  %2306 = vmatpush.msrb.mxu0 %v2292_v60  ;;  %v2514_v52 = vld [vmem:[#allocation8 + $0x60] sm:$0xff] }
 0x40f   : > { %2208 = vmatpush.msra.mxu1 %v2166_v20  ;;  %v2391_v20 = vld [vmem:[#allocation7 + $0xf0] sm:$0xff] }
 0x410   : > { %2331 = vmatpush.msra.mxu2 %v2273_v36  ;;  %v2513_v36 = vld [vmem:[#allocation8 + $0x58] sm:$0xff] }
 0x412   : > { %2332 = vmatpush.msra.mxu2 %v2272_v8 }
 0x413   : > { %2923 = vmatmul.msk.f32.gmra.mxu0 %vm1939_vm11, %v4034_v6 }
 0x414   : > { %2333 = vmatpush.msra.mxu2 %v2271_v43 }
 0x41b   : > { %2924 = vmatmul.msk.f32.gmra.mxu0 %vm1939_vm11, %v2083_v11 }
 0x470   : > { %v1970_v4 = vpop.f32.mrf.mxu0 }
 0x471   : > { %2065 = vmatmul.f32.vlgmr.msra.gmra.mxu3 %v1970_v4  ;;  %v2015_v47 = vrot.slane %v1970_v4, 1  ;;  %v2270_v4 = vld [vmem:[#allocation7 + $0x38] sm:$0xff] }
 0x472   : > { %2334 = vmatpush.msra.mxu2 %v2270_v4 }
 0x478   : > { %v1973_v35 = vpop.f32.mrf.mxu0 }
 0x479   : > { %v2016_v7 = vrot.slane %v1973_v35, 1  ;;  %2068 = vmatmul.f32.gmra.mxu3 %v1973_v35  ;;  %v2291_v35 = vld [vmem:[#allocation7 + $0x158] sm:$0xff] }
 0x47a   : > { %2307 = vmatpush.msrb.mxu0 %v2291_v35  ;;  %v2511_v35 = vld [vmem:[#allocation8 + $0x48] sm:$0xff] }
 0x47b   : > { %v2017_v42 = vsel %vm943_vm4, %v2015_v47, %v2016_v7  ;;  %v2390_v47 = vld [vmem:[#allocation7 + $0xe8] sm:$0xff] }
 0x47c   : > { %2039 = vmatmul.f32.vlgmr.msrb.gmra.mxu1 %v2017_v42  ;;  %v2389_v42 = vld [vmem:[#allocation7 + $0xe0] sm:$0xff] }
 0x47d   : > { %2393 = vmatpush.msrb.mxu1 %v2392_v51  ;;  %v2517_v51 = vld [vmem:[#allocation8 + $0x78] sm:$0xff] }
 0x47f   : > { %2394 = vmatpush.msrb.mxu1 %v2391_v20 }
 0x480   : > { %v1976_v22 = vpop.f32.mrf.mxu0 }
 0x481   : > { %v2018_v18 = vrot.slane %v1976_v22, 1  ;;  %2071 = vmatmul.f32.gmra.mxu3 %v1976_v22  ;;  %2395 = vmatpush.msrb.mxu1 %v2390_v47  ;;  %v2267_v22 = vld [vmem:[#allocation7 + $0x20] sm:$0xff] }
 0x482   : > { %v2510_v47 = vld [vmem:[#allocation8 + $0x40] sm:$0xff] }
 0x483   : > { %v2019_v30 = vsel %vm943_vm4, %v2016_v7, %v2018_v18  ;;  %v2290_v7 = vld [vmem:[#allocation7 + $0x150] sm:$0xff]  ;;  %2396 = vmatpush.msrb.mxu1 %v2389_v42  ;;  %v2507_v42 = vld [vmem:[#allocation8 + $0x28] sm:$0xff] }
 0x484   : > { %2042 = vmatmul.f32.gmra.mxu1 %v2019_v30  ;;  %2308 = vmatpush.msrb.mxu0 %v2290_v7  ;;  %v2388_v30 = vld [vmem:[#allocation7 + $0xd8] sm:$0xff]  ;;  %v2508_v7 = vld [vmem:[#allocation8 + $0x30] sm:$0xff] }
 0x485   : > { %2397 = vmatpush.msrb.mxu1 %v2388_v30  ;;  %v2504_v30 = vld [vmem:[#allocation8 + $0x10] sm:$0xff] }
 0x488   : > { %v2110_v37 = vpop.f32.mrf.mxu0 }
 0x489   : > { %2152 = vmatmul.f32.vlgmr.msrb.gmra.mxu2 %v2110_v37  ;;  %v2185_v13 = vrot.slane %v2110_v37, 1  ;;  %v2266_v37 = vld [vmem:[#allocation7 + $0x18] sm:$0xff] }
 0x48c   : > { %2045 = vmatmul.f32.gmra.mxu1 %v2018_v18  ;;  %v2289_v18 = vld [vmem:[#allocation7 + $0x148] sm:$0xff] }
 0x48d   : > { %2309 = vmatpush.msrb.mxu0 %v2289_v18  ;;  %v2505_v18 = vld [vmem:[#allocation8 + $0x18] sm:$0xff] }
 0x490   : > { %v2113_v44 = vpop.f32.mrf.mxu0 }
 0x491   : > { %v2186_v28 = vrot.slane %v2113_v44, 1  ;;  %2155 = vmatmul.f32.gmra.mxu2 %v2113_v44  ;;  %v2288_v44 = vld [vmem:[#allocation7 + $0x140] sm:$0xff] }
 0x492   : > { %2310 = vmatpush.msrb.mxu0 %v2288_v44  ;;  %v2502_v44 = vld [vmem:[#allocation8] sm:$0xff] }
 0x493   : > { %v2187_v9 = vsel %vm943_vm4, %v2185_v13, %v2186_v28  ;;  %v2387_v13 = vld [vmem:[#allocation7 + $0xd0] sm:$0xff] }
 0x494   : > { %2209 = vmatmul.f32.vlgmr.msra.gmra.mxu1 %v2187_v9  ;;  %v2287_v9 = vld [vmem:[#allocation7 + $0x138] sm:$0xff] }
 0x495   : > { %2398 = vmatpush.msrb.mxu1 %v2387_v13  ;;  %2311 = vmatpush.msrb.mxu0 %v2287_v9 }
 0x498   : > { %v2116_v63 = vpop.f32.mrf.mxu0 }
 0x499   : > { %v2188_v0 = vrot.slane %v2116_v63, 1  ;;  %2158 = vmatmul.f32.gmra.mxu2 %v2116_v63  ;;  %v2386_v63 = vld [vmem:[#allocation7 + $0xc8] sm:$0xff] }
 0x49a   : > { %2399 = vmatpush.msrb.mxu1 %v2386_v63 }
 0x49b   : > { %v2189_v5 = vsel %vm943_vm4, %v2186_v28, %v2188_v0  ;;  %v2265_v28 = vld [vmem:[#allocation7 + $0x10] sm:$0xff] }
 0x49c   : > { %2212 = vmatmul.f32.gmra.mxu1 %v2189_v5  ;;  %v2286_v5 = vld [vmem:[#allocation7 + $0x130] sm:$0xff] }
 0x49d   : > { %2312 = vmatpush.msrb.mxu0 %v2286_v5 }
 0x4a4   : > { %2215 = vmatmul.f32.gmra.mxu1 %v2188_v0  ;;  %v2264_v0 = vld [vmem:[#allocation7 + $0x8] sm:$0xff] }
 0x4f4   : > { %v2066_v34 = vpop.f32.mrf.mxu3 }
 0x4f9   : > { %v2040_v61 = vpop.f32.mrf.mxu1 }
 0x4fa   : > { %v2067_v12 = vadd.f32 %v2066_v34, %v2040_v61  ;;  %v2385_v61 = vld [vmem:[#allocation7 + $0xc0] sm:$0xff]  ;;  %v2432_v34 = vld [vmem:[#allocation7 + $0x1e8] sm:$0xff] }
 0x4fb   : > { %2400 = vmatpush.msrb.mxu1 %v2385_v61 }
 0x4fc   : > { %v2069_v46 = vpop.f32.mrf.mxu3 }
 0x501   : > { %v2043_v39 = vpop.f32.mrf.mxu1 }
 0x502   : > { %v2070_v25 = vadd.f32 %v2069_v46, %v2043_v39  ;;  %v2263_v39 = vld [vmem:[#allocation7] sm:$0xff]  ;;  %v2430_v46 = vld [vmem:[#allocation7 + $0x1d8] sm:$0xff] }
 0x504   : > { %v2072_v26 = vpop.f32.mrf.mxu3 }
 0x509   : > { %v2046_v11 = vpop.f32.mrf.mxu1 }
 0x50a   : > { %v2073_v32 = vadd.f32 %v2072_v26, %v2046_v11  ;;  %v2431_v11 = vld [vmem:[#allocation7 + $0x1e0] sm:$0xff]  ;;  %v2283_v26 = vld [vmem:[#allocation7 + $0x118] sm:$0xff] }
 0x50c   : > { %v2153_v16 = vpop.f32.mrf.mxu2 }
 0x50d   : > { %v2162_v19 = vadd.f32 %v2153_v16, %v2067_v12  ;;  %v2384_v16 = vld [vmem:[#allocation7 + $0xb8] sm:$0xff]  ;;  %v2282_v12 = vld [vmem:[#allocation7 + $0x110] sm:$0xff] }
 0x50e   : > { %2401 = vmatpush.msrb.mxu1 %v2384_v16 }
 0x511   : > { %v2210_v21 = vpop.f32.mrf.mxu1 }
 0x512   : > { %v2219_v41 = vadd.f32 %v2210_v21, %v2162_v19  ;;  %v2285_v21 = vld [vmem:[#allocation7 + $0x128] sm:$0xff]  ;;  %v2427_v19 = vld [vmem:[#allocation7 + $0x1c0] sm:$0xff] }
 0x513   : > { %2313 = vmatpush.msrb.mxu0 %v2285_v21  ;;  %v3043_v21 = vld [vmem:[%s4110_s8] ss:$0 sm:$0xff] }
 0x514   : > { %v2156_v23 = vpop.f32.mrf.mxu2  ;;  %v2226_v59 = vadd.f32 %v3042_v45, %v2219_v41  ;;  %v2280_v41 = vld [vmem:[#allocation7 + $0x100] sm:$0xff] }
 0x515   : > { %v2163_v29 = vadd.f32 %v2156_v23, %v2070_v25  ;;  %v2284_v23 = vld [vmem:[#allocation7 + $0x120] sm:$0xff]  ;;  %v2429_v25 = vld [vmem:[#allocation7 + $0x1d0] sm:$0xff] }
 0x516   : > { %v2229_v3 = vmax.f32 %v2226_v59, 0.0  ;;  %2314 = vmatpush.msrb.mxu0 %v2284_v23  ;;  %v2422_v59 = vld [vmem:[#allocation7 + $0x198] sm:$0xff] }
 0x518   : > { %2315 = vmatpush.msrb.mxu0 %v2283_v26 }
 0x519   : > { %v2213_v24 = vpop.f32.mrf.mxu1 }
 0x51a   : > { %v2220_v33 = vadd.f32 %v2213_v24, %v2163_v29  ;;  %v2383_v24 = vld [vmem:[#allocation7 + $0xb0] sm:$0xff]  ;;  %v2428_v29 = vld [vmem:[#allocation7 + $0x1c8] sm:$0xff]  ;;  %2316 = vmatpush.msrb.mxu0 %v2282_v12 }
 0x51b   : > { %2402 = vmatpush.msrb.mxu1 %v2383_v24 }
 0x51c   : > { %v2159_v57 = vpop.f32.mrf.mxu2  ;;  %v2227_v53 = vadd.f32 %v3042_v45, %v2220_v33  ;;  %v2380_v33 = vld [vmem:[#allocation7 + $0x98] sm:$0xff] }
 0x51d   : > { %v2164_v40 = vadd.f32 %v2159_v57, %v2073_v32  ;;  %v2382_v57 = vld [vmem:[#allocation7 + $0xa8] sm:$0xff]  ;;  %v2381_v32 = vld [vmem:[#allocation7 + $0xa0] sm:$0xff] }
 0x51e   : > { %v2230_v54 = vmax.f32 %v2227_v53, 0.0  ;;  %2403 = vmatpush.msrb.mxu1 %v2382_v57  ;;  %v2378_v53 = vld [vmem:[#allocation7 + $0x88] sm:$0xff] }
 0x520   : > { %2404 = vmatpush.msrb.mxu1 %v2381_v32  ;;  %v2534_v32 = vld [vmem:[#allocation8 + $0x178] sm:$0xff] }
 0x521   : > { %v2216_v31 = vpop.f32.mrf.mxu1 }
 0x522   : > { %v2221_v48 = vadd.f32 %v2216_v31, %v2164_v40  ;;  %v2281_v40 = vld [vmem:[#allocation7 + $0x108] sm:$0xff]  ;;  %v2426_v31 = vld [vmem:[#allocation7 + $0x1b8] sm:$0xff]  ;;  %2405 = vmatpush.msrb.mxu1 %v2380_v33  ;;  %v2531_v33 = vld [vmem:[#allocation8 + $0x160] sm:$0xff] }
 0x523   : > { %2317 = vmatpush.msrb.mxu0 %v2281_v40  ;;  %v2530_v40 = vld [vmem:[#allocation8 + $0x158] sm:$0xff] }
 0x524   : > { %v2228_v50 = vadd.f32 %v3042_v45, %v2221_v48  ;;  %v2379_v45 = vld [vmem:[#allocation7 + $0x90] sm:$0xff] }
 0x525   : > { %v2425_v48 = vld [vmem:[#allocation7 + $0x1b0] sm:$0xff]  ;;  %2406 = vmatpush.msrb.mxu1 %v2379_v45  ;;  %2318 = vmatpush.msrb.mxu0 %v2280_v41  ;;  %v2528_v41 = vld [vmem:[#allocation8 + $0x148] sm:$0xff]  ;;  %v2527_v45 = vld [vmem:[#allocation8 + $0x140] sm:$0xff] }
 0x526   : > { %v2231_v58 = vmax.f32 %v2228_v50, 0.0  ;;  %v2377_v50 = vld [vmem:[#allocation7 + $0x80] sm:$0xff] }
 0x527   : > { %2407 = vmatpush.msrb.mxu1 %v2378_v53  ;;  %v2525_v53 = vld [vmem:[#allocation8 + $0x130] sm:$0xff] }
 0x528   : > { %2925 = vmatpush.msk.msrb.mxu3 %vm1949_vm8, %v2231_v58 }
 0x529   : > { %2408 = vmatpush.msrb.mxu1 %v2377_v50  ;;  %v2523_v50 = vld [vmem:[#allocation8 + $0x120] sm:$0xff] }
 0x52a   : > { %2254 = vmatpush.msrb.mxu3 %v2230_v54 }
 0x52b   : > { %2558 = vmatpush.msra.mxu1 %v2517_v51  ;;  %v2653_v51 = vld [vmem:[#allocation8 + $0x1f0] sm:$0xff] }
 0x52c   : > { %2255 = vmatpush.msrb.mxu3 %v2229_v3 }
 0x52d   : > { %2926 = vmatmul.msk.f32.vlgmr.msrb.gmra.mxu3 %vm2232_vm1, %v4010_v17 }
 0x52e   : > { %2928 = vmatpush.msk.msra.mxu3 %vm1949_vm8, %v2231_v58  ;;  %v2421_v58 = vld [vmem:[#allocation7 + $0x190] sm:$0xff] }
 0x530   : > { %2367 = vmatpush.msra.mxu3 %v2230_v54  ;;  %v2516_v54 = vld [vmem:[#allocation8 + $0x70] sm:$0xff] }
 0x531   : > { %2559 = vmatpush.msra.mxu1 %v2516_v54  ;;  %v2614_v54 = vld [vmem:[#allocation8 + $0xe8] sm:$0xff] }
 0x532   : > { %2368 = vmatpush.msra.mxu3 %v2229_v3 }
 0x533   : > { %2560 = vmatpush.msra.mxu1 %v2515_v2  ;;  %v2652_v2 = vld [vmem:[#allocation8 + $0x1e8] sm:$0xff] }
 0x534   : > { %2442 = vmatpush.msrb.mxu3 %v2434_v38 }
 0x535   : > { %2927 = vmatmul.msk.f32.gmra.mxu3 %vm2232_vm1, %v4018_v10  ;;  %v2269_v10 = vld [vmem:[#allocation7 + $0x30] sm:$0xff]  ;;  %2561 = vmatpush.msra.mxu1 %v2514_v52  ;;  %v2651_v52 = vld [vmem:[#allocation8 + $0x1e0] sm:$0xff] }
 0x536   : > { %2443 = vmatpush.msrb.mxu3 %v2433_v1  ;;  %2335 = vmatpush.msra.mxu2 %v2269_v10  ;;  %v2512_v10 = vld [vmem:[#allocation8 + $0x50] sm:$0xff] }
 0x537   : > { %2562 = vmatpush.msra.mxu1 %v2513_v36  ;;  %v2611_v36 = vld [vmem:[#allocation8 + $0xd0] sm:$0xff] }
 0x538   : > { %2444 = vmatpush.msrb.mxu3 %v2432_v34 }
 0x539   : > { %2563 = vmatpush.msra.mxu1 %v2512_v10  ;;  %v2646_v10 = vld [vmem:[#allocation8 + $0x1b8] sm:$0xff] }
 0x53a   : > { %2445 = vmatpush.msrb.mxu3 %v2431_v11 }
 0x53b   : > { %2564 = vmatpush.msra.mxu1 %v2511_v35  ;;  %v2607_v35 = vld [vmem:[#allocation8 + $0xb0] sm:$0xff] }
 0x53c   : > { %2446 = vmatpush.msrb.mxu3 %v2430_v46 }
 0x53d   : > { %2929 = vmatmul.msk.f32.vlgmr.msra.gmra.mxu3 %vm2232_vm1, %v4028_v56  ;;  %2565 = vmatpush.msra.mxu1 %v2510_v47  ;;  %v2645_v47 = vld [vmem:[#allocation8 + $0x1b0] sm:$0xff] }
 0x53e   : > { %2447 = vmatpush.msrb.mxu3 %v2429_v25 }
 0x540   : > { %2448 = vmatpush.msrb.mxu3 %v2428_v29  ;;  %v2533_v29 = vld [vmem:[#allocation8 + $0x170] sm:$0xff] }
 0x542   : > { %2449 = vmatpush.msrb.mxu3 %v2427_v19  ;;  %v2532_v19 = vld [vmem:[#allocation8 + $0x168] sm:$0xff] }
 0x544   : > { %2450 = vmatpush.msrb.mxu3 %v2426_v31  ;;  %v2529_v31 = vld [vmem:[#allocation8 + $0x150] sm:$0xff] }
 0x545   : > { %2930 = vmatmul.msk.f32.gmra.mxu3 %vm2232_vm1, %v4034_v6  ;;  %v2268_v6 = vld [vmem:[#allocation7 + $0x28] sm:$0xff] }
 0x546   : > { %2336 = vmatpush.msra.mxu2 %v2268_v6  ;;  %2451 = vmatpush.msrb.mxu3 %v2425_v48  ;;  %v2509_v6 = vld [vmem:[#allocation8 + $0x38] sm:$0xff] }
 0x547   : > { %2566 = vmatpush.msra.mxu1 %v2509_v6  ;;  %v2526_v48 = vld [vmem:[#allocation8 + $0x138] sm:$0xff]  ;;  %v2606_v6 = vld [vmem:[#allocation8 + $0xa8] sm:$0xff] }
 0x548   : > { %2337 = vmatpush.msra.mxu2 %v2267_v22  ;;  %2452 = vmatpush.msrb.mxu3 %v2424_v27  ;;  %v2506_v22 = vld [vmem:[#allocation8 + $0x20] sm:$0xff]  ;;  %v2522_v27 = vld [vmem:[#allocation8 + $0x118] sm:$0xff] }
 0x549   : > { %2567 = vmatpush.msra.mxu1 %v2508_v7 }
 0x54a   : > { %2338 = vmatpush.msra.mxu2 %v2266_v37  ;;  %2453 = vmatpush.msrb.mxu3 %v2423_v62  ;;  %v2503_v37 = vld [vmem:[#allocation8 + $0x8] sm:$0xff]  ;;  %v2521_v62 = vld [vmem:[#allocation8 + $0x110] sm:$0xff] }
 0x54b   : > { %2568 = vmatpush.msra.mxu1 %v2507_v42 }
 0x54c   : > { %2339 = vmatpush.msra.mxu2 %v2265_v28  ;;  %2454 = vmatpush.msrb.mxu3 %v2422_v59  ;;  %v2520_v59 = vld [vmem:[#allocation8 + $0x108] sm:$0xff] }
 0x54d   : > { %2569 = vmatpush.msra.mxu1 %v2506_v22  ;;  %v2605_v22 = vld [vmem:[#allocation8 + $0xa0] sm:$0xff] }
 0x54e   : > { %2340 = vmatpush.msra.mxu2 %v2264_v0  ;;  %2455 = vmatpush.msrb.mxu3 %v2421_v58  ;;  %v2519_v58 = vld [vmem:[#allocation8 + $0x100] sm:$0xff] }
 0x54f   : > { %2570 = vmatpush.msra.mxu1 %v2505_v18  ;;  %v2644_v18 = vld [vmem:[#allocation8 + $0x1a8] sm:$0xff] }
 0x550   : > { %2341 = vmatpush.msra.mxu2 %v2263_v39  ;;  %2456 = vmatpush.msrb.mxu3 %v2420_v49  ;;  %v2616_v49 = vld [vmem:[#allocation8 + $0xf8] sm:$0xff] }
 0x551   : > { %2571 = vmatpush.msra.mxu1 %v2504_v30  ;;  %v2604_v30 = vld [vmem:[#allocation8 + $0x98] sm:$0xff] }
 0x552   : > { %2457 = vmatpush.msrb.mxu3 %v2419_v14  ;;  %2538 = vmatpush.msrb.mxu2 %v2534_v32  ;;  %v2615_v14 = vld [vmem:[#allocation8 + $0xf0] sm:$0xff] }
 0x553   : > { %2572 = vmatpush.msra.mxu1 %v2503_v37  ;;  %v2643_v37 = vld [vmem:[#allocation8 + $0x1a0] sm:$0xff] }
 0x554   : > { %2539 = vmatpush.msrb.mxu2 %v2533_v29 }
 0x555   : > { %2573 = vmatpush.msra.mxu1 %v2502_v44  ;;  %v2603_v44 = vld [vmem:[#allocation8 + $0x90] sm:$0xff] }
 0x556   : > { %2540 = vmatpush.msrb.mxu2 %v2532_v19 }
 0x558   : > { %2541 = vmatpush.msrb.mxu2 %v2531_v33 }
 0x55a   : > { %2542 = vmatpush.msrb.mxu2 %v2530_v40 }
 0x55c   : > { %2543 = vmatpush.msrb.mxu2 %v2529_v31 }
 0x55e   : > { %2544 = vmatpush.msrb.mxu2 %v2528_v41 }
 0x560   : > { %2545 = vmatpush.msrb.mxu2 %v2527_v45 }
 0x562   : > { %2546 = vmatpush.msrb.mxu2 %v2526_v48 }
 0x564   : > { %2547 = vmatpush.msrb.mxu2 %v2525_v53 }
 0x5b0   : > { %v2257_v55 = vpop.f32.mrf.mxu3 }
 0x5b1   : > { %2342 = vmatmul.f32.vlgmr.msra.gmra.mxu2 %v2257_v55  ;;  %v2298_v38 = vrot.slane %v2257_v55, 1  ;;  %v2654_v55 = vld [vmem:[#allocation8 + $0x1f8] sm:$0xff] }
 0x5b2   : > { %2658 = vmatpush.msra.mxu3 %v2654_v55 }
 0x5b4   : > { %2659 = vmatpush.msra.mxu3 %v2653_v51 }
 0x5b6   : > { %2660 = vmatpush.msra.mxu3 %v2652_v2 }
 0x5b8   : > { %v2260_v3 = vpop.f32.mrf.mxu3  ;;  %2661 = vmatpush.msra.mxu3 %v2651_v52 }
 0x5b9   : > { %v2299_v1 = vrot.slane %v2260_v3, 1  ;;  %2345 = vmatmul.f32.gmra.mxu2 %v2260_v3  ;;  %v2613_v3 = vld [vmem:[#allocation8 + $0xe0] sm:$0xff] }
 0x5bb   : > { %v2300_v8 = vsel %vm943_vm4, %v2298_v38, %v2299_v1  ;;  %v2612_v38 = vld [vmem:[#allocation8 + $0xd8] sm:$0xff] }
 0x5bc   : > { %2319 = vmatmul.f32.vlgmr.msrb.gmra.mxu0 %v2300_v8  ;;  %v2649_v8 = vld [vmem:[#allocation8 + $0x1d0] sm:$0xff] }
 0x5c0   : > { %v2370_v43 = vpop.f32.mrf.mxu3 }
 0x5c1   : > { %2409 = vmatmul.f32.vlgmr.msrb.gmra.mxu1 %v2370_v43  ;;  %v2437_v4 = vrot.slane %v2370_v43, 1  ;;  %v2610_v43 = vld [vmem:[#allocation8 + $0xc8] sm:$0xff] }
 0x5c4   : > { %2322 = vmatmul.f32.gmra.mxu0 %v2299_v1  ;;  %v2650_v1 = vld [vmem:[#allocation8 + $0x1d8] sm:$0xff] }
 0x5c5   : > { %2662 = vmatpush.msra.mxu3 %v2650_v1 }
 0x5c7   : > { %2663 = vmatpush.msra.mxu3 %v2649_v8 }
 0x5c8   : > { %v2373_v15 = vpop.f32.mrf.mxu3 }
 0x5c9   : > { %v2438_v60 = vrot.slane %v2373_v15, 1  ;;  %2412 = vmatmul.f32.gmra.mxu1 %v2373_v15  ;;  %v2648_v15 = vld [vmem:[#allocation8 + $0x1c8] sm:$0xff] }
 0x5ca   : > { %2664 = vmatpush.msra.mxu3 %v2648_v15 }
 0x5cb   : > { %v2439_v20 = vsel %vm943_vm4, %v2437_v4, %v2438_v60  ;;  %vm2478_vm4 = vcmask 1041408   ;;  %v2609_v4 = vld [vmem:[#allocation8 + $0xc0] sm:$0xff] }
 0x5cc   : > { %2458 = vmatmul.f32.vlgmr.msrb.gmra.mxu3 %v2439_v20  ;;  %v2608_v20 = vld [vmem:[#allocation8 + $0xb8] sm:$0xff] }
 0x5d4   : > { %2461 = vmatmul.f32.gmra.mxu3 %v2438_v60  ;;  %v2647_v60 = vld [vmem:[#allocation8 + $0x1c0] sm:$0xff] }
 0x5d5   : > { %2665 = vmatpush.msra.mxu3 %v2647_v60 }
 0x5d7   : > { %2666 = vmatpush.msra.mxu3 %v2646_v10 }
 0x5d9   : > { %2667 = vmatpush.msra.mxu3 %v2645_v47 }
 0x5db   : > { %2668 = vmatpush.msra.mxu3 %v2644_v18 }
 0x5dd   : > { %2669 = vmatpush.msra.mxu3 %v2643_v37 }
 0x634   : > { %v2343_v28 = vpop.f32.mrf.mxu2 }
 0x639   : > { %v2320_v13 = vpop.f32.mrf.mxu0 }
 0x63a   : > { %v2344_v5 = vadd.f32 %v2343_v28, %v2320_v13  ;;  %v2642_v13 = vld [vmem:[#allocation8 + $0x198] sm:$0xff]  ;;  %v2602_v28 = vld [vmem:[#allocation8 + $0x88] sm:$0xff] }
 0x63b   : > { %2670 = vmatpush.msra.mxu3 %v2642_v13 }
 0x63c   : > { %v2346_v61 = vpop.f32.mrf.mxu2 }
 0x63e   : > { %v2410_v9 = vpop.f32.mrf.mxu1 }
 0x63f   : > { %v2416_v34 = vadd.f32 %v2410_v9, %v2344_v5  ;;  %v2641_v9 = vld [vmem:[#allocation8 + $0x190] sm:$0xff] }
 0x640   : > { %2671 = vmatpush.msra.mxu3 %v2641_v9 }
 0x641   : > { %v2323_v0 = vpop.f32.mrf.mxu0 }
 0x642   : > { %v2347_v11 = vadd.f32 %v2346_v61, %v2323_v0  ;;  %v2639_v0 = vld [vmem:[#allocation8 + $0x180] sm:$0xff] }
 0x646   : > { %v2413_v39 = vpop.f32.mrf.mxu1 }
 0x647   : > { %v2417_v46 = vadd.f32 %v2413_v39, %v2347_v11 }
 0x64f   : > { %v2459_v63 = vpop.f32.mrf.mxu3 }
 0x650   : > { %v2465_v16 = vadd.f32 %v2459_v63, %v2416_v34  ;;  %v2601_v63 = vld [vmem:[#allocation8 + $0x80] sm:$0xff] }
 0x652   : > { %v2471_v25 = vadd.f32 %v3043_v21, %v2465_v16 }
 0x654   : > { %v2473_v12 = vmax.f32 %v2471_v25, 0.0 }
 0x657   : > { %v2462_v23 = vpop.f32.mrf.mxu3 }
 0x658   : > { %v2466_v24 = vadd.f32 %v2462_v23, %v2417_v46  ;;  %v3044_v46 = vld [vmem:[%s4112_s10] ss:$0 sm:$0xff] }
 0x65a   : > { %v2472_v26 = vadd.f32 %v3043_v21, %v2466_v24 }
 0x65c   : > { %v2474_v57 = vmax.f32 %v2472_v26, 0.0 }
 0x65e   : > { %2931 = vmatpush.msk.msra.mxu0 %vm2478_vm4, %v2474_v57  ;;  %2933 = vmatpush.msk.msrb.mxu1 %vm2478_vm4, %v2474_v57 }
 0x660   : > { %2497 = vmatpush.msra.mxu0 %v2473_v12  ;;  %2595 = vmatpush.msrb.mxu1 %v2473_v12 }
 0x661   : > { %2932 = vmatmul.msk.f32.vlgmr.msra.gmra.mxu0 %vm2475_vm2, %v4010_v17  ;;  %v2524_v17 = vld [vmem:[#allocation8 + $0x128] sm:$0xff] }
 0x662   : > { %2548 = vmatpush.msrb.mxu2 %v2524_v17  ;;  %2617 = vmatpush.msrb.mxu0 %v2616_v49 }
 0x664   : > { %2549 = vmatpush.msrb.mxu2 %v2523_v50  ;;  %2618 = vmatpush.msrb.mxu0 %v2615_v14 }
 0x666   : > { %2550 = vmatpush.msrb.mxu2 %v2522_v27  ;;  %2619 = vmatpush.msrb.mxu0 %v2614_v54 }
 0x668   : > { %2551 = vmatpush.msrb.mxu2 %v2521_v62  ;;  %2620 = vmatpush.msrb.mxu0 %v2613_v3 }
 0x66a   : > { %2552 = vmatpush.msrb.mxu2 %v2520_v59  ;;  %2621 = vmatpush.msrb.mxu0 %v2612_v38 }
 0x66c   : > { %2553 = vmatpush.msrb.mxu2 %v2519_v58  ;;  %2622 = vmatpush.msrb.mxu0 %v2611_v36 }
 0x66e   : > { %2623 = vmatpush.msrb.mxu0 %v2610_v43 }
 0x670   : > { %2624 = vmatpush.msrb.mxu0 %v2609_v4 }
 0x672   : > { %2625 = vmatpush.msrb.mxu0 %v2608_v20 }
 0x674   : > { %2626 = vmatpush.msrb.mxu0 %v2607_v35 }
 0x676   : > { %2627 = vmatpush.msrb.mxu0 %v2606_v6 }
 0x678   : > { %2628 = vmatpush.msrb.mxu0 %v2605_v22 }
 0x67a   : > { %2629 = vmatpush.msrb.mxu0 %v2604_v30 }
 0x67c   : > { %2630 = vmatpush.msrb.mxu0 %v2603_v44 }
 0x67e   : > { %2631 = vmatpush.msrb.mxu0 %v2602_v28 }
 0x680   : > { %2632 = vmatpush.msrb.mxu0 %v2601_v63 }
 0x6de   : > { %v2499_v7 = vpop.f32.mrf.mxu0 }
 0x6df   : > { %v2536_v42 = vrot.slane %v2499_v7, 1  ;;  %2574 = vmatmul.f32.vlgmr.msra.gmra.mxu1 %v2499_v7 }
 0x6e1   : > { %2554 = vmatmul.f32.vlgmr.msrb.gmra.mxu2 %v2536_v42 }
 0x6e7   : > { %2934 = vmatmul.msk.f32.vlgmr.msrb.gmra.mxu1 %vm2475_vm2, %v4028_v56  ;;  %v2640_v56 = vld [vmem:[#allocation8 + $0x188] sm:$0xff] }
 0x6e8   : > { %2672 = vmatpush.msra.mxu3 %v2640_v56 }
 0x6ea   : > { %2673 = vmatpush.msra.mxu3 %v2639_v0 }
 0x75c   : > { %v2575_v5 = vpop.f32.mrf.mxu1 }
 0x764   : > { %v2597_v61 = vpop.f32.mrf.mxu1  ;;  %v2555_v34 = vpop.f32.mrf.mxu2 }
 0x765   : > { %v2656_v39 = vrot.slane %v2597_v61, 1  ;;  %2633 = vmatmul.f32.vlgmr.msrb.gmra.mxu0 %v2597_v61  ;;  %v2576_v16 = vadd.f32 %v2575_v5, %v2555_v34 }
 0x767   : > { %2674 = vmatmul.f32.vlgmr.msra.gmra.mxu3 %v2656_v39 }
 0x7e2   : > { %v2634_v11 = vpop.f32.mrf.mxu0 }
 0x7e3   : > { %v2637_v21 = vadd.f32 %v2634_v11, %v2576_v16 }
 0x7ea   : > { %v2675_v23 = vpop.f32.mrf.mxu3 }
 0x7eb   : > { %v2678_v24 = vadd.f32 %v2675_v23, %v2637_v21 }
 0x7ed   : > { %v2683_v25 = vadd.f32 %v3044_v46, %v2678_v24 }
 0x7ef   : > { %2684 = vst [vmem:[%s446_s22] sm:$0xf] %v2683_v25 }
 0x7f0   : > { %3192 = shalt.err (!%p3189_p8)
}
 0x7f1   : > { %2972 = dma.vmem_to_hbm [thread:$0]  (%p3347_p5), %s2699_s25, 64, %s2701_s30, %s2686_s21  }
 0x7f2 PF: > { %s4132_s3 = sld [smem:[#allocation15_spill]]  ;;  %p2999_p9 = scmp.ge.s32.totalorder %s3239_s20, 2 }
 0x7f4   : > { %p2988_p10 = pnand %p2999_p9, %p3351_p6 }
 0x7f6   : > { %p2989_p11 = pneg %p2988_p10 }
 0x7f8   : > { %s2712_s23 = sand.u32 1, %s4132_s3  }
 0x7f9   : > { %s2713_s26 = scalar_lea.sflag [#allocation4], %s2712_s23 }
 0x7fa   : > { %3222 = dma.done.wait (%p2989_p11), %s2713_s26, 64  }
 0x7fb   : > { %3224 = vsyncadd (%p2989_p11), %s2713_s26, 4294967232  ;;  %s4134_s20 = sld [smem:[#allocation17_spill]]  ;;  %s4137_s17 = smov %s3231_s18 }
 0x7fc   : > { %s4135_s28 = sld [smem:[#allocation16_spill]] }
 0x7fd   : > { %s4136_s19 = sld [smem:[#allocation18_spill]] }
 0x801   : > { %p24_p12 = scmp.ge.s32.totalorder %s4134_s20, 4  }
 0x802   : > { %s4138_s18 = smov %s4135_s28 }
 0x803   :  { %26 = sbr.rel (!%p24_p12) target bundleno = 9 (0x9), region = 132 }
 0x808   :  { %2719 = vsyncpa [#allocation3], 1 }
 0x809   :  { %2721 = vsyncpa [#allocation3 + $0x1], 1 }
 0x80a   :  { %2722 = vsyncpa [#allocation6], 1 }
 0x80b   :  { %2723 = vsyncpa [#allocation9], 1 }
 0x80c   :  { %2724 = vsyncpa [#allocation4], 1 }
 0x80d   :  { %2726 = vsyncpa [#allocation4 + $0x1], 1 }

</bundles_post_ra>
